<compile_context>
chip_gen: v7x
topology: tpu7x:2x2x1
jax: 0.10.0
libtpu: 0.0.40
codegen_flags: <defaults>
</compile_context>

<pallas_src>
import functools

import jax
import jax.numpy as jnp
import numpy as np
from jax.experimental import pallas as pl
from jax.experimental.pallas import tpu as pltpu


def _round_up(x, m):
    return ((x + m - 1) // m) * m


# --------------------------- fused LSTMNN kernel ------------------------------
def _fused_lstmnn_kernel(seq_ref, wih_ref, whh_ref, bias_ref, wout_ref, bout_ref,
                         out_ref, seq_buf, gates_buf, h_scr, c_scr):
    """One grid step = one (batch_chunk, layer).

    seq_ref:   (1, T*Bc, Hp)  embedded input for this batch chunk (f32)
    wih_ref:   (1, Hp, 4Hp)   this layer's W_ih^T (gate-blocks 128-aligned)
    whh_ref:   (1, Hp, 4Hp)   this layer's W_hh^T
    bias_ref:  (1, 1, 4Hp)    b_ih + b_hh (f32)
    wout_ref:  (Hp, Op)       Linear weight^T (lane-dense padded)
    bout_ref:  (1, Op)        Linear bias (f32)
    out_ref:   (1, T*Bc, Op)  lane-dense output slab for this chunk
    seq_buf:   (T*Bc, Hp)     VMEM scratch: current layer's output sequence
    gates_buf: (T*Bc, 4Hp)    VMEM scratch: hoisted input projection
    h_scr/c_scr: (Bc, Hp)     VMEM scratch: recurrent state
    """
    l = pl.program_id(1)
    n_layers = pl.num_programs(1)
    Bc, Hp = h_scr.shape
    T = seq_buf.shape[0] // Bc
    cd = wih_ref.dtype                      # MXU compute dtype (f32 or bf16)

    wih = wih_ref[0]                        # (Hp, 4Hp)
    whh = whh_ref[0]                        # (Hp, 4Hp)
    bias = bias_ref[0]                      # (1, 4Hp) f32

    # (1) Hoisted input projection for ALL timesteps of this layer: one big MXU
    #     matmul + one bias broadcast, outside the serial time loop.  Layer 0
    #     reads the input block directly (no seq_ref -> seq_buf copy).
    @pl.when(l == 0)
    def _():
        gates_buf[...] = jnp.dot(seq_ref[0].astype(cd), wih,
                                 preferred_element_type=jnp.float32) + bias

    @pl.when(l > 0)
    def _():
        gates_buf[...] = jnp.dot(seq_buf[...].astype(cd), wih,
                                 preferred_element_type=jnp.float32) + bias

    # (2) Serial recurrence.  Scratch persists across grid steps -> re-init h/c
    #     every step (= every layer / batch chunk).
    h_scr[...] = jnp.zeros_like(h_scr)
    c_scr[...] = jnp.zeros_like(c_scr)

    def sig(x):  # sigmoid via tanh: 1 EUP push instead of exp + reciprocal
        return 0.5 * jnp.tanh(0.5 * x) + 0.5

    def lstm_step(row):
        rows = pl.ds(row, Bc)
        gates = gates_buf[rows, :] + jnp.dot(
            h_scr[...].astype(cd), whh, preferred_element_type=jnp.float32)

        # PyTorch gate order: i, f, g, o  (each gate block is 128-lane aligned)
        i = sig(gates[:, 0 * Hp:1 * Hp])
        f = sig(gates[:, 1 * Hp:2 * Hp])
        g = jnp.tanh(gates[:, 2 * Hp:3 * Hp])
        o = sig(gates[:, 3 * Hp:4 * Hp])

        c_new = f * c_scr[...] + i * g
        h_new = o * jnp.tanh(c_new)
        c_scr[...] = c_new
        h_scr[...] = h_new
        # input projection already cached in gates_buf -> overwrite in place
        seq_buf[rows, :] = h_new

    if T <= 16:
        for t in range(T):                       # static unroll: T is tiny here
            lstm_step(t * Bc)
    else:
        def body(t, carry):
            lstm_step(pl.multiple_of(t * Bc, 8))
            return carry
        jax.lax.fori_loop(0, T, body, 0, unroll=2)

    # (3) Final Linear over the whole sequence, last layer only (lane-dense store).
    @pl.when(l == n_layers - 1)
    def _():
        out_ref[0] = (
            jnp.dot(seq_buf[...].astype(cd), wout_ref[...],
                    preferred_element_type=jnp.float32)
            + bout_ref[...]
        ).astype(out_ref.dtype)


# ------------------------------ parameter packing ------------------------------
def init_params(key, input_size, hidden_size, num_layers, output_size):
    """PyTorch-layout parameters (used by the reference and then packed)."""
    H = hidden_size
    keys = jax.random.split(key, 1 + 4 * num_layers + 2)
    k = iter(keys)
    scale = 1.0 / np.sqrt(H)

    params = {}
    params["embedding"] = jax.random.uniform(
        next(k), (input_size, H), jnp.float32, -scale, scale)
    layers = []
    for _ in range(num_layers):
        w_ih = jax.random.uniform(next(k), (4 * H, H), jnp.float32, -scale, scale)
        w_hh = jax.random.uniform(next(k), (4 * H, H), jnp.float32, -scale, scale)
        b_ih = jax.random.uniform(next(k), (4 * H,), jnp.float32, -scale, scale)
        b_hh = jax.random.uniform(next(k), (4 * H,), jnp.float32, -scale, scale)
        layers.append((w_ih, w_hh, b_ih, b_hh))
    params["lstm"] = layers
    params["linear_w"] = jax.random.uniform(
        next(k), (output_size, H), jnp.float32, -scale, scale)
    params["linear_b"] = jax.random.uniform(
        next(k), (output_size,), jnp.float32, -scale, scale)
    return params


def _pad_gate_cols(x, H, Hp):
    """Last dim 4H -> 4Hp, placing gate k at columns [k*Hp, k*Hp + H) (zero pad)."""
    parts = []
    for k in range(4):
        g = x[..., k * H:(k + 1) * H]
        pad = [(0, 0)] * (g.ndim - 1) + [(0, Hp - H)]
        parts.append(jnp.pad(g, pad))
    return jnp.concatenate(parts, axis=-1)


def pack_params(params, compute_dtype=jnp.float32):
    """One-time repack: transpose / stack / pad H,O to lane multiples (128), keep
    biases and embedding in f32, weights in `compute_dtype` (bf16 recommended on
    v6e/v7x for 2x MXU and half the weight DMA/VMEM)."""
    emb = params["embedding"]
    _, H = emb.shape
    Hp = _round_up(H, 128)
    O = params["linear_w"].shape[0]
    Op = _round_up(O, 128)

    emb_pad = jnp.pad(emb, ((0, 0), (0, Hp - H))).astype(jnp.float32)

    wih_l, whh_l, bias_l = [], [], []
    for (w_ih, w_hh, b_ih, b_hh) in params["lstm"]:
        wih_t = jnp.pad(_pad_gate_cols(w_ih.T, H, Hp), ((0, Hp - H), (0, 0)))
        whh_t = jnp.pad(_pad_gate_cols(w_hh.T, H, Hp), ((0, Hp - H), (0, 0)))
        bias = _pad_gate_cols((b_ih + b_hh)[None, :], H, Hp)
        wih_l.append(wih_t); whh_l.append(whh_t); bias_l.append(bias)

    return dict(
        embedding=emb_pad,
        wih_t=jnp.stack(wih_l).astype(compute_dtype),          # (L, Hp, 4Hp)
        whh_t=jnp.stack(whh_l).astype(compute_dtype),          # (L, Hp, 4Hp)
        bias=jnp.stack(bias_l).astype(jnp.float32),             # (L, 1, 4Hp)
        wout_t=jnp.pad(params["linear_w"].T,
                       ((0, Hp - H), (0, Op - O))).astype(compute_dtype),  # (Hp, Op)
        bout=jnp.pad(params["linear_b"][None, :],
                     ((0, 0), (0, Op - O))).astype(jnp.float32),           # (1, Op)
    )


# --------------------------------- forward -------------------------------------
@functools.partial(jax.jit, static_argnames=("output_size",))
def lstmnn_forward(packed, x_tokens, *, output_size):
    """x_tokens: int32 (B, T). Returns (B, T, output_size) float32 (batch_first)."""
    B, T = x_tokens.shape
    emb = packed["embedding"]
    Hp = emb.shape[1]
    Op = packed["wout_t"].shape[1]
    L = packed["wih_t"].shape[0]
    w_bytes = jnp.dtype(packed["wih_t"].dtype).itemsize

    # Batch chunking: >=2 chunks only when B is big enough to keep each chunk
    # sublane-dense (multiple of 8).  "parallel" chunk axis -> megacore on v7x.
    n_chunks = 2 if B >= 16 else 1
    Bc = _round_up(-(-B // n_chunks), 8)
    B_pad = n_chunks * Bc

    # Embedding gather straight into the (chunk, T*Bc, Hp) sequence-major layout
    # (only the tiny int token matrix is transposed, never activations).
    tok = jnp.zeros((B_pad, T), jnp.int32).at[:B].set(x_tokens)
    tok = tok.reshape(n_chunks, Bc, T).transpose(0, 2, 1).reshape(n_chunks, T * Bc)
    seq = jnp.take(emb, tok.reshape(-1), axis=0).reshape(n_chunks, T * Bc, Hp)
    seq = seq.astype(jnp.float32)

    # VMEM budget: double-buffered input/weight/output blocks + scratch.
    vmem_bytes = (
        2 * (T * Bc) * Hp * 4                  # seq input block
        + 2 * 2 * Hp * 4 * Hp * w_bytes        # wih + whh blocks (double-buffered)
        + 2 * 4 * Hp * 4                       # bias blocks
        + 2 * Hp * Op * w_bytes + 2 * Op * 4   # wout, bout
        + 2 * (T * Bc) * Op * 4                # out block
        + (T * Bc) * Hp * 4                    # seq_buf
        + (T * Bc) * 4 * Hp * 4                # gates_buf
        + 2 * Bc * Hp * 4                      # h, c
    )
    vmem_limit = min(int(1.5 * vmem_bytes) + (8 << 20), 96 << 20)

    out = pl.pallas_call(
        _fused_lstmnn_kernel,
        out_shape=jax.ShapeDtypeStruct((n_chunks, T * Bc, Op), jnp.float32),
        grid_spec=pltpu.PrefetchScalarGridSpec(
            num_scalar_prefetch=0,
            grid=(n_chunks, L),
            in_specs=[
                pl.BlockSpec((1, T * Bc, Hp), lambda b, l: (b, 0, 0)),     # seq
                pl.BlockSpec((1, Hp, 4 * Hp), lambda b, l: (l, 0, 0)),     # W_ih^T
                pl.BlockSpec((1, Hp, 4 * Hp), lambda b, l: (l, 0, 0)),     # W_hh^T
                pl.BlockSpec((1, 1, 4 * Hp), lambda b, l: (l, 0, 0)),      # bias
                pl.BlockSpec((Hp, Op), lambda b, l: (0, 0)),               # W_out^T
                pl.BlockSpec((1, Op), lambda b, l: (0, 0)),                # b_out
            ],
            out_specs=pl.BlockSpec((1, T * Bc, Op), lambda b, l: (b, 0, 0)),
            scratch_shapes=[
                pltpu.VMEM((T * Bc, Hp), jnp.float32),        # seq_buf
                pltpu.VMEM((T * Bc, 4 * Hp), jnp.float32),    # gates_buf
                pltpu.VMEM((Bc, Hp), jnp.float32),            # h
                pltpu.VMEM((Bc, Hp), jnp.float32),            # c
            ],
        ),
        compiler_params=pltpu.CompilerParams(
            dimension_semantics=("parallel", "arbitrary"),
            vmem_limit_bytes=vmem_limit,
        ),
    )(seq, packed["wih_t"], packed["whh_t"], packed["bias"],
      packed["wout_t"], packed["bout"])

    # (chunk, T*Bc, Op) -> (B, T, O) batch_first
    out = out[..., :output_size].reshape(n_chunks, T, Bc, output_size)
    out = out.transpose(0, 2, 1, 3).reshape(B_pad, T, output_size)
    return out[:B]


# ---------------------------- pure-JAX reference --------------------------------
def lstmnn_reference(params, x_tokens):
    B, _ = x_tokens.shape
    H = params["embedding"].shape[1]
    seq = jnp.take(params["embedding"], x_tokens, axis=0)  # (B, T, H)
    for (w_ih, w_hh, b_ih, b_hh) in params["lstm"]:
        h = jnp.zeros((B, H), jnp.float32)
        c = jnp.zeros((B, H), jnp.float32)

        def step(carry, x_t):
            h, c = carry
            gates = x_t @ w_ih.T + b_ih + h @ w_hh.T + b_hh
            i = jax.nn.sigmoid(gates[:, 0 * H:1 * H])
            f = jax.nn.sigmoid(gates[:, 1 * H:2 * H])
            g = jnp.tanh(gates[:, 2 * H:3 * H])
            o = jax.nn.sigmoid(gates[:, 3 * H:4 * H])
            c = f * c + i * g
            h = o * jnp.tanh(c)
            return (h, c), h

        (_, _), hs = jax.lax.scan(step, (h, c), jnp.transpose(seq, (1, 0, 2)))
        seq = jnp.transpose(hs, (1, 0, 2))
    return seq @ params["linear_w"].T + params["linear_b"]


# ------------------------------------ main ---------------------------------------
if __name__ == "__main__":
    input_size = 64     # vocab size
    hidden_size = 32
    num_layers = 2
    output_size = 16
    batch_size = 2
    seq_len = 8

    key = jax.random.PRNGKey(0)
    pkey, xkey = jax.random.split(key)
    params = init_params(pkey, input_size, hidden_size, num_layers, output_size)
    x_tokens = jax.random.randint(xkey, (batch_size, seq_len), 0, input_size,
                                  dtype=jnp.int32)

    ref = jax.block_until_ready(lstmnn_reference(params, x_tokens))

    # f32 weights: tight numerical check against the pure-JAX reference.
    packed_f32 = pack_params(params, compute_dtype=jnp.float32)
    out_f32 = jax.block_until_ready(
        lstmnn_forward(packed_f32, x_tokens, output_size=output_size))
    assert out_f32.shape == (batch_size, seq_len, output_size), out_f32.shape
    np.testing.assert_allclose(np.asarray(out_f32), np.asarray(ref),
                               rtol=1e-4, atol=1e-4)

    # bf16 weights (perf path on v5e/v6e/v7x): f32 accumulation & cell state,
    # looser tolerance.
    packed_bf16 = pack_params(params, compute_dtype=jnp.bfloat16)
    out_bf16 = jax.block_until_ready(
        lstmnn_forward(packed_bf16, x_tokens, output_size=output_size))
    np.testing.assert_allclose(np.asarray(out_bf16), np.asarray(ref),
                               rtol=5e-2, atol=5e-2)

    print("KERNEL_OK")
</pallas_src>

<mosaic_0001>
module attributes {stable_mosaic.version = 11 : i64} {
  func.func @_fused_lstmnn_kernel(%arg0: i32, %arg1: i32, %arg2: memref<1x64x128xf32, #tpu.memory_space<vmem>>, %arg3: memref<1x128x512xf32, #tpu.memory_space<vmem>>, %arg4: memref<1x128x512xf32, #tpu.memory_space<vmem>>, %arg5: memref<1x1x512xf32, #tpu.memory_space<vmem>>, %arg6: memref<128x128xf32, #tpu.memory_space<vmem>>, %arg7: memref<1x128xf32, #tpu.memory_space<vmem>>, %arg8: memref<1x64x128xf32, #tpu.memory_space<vmem>>, %arg9: memref<64x128xf32, #tpu.memory_space<vmem>>, %arg10: memref<64x512xf32, #tpu.memory_space<vmem>>, %arg11: memref<8x128xf32, #tpu.memory_space<vmem>>, %arg12: memref<8x128xf32, #tpu.memory_space<vmem>>) attributes {dimension_semantics = [#tpu.dimension_semantics<parallel>, #tpu.dimension_semantics<arbitrary>], iteration_bounds = array<i64: 1, 2>, scalar_prefetch = 0 : i64, scratch_operands = 4 : i64, tpu.core_type = #tpu.core_type<tc>, window_params = [{transform_indices = @transform_0, window_bounds = array<i64: 1, 64, 128>}, {transform_indices = @transform_1, window_bounds = array<i64: 1, 128, 512>}, {transform_indices = @transform_2, window_bounds = array<i64: 1, 128, 512>}, {transform_indices = @transform_3, window_bounds = array<i64: 1, 1, 512>}, {pipeline_mode = #tpu.pipeline_mode<synchronous>, transform_indices = @transform_4, window_bounds = array<i64: 128, 128>}, {pipeline_mode = #tpu.pipeline_mode<synchronous>, transform_indices = @transform_5, window_bounds = array<i64: 1, 128>}, {transform_indices = @transform_6, window_bounds = array<i64: 1, 64, 128>}]} {
    %c0 = arith.constant 0 : index
    %c0_0 = arith.constant 0 : index
    %c0_1 = arith.constant 0 : index
    %0 = vector.load %arg3[%c0, %c0_0, %c0_1] : memref<1x128x512xf32, #tpu.memory_space<vmem>>, vector<1x128x512xf32>
    %1 = vector.shape_cast %0 : vector<1x128x512xf32> to vector<128x512xf32>
    %c0_2 = arith.constant 0 : index
    %c0_3 = arith.constant 0 : index
    %c0_4 = arith.constant 0 : index
    %2 = vector.load %arg4[%c0_2, %c0_3, %c0_4] : memref<1x128x512xf32, #tpu.memory_space<vmem>>, vector<1x128x512xf32>
    %3 = vector.shape_cast %2 : vector<1x128x512xf32> to vector<128x512xf32>
    %c0_5 = arith.constant 0 : index
    %c0_6 = arith.constant 0 : index
    %c0_7 = arith.constant 0 : index
    %4 = vector.load %arg5[%c0_5, %c0_6, %c0_7] : memref<1x1x512xf32, #tpu.memory_space<vmem>>, vector<1x1x512xf32>
    %5 = vector.shape_cast %4 : vector<1x1x512xf32> to vector<1x512xf32>
    %c0_i32 = arith.constant 0 : i32
    %6 = arith.cmpi eq, %arg1, %c0_i32 : i32
    %7 = arith.extui %6 : i1 to i32
    %c0_i32_8 = arith.constant 0 : i32
    %8 = arith.cmpi ne, %7, %c0_i32_8 : i32
    scf.if %8 {
      %c0_186 = arith.constant 0 : index
      %c0_187 = arith.constant 0 : index
      %c0_188 = arith.constant 0 : index
      %331 = vector.load %arg2[%c0_186, %c0_187, %c0_188] : memref<1x64x128xf32, #tpu.memory_space<vmem>>, vector<1x64x128xf32>
      %332 = vector.shape_cast %331 : vector<1x64x128xf32> to vector<64x128xf32>
      %cst_189 = arith.constant dense<0.000000e+00> : vector<64x512xf32>
      %333 = tpu.matmul %332, %1, %cst_189 {dimension_numbers = #tpu.dot_dimension_numbers<[1], [0], [0], [1], [0, 0, 1, 1], [], []>} : vector<64x128xf32>, vector<128x512xf32>, vector<64x512xf32> -> vector<64x512xf32>
      %334 = vector.broadcast %5 : vector<1x512xf32> to vector<64x512xf32>
      %335 = arith.addf %333, %334 : vector<64x512xf32>
      %c0_190 = arith.constant 0 : index
      %c0_191 = arith.constant 0 : index
      %336 = vector.load %arg10[%c0_190, %c0_191] : memref<64x512xf32, #tpu.memory_space<vmem>>, vector<64x512xf32>
      tpu.vector_store %arg10[%c0_190, %c0_191], %335 {strides = array<i32>} : memref<64x512xf32, #tpu.memory_space<vmem>>, vector<64x512xf32>,
    } else {
    }
    %c0_i32_9 = arith.constant 0 : i32
    %9 = arith.cmpi sgt, %arg1, %c0_i32_9 : i32
    %10 = arith.extui %9 : i1 to i32
    %c0_i32_10 = arith.constant 0 : i32
    %11 = arith.cmpi ne, %10, %c0_i32_10 : i32
    scf.if %11 {
      %c0_186 = arith.constant 0 : index
      %c0_187 = arith.constant 0 : index
      %331 = vector.load %arg9[%c0_186, %c0_187] : memref<64x128xf32, #tpu.memory_space<vmem>>, vector<64x128xf32>
      %cst_188 = arith.constant dense<0.000000e+00> : vector<64x512xf32>
      %332 = tpu.matmul %331, %1, %cst_188 {dimension_numbers = #tpu.dot_dimension_numbers<[1], [0], [0], [1], [0, 0, 1, 1], [], []>} : vector<64x128xf32>, vector<128x512xf32>, vector<64x512xf32> -> vector<64x512xf32>
      %333 = vector.broadcast %5 : vector<1x512xf32> to vector<64x512xf32>
      %334 = arith.addf %332, %333 : vector<64x512xf32>
      %c0_189 = arith.constant 0 : index
      %c0_190 = arith.constant 0 : index
      %335 = vector.load %arg10[%c0_189, %c0_190] : memref<64x512xf32, #tpu.memory_space<vmem>>, vector<64x512xf32>
      tpu.vector_store %arg10[%c0_189, %c0_190], %334 {strides = array<i32>} : memref<64x512xf32, #tpu.memory_space<vmem>>, vector<64x512xf32>,
    } else {
    }
    %cst = arith.constant 0.000000e+00 : f32
    %12 = vector.broadcast %cst : f32 to vector<8x128xf32>
    %c0_11 = arith.constant 0 : index
    %c0_12 = arith.constant 0 : index
    %13 = vector.load %arg11[%c0_11, %c0_12] : memref<8x128xf32, #tpu.memory_space<vmem>>, vector<8x128xf32>
    tpu.vector_store %arg11[%c0_11, %c0_12], %12 {strides = array<i32>} : memref<8x128xf32, #tpu.memory_space<vmem>>, vector<8x128xf32>,
    %cst_13 = arith.constant 0.000000e+00 : f32
    %14 = vector.broadcast %cst_13 : f32 to vector<8x128xf32>
    %c0_14 = arith.constant 0 : index
    %c0_15 = arith.constant 0 : index
    %15 = vector.load %arg12[%c0_14, %c0_15] : memref<8x128xf32, #tpu.memory_space<vmem>>, vector<8x128xf32>
    tpu.vector_store %arg12[%c0_14, %c0_15], %14 {strides = array<i32>} : memref<8x128xf32, #tpu.memory_space<vmem>>, vector<8x128xf32>,
    %c0_16 = arith.constant 0 : index
    %c0_17 = arith.constant 0 : index
    %16 = vector.load %arg10[%c0_16, %c0_17] : memref<64x512xf32, #tpu.memory_space<vmem>>, vector<8x512xf32>
    %c0_18 = arith.constant 0 : index
    %c0_19 = arith.constant 0 : index
    %17 = vector.load %arg11[%c0_18, %c0_19] : memref<8x128xf32, #tpu.memory_space<vmem>>, vector<8x128xf32>
    %cst_20 = arith.constant dense<0.000000e+00> : vector<8x512xf32>
    %18 = tpu.matmul %17, %3, %cst_20 {dimension_numbers = #tpu.dot_dimension_numbers<[1], [0], [0], [1], [0, 0, 1, 1], [], []>} : vector<8x128xf32>, vector<128x512xf32>, vector<8x512xf32> -> vector<8x512xf32>
    %19 = arith.addf %16, %18 : vector<8x512xf32>
    %20 = vector.extract_strided_slice %19 {offsets = [0, 0], sizes = [8, 128], strides = [1, 1]} : vector<8x512xf32> to vector<8x128xf32>
    %cst_21 = arith.constant 5.000000e-01 : f32
    %21 = vector.broadcast %cst_21 : f32 to vector<8x128xf32>
    %22 = arith.mulf %21, %20 : vector<8x128xf32>
    %23 = math.tanh %22 : vector<8x128xf32>
    %cst_22 = arith.constant 5.000000e-01 : f32
    %24 = vector.broadcast %cst_22 : f32 to vector<8x128xf32>
    %25 = arith.mulf %24, %23 : vector<8x128xf32>
    %cst_23 = arith.constant 5.000000e-01 : f32
    %26 = vector.broadcast %cst_23 : f32 to vector<8x128xf32>
    %27 = arith.addf %25, %26 : vector<8x128xf32>
    %28 = vector.extract_strided_slice %19 {offsets = [0, 128], sizes = [8, 128], strides = [1, 1]} : vector<8x512xf32> to vector<8x128xf32>
    %cst_24 = arith.constant 5.000000e-01 : f32
    %29 = vector.broadcast %cst_24 : f32 to vector<8x128xf32>
    %30 = arith.mulf %29, %28 : vector<8x128xf32>
    %31 = math.tanh %30 : vector<8x128xf32>
    %cst_25 = arith.constant 5.000000e-01 : f32
    %32 = vector.broadcast %cst_25 : f32 to vector<8x128xf32>
    %33 = arith.mulf %32, %31 : vector<8x128xf32>
    %cst_26 = arith.constant 5.000000e-01 : f32
    %34 = vector.broadcast %cst_26 : f32 to vector<8x128xf32>
    %35 = arith.addf %33, %34 : vector<8x128xf32>
    %36 = vector.extract_strided_slice %19 {offsets = [0, 256], sizes = [8, 128], strides = [1, 1]} : vector<8x512xf32> to vector<8x128xf32>
    %37 = math.tanh %36 : vector<8x128xf32>
    %38 = vector.extract_strided_slice %19 {offsets = [0, 384], sizes = [8, 128], strides = [1, 1]} : vector<8x512xf32> to vector<8x128xf32>
    %cst_27 = arith.constant 5.000000e-01 : f32
    %39 = vector.broadcast %cst_27 : f32 to vector<8x128xf32>
    %40 = arith.mulf %39, %38 : vector<8x128xf32>
    %41 = math.tanh %40 : vector<8x128xf32>
    %cst_28 = arith.constant 5.000000e-01 : f32
    %42 = vector.broadcast %cst_28 : f32 to vector<8x128xf32>
    %43 = arith.mulf %42, %41 : vector<8x128xf32>
    %cst_29 = arith.constant 5.000000e-01 : f32
    %44 = vector.broadcast %cst_29 : f32 to vector<8x128xf32>
    %45 = arith.addf %43, %44 : vector<8x128xf32>
    %c0_30 = arith.constant 0 : index
    %c0_31 = arith.constant 0 : index
    %46 = vector.load %arg12[%c0_30, %c0_31] : memref<8x128xf32, #tpu.memory_space<vmem>>, vector<8x128xf32>
    %47 = arith.mulf %35, %46 : vector<8x128xf32>
    %48 = arith.mulf %27, %37 : vector<8x128xf32>
    %49 = arith.addf %47, %48 : vector<8x128xf32>
    %50 = math.tanh %49 : vector<8x128xf32>
    %51 = arith.mulf %45, %50 : vector<8x128xf32>
    %c0_32 = arith.constant 0 : index
    %c0_33 = arith.constant 0 : index
    %52 = vector.load %arg12[%c0_32, %c0_33] : memref<8x128xf32, #tpu.memory_space<vmem>>, vector<8x128xf32>
    tpu.vector_store %arg12[%c0_32, %c0_33], %49 {strides = array<i32>} : memref<8x128xf32, #tpu.memory_space<vmem>>, vector<8x128xf32>,
    %c0_34 = arith.constant 0 : index
    %c0_35 = arith.constant 0 : index
    %53 = vector.load %arg11[%c0_34, %c0_35] : memref<8x128xf32, #tpu.memory_space<vmem>>, vector<8x128xf32>
    tpu.vector_store %arg11[%c0_34, %c0_35], %51 {strides = array<i32>} : memref<8x128xf32, #tpu.memory_space<vmem>>, vector<8x128xf32>,
    %c0_36 = arith.constant 0 : index
    %c0_37 = arith.constant 0 : index
    %54 = vector.load %arg9[%c0_36, %c0_37] : memref<64x128xf32, #tpu.memory_space<vmem>>, vector<8x128xf32>
    tpu.vector_store %arg9[%c0_36, %c0_37], %51 {strides = array<i32>} : memref<64x128xf32, #tpu.memory_space<vmem>>, vector<8x128xf32>,
    %c8 = arith.constant 8 : index
    %c0_38 = arith.constant 0 : index
    %55 = vector.load %arg10[%c8, %c0_38] : memref<64x512xf32, #tpu.memory_space<vmem>>, vector<8x512xf32>
    %c0_39 = arith.constant 0 : index
    %c0_40 = arith.constant 0 : index
    %56 = vector.load %arg11[%c0_39, %c0_40] : memref<8x128xf32, #tpu.memory_space<vmem>>, vector<8x128xf32>
    %cst_41 = arith.constant dense<0.000000e+00> : vector<8x512xf32>
    %57 = tpu.matmul %56, %3, %cst_41 {dimension_numbers = #tpu.dot_dimension_numbers<[1], [0], [0], [1], [0, 0, 1, 1], [], []>} : vector<8x128xf32>, vector<128x512xf32>, vector<8x512xf32> -> vector<8x512xf32>
    %58 = arith.addf %55, %57 : vector<8x512xf32>
    %59 = vector.extract_strided_slice %58 {offsets = [0, 0], sizes = [8, 128], strides = [1, 1]} : vector<8x512xf32> to vector<8x128xf32>
    %cst_42 = arith.constant 5.000000e-01 : f32
    %60 = vector.broadcast %cst_42 : f32 to vector<8x128xf32>
    %61 = arith.mulf %60, %59 : vector<8x128xf32>
    %62 = math.tanh %61 : vector<8x128xf32>
    %cst_43 = arith.constant 5.000000e-01 : f32
    %63 = vector.broadcast %cst_43 : f32 to vector<8x128xf32>
    %64 = arith.mulf %63, %62 : vector<8x128xf32>
    %cst_44 = arith.constant 5.000000e-01 : f32
    %65 = vector.broadcast %cst_44 : f32 to vector<8x128xf32>
    %66 = arith.addf %64, %65 : vector<8x128xf32>
    %67 = vector.extract_strided_slice %58 {offsets = [0, 128], sizes = [8, 128], strides = [1, 1]} : vector<8x512xf32> to vector<8x128xf32>
    %cst_45 = arith.constant 5.000000e-01 : f32
    %68 = vector.broadcast %cst_45 : f32 to vector<8x128xf32>
    %69 = arith.mulf %68, %67 : vector<8x128xf32>
    %70 = math.tanh %69 : vector<8x128xf32>
    %cst_46 = arith.constant 5.000000e-01 : f32
    %71 = vector.broadcast %cst_46 : f32 to vector<8x128xf32>
    %72 = arith.mulf %71, %70 : vector<8x128xf32>
    %cst_47 = arith.constant 5.000000e-01 : f32
    %73 = vector.broadcast %cst_47 : f32 to vector<8x128xf32>
    %74 = arith.addf %72, %73 : vector<8x128xf32>
    %75 = vector.extract_strided_slice %58 {offsets = [0, 256], sizes = [8, 128], strides = [1, 1]} : vector<8x512xf32> to vector<8x128xf32>
    %76 = math.tanh %75 : vector<8x128xf32>
    %77 = vector.extract_strided_slice %58 {offsets = [0, 384], sizes = [8, 128], strides = [1, 1]} : vector<8x512xf32> to vector<8x128xf32>
    %cst_48 = arith.constant 5.000000e-01 : f32
    %78 = vector.broadcast %cst_48 : f32 to vector<8x128xf32>
    %79 = arith.mulf %78, %77 : vector<8x128xf32>
    %80 = math.tanh %79 : vector<8x128xf32>
    %cst_49 = arith.constant 5.000000e-01 : f32
    %81 = vector.broadcast %cst_49 : f32 to vector<8x128xf32>
    %82 = arith.mulf %81, %80 : vector<8x128xf32>
    %cst_50 = arith.constant 5.000000e-01 : f32
    %83 = vector.broadcast %cst_50 : f32 to vector<8x128xf32>
    %84 = arith.addf %82, %83 : vector<8x128xf32>
    %c0_51 = arith.constant 0 : index
    %c0_52 = arith.constant 0 : index
    %85 = vector.load %arg12[%c0_51, %c0_52] : memref<8x128xf32, #tpu.memory_space<vmem>>, vector<8x128xf32>
    %86 = arith.mulf %74, %85 : vector<8x128xf32>
    %87 = arith.mulf %66, %76 : vector<8x128xf32>
    %88 = arith.addf %86, %87 : vector<8x128xf32>
    %89 = math.tanh %88 : vector<8x128xf32>
    %90 = arith.mulf %84, %89 : vector<8x128xf32>
    %c0_53 = arith.constant 0 : index
    %c0_54 = arith.constant 0 : index
    %91 = vector.load %arg12[%c0_53, %c0_54] : memref<8x128xf32, #tpu.memory_space<vmem>>, vector<8x128xf32>
    tpu.vector_store %arg12[%c0_53, %c0_54], %88 {strides = array<i32>} : memref<8x128xf32, #tpu.memory_space<vmem>>, vector<8x128xf32>,
    %c0_55 = arith.constant 0 : index
    %c0_56 = arith.constant 0 : index
    %92 = vector.load %arg11[%c0_55, %c0_56] : memref<8x128xf32, #tpu.memory_space<vmem>>, vector<8x128xf32>
    tpu.vector_store %arg11[%c0_55, %c0_56], %90 {strides = array<i32>} : memref<8x128xf32, #tpu.memory_space<vmem>>, vector<8x128xf32>,
    %c8_57 = arith.constant 8 : index
    %c0_58 = arith.constant 0 : index
    %93 = vector.load %arg9[%c8_57, %c0_58] : memref<64x128xf32, #tpu.memory_space<vmem>>, vector<8x128xf32>
    tpu.vector_store %arg9[%c8_57, %c0_58], %90 {strides = array<i32>} : memref<64x128xf32, #tpu.memory_space<vmem>>, vector<8x128xf32>,
    %c16 = arith.constant 16 : index
    %c0_59 = arith.constant 0 : index
    %94 = vector.load %arg10[%c16, %c0_59] : memref<64x512xf32, #tpu.memory_space<vmem>>, vector<8x512xf32>
    %c0_60 = arith.constant 0 : index
    %c0_61 = arith.constant 0 : index
    %95 = vector.load %arg11[%c0_60, %c0_61] : memref<8x128xf32, #tpu.memory_space<vmem>>, vector<8x128xf32>
    %cst_62 = arith.constant dense<0.000000e+00> : vector<8x512xf32>
    %96 = tpu.matmul %95, %3, %cst_62 {dimension_numbers = #tpu.dot_dimension_numbers<[1], [0], [0], [1], [0, 0, 1, 1], [], []>} : vector<8x128xf32>, vector<128x512xf32>, vector<8x512xf32> -> vector<8x512xf32>
    %97 = arith.addf %94, %96 : vector<8x512xf32>
    %98 = vector.extract_strided_slice %97 {offsets = [0, 0], sizes = [8, 128], strides = [1, 1]} : vector<8x512xf32> to vector<8x128xf32>
    %cst_63 = arith.constant 5.000000e-01 : f32
    %99 = vector.broadcast %cst_63 : f32 to vector<8x128xf32>
    %100 = arith.mulf %99, %98 : vector<8x128xf32>
    %101 = math.tanh %100 : vector<8x128xf32>
    %cst_64 = arith.constant 5.000000e-01 : f32
    %102 = vector.broadcast %cst_64 : f32 to vector<8x128xf32>
    %103 = arith.mulf %102, %101 : vector<8x128xf32>
    %cst_65 = arith.constant 5.000000e-01 : f32
    %104 = vector.broadcast %cst_65 : f32 to vector<8x128xf32>
    %105 = arith.addf %103, %104 : vector<8x128xf32>
    %106 = vector.extract_strided_slice %97 {offsets = [0, 128], sizes = [8, 128], strides = [1, 1]} : vector<8x512xf32> to vector<8x128xf32>
    %cst_66 = arith.constant 5.000000e-01 : f32
    %107 = vector.broadcast %cst_66 : f32 to vector<8x128xf32>
    %108 = arith.mulf %107, %106 : vector<8x128xf32>
    %109 = math.tanh %108 : vector<8x128xf32>
    %cst_67 = arith.constant 5.000000e-01 : f32
    %110 = vector.broadcast %cst_67 : f32 to vector<8x128xf32>
    %111 = arith.mulf %110, %109 : vector<8x128xf32>
    %cst_68 = arith.constant 5.000000e-01 : f32
    %112 = vector.broadcast %cst_68 : f32 to vector<8x128xf32>
    %113 = arith.addf %111, %112 : vector<8x128xf32>
    %114 = vector.extract_strided_slice %97 {offsets = [0, 256], sizes = [8, 128], strides = [1, 1]} : vector<8x512xf32> to vector<8x128xf32>
    %115 = math.tanh %114 : vector<8x128xf32>
    %116 = vector.extract_strided_slice %97 {offsets = [0, 384], sizes = [8, 128], strides = [1, 1]} : vector<8x512xf32> to vector<8x128xf32>
    %cst_69 = arith.constant 5.000000e-01 : f32
    %117 = vector.broadcast %cst_69 : f32 to vector<8x128xf32>
    %118 = arith.mulf %117, %116 : vector<8x128xf32>
    %119 = math.tanh %118 : vector<8x128xf32>
    %cst_70 = arith.constant 5.000000e-01 : f32
    %120 = vector.broadcast %cst_70 : f32 to vector<8x128xf32>
    %121 = arith.mulf %120, %119 : vector<8x128xf32>
    %cst_71 = arith.constant 5.000000e-01 : f32
    %122 = vector.broadcast %cst_71 : f32 to vector<8x128xf32>
    %123 = arith.addf %121, %122 : vector<8x128xf32>
    %c0_72 = arith.constant 0 : index
    %c0_73 = arith.constant 0 : index
    %124 = vector.load %arg12[%c0_72, %c0_73] : memref<8x128xf32, #tpu.memory_space<vmem>>, vector<8x128xf32>
    %125 = arith.mulf %113, %124 : vector<8x128xf32>
    %126 = arith.mulf %105, %115 : vector<8x128xf32>
    %127 = arith.addf %125, %126 : vector<8x128xf32>
    %128 = math.tanh %127 : vector<8x128xf32>
    %129 = arith.mulf %123, %128 : vector<8x128xf32>
    %c0_74 = arith.constant 0 : index
    %c0_75 = arith.constant 0 : index
    %130 = vector.load %arg12[%c0_74, %c0_75] : memref<8x128xf32, #tpu.memory_space<vmem>>, vector<8x128xf32>
    tpu.vector_store %arg12[%c0_74, %c0_75], %127 {strides = array<i32>} : memref<8x128xf32, #tpu.memory_space<vmem>>, vector<8x128xf32>,
    %c0_76 = arith.constant 0 : index
    %c0_77 = arith.constant 0 : index
    %131 = vector.load %arg11[%c0_76, %c0_77] : memref<8x128xf32, #tpu.memory_space<vmem>>, vector<8x128xf32>
    tpu.vector_store %arg11[%c0_76, %c0_77], %129 {strides = array<i32>} : memref<8x128xf32, #tpu.memory_space<vmem>>, vector<8x128xf32>,
    %c16_78 = arith.constant 16 : index
    %c0_79 = arith.constant 0 : index
    %132 = vector.load %arg9[%c16_78, %c0_79] : memref<64x128xf32, #tpu.memory_space<vmem>>, vector<8x128xf32>
    tpu.vector_store %arg9[%c16_78, %c0_79], %129 {strides = array<i32>} : memref<64x128xf32, #tpu.memory_space<vmem>>, vector<8x128xf32>,
    %c24 = arith.constant 24 : index
    %c0_80 = arith.constant 0 : index
    %133 = vector.load %arg10[%c24, %c0_80] : memref<64x512xf32, #tpu.memory_space<vmem>>, vector<8x512xf32>
    %c0_81 = arith.constant 0 : index
    %c0_82 = arith.constant 0 : index
    %134 = vector.load %arg11[%c0_81, %c0_82] : memref<8x128xf32, #tpu.memory_space<vmem>>, vector<8x128xf32>
    %cst_83 = arith.constant dense<0.000000e+00> : vector<8x512xf32>
    %135 = tpu.matmul %134, %3, %cst_83 {dimension_numbers = #tpu.dot_dimension_numbers<[1], [0], [0], [1], [0, 0, 1, 1], [], []>} : vector<8x128xf32>, vector<128x512xf32>, vector<8x512xf32> -> vector<8x512xf32>
    %136 = arith.addf %133, %135 : vector<8x512xf32>
    %137 = vector.extract_strided_slice %136 {offsets = [0, 0], sizes = [8, 128], strides = [1, 1]} : vector<8x512xf32> to vector<8x128xf32>
    %cst_84 = arith.constant 5.000000e-01 : f32
    %138 = vector.broadcast %cst_84 : f32 to vector<8x128xf32>
    %139 = arith.mulf %138, %137 : vector<8x128xf32>
    %140 = math.tanh %139 : vector<8x128xf32>
    %cst_85 = arith.constant 5.000000e-01 : f32
    %141 = vector.broadcast %cst_85 : f32 to vector<8x128xf32>
    %142 = arith.mulf %141, %140 : vector<8x128xf32>
    %cst_86 = arith.constant 5.000000e-01 : f32
    %143 = vector.broadcast %cst_86 : f32 to vector<8x128xf32>
    %144 = arith.addf %142, %143 : vector<8x128xf32>
    %145 = vector.extract_strided_slice %136 {offsets = [0, 128], sizes = [8, 128], strides = [1, 1]} : vector<8x512xf32> to vector<8x128xf32>
    %cst_87 = arith.constant 5.000000e-01 : f32
    %146 = vector.broadcast %cst_87 : f32 to vector<8x128xf32>
    %147 = arith.mulf %146, %145 : vector<8x128xf32>
    %148 = math.tanh %147 : vector<8x128xf32>
    %cst_88 = arith.constant 5.000000e-01 : f32
    %149 = vector.broadcast %cst_88 : f32 to vector<8x128xf32>
    %150 = arith.mulf %149, %148 : vector<8x128xf32>
    %cst_89 = arith.constant 5.000000e-01 : f32
    %151 = vector.broadcast %cst_89 : f32 to vector<8x128xf32>
    %152 = arith.addf %150, %151 : vector<8x128xf32>
    %153 = vector.extract_strided_slice %136 {offsets = [0, 256], sizes = [8, 128], strides = [1, 1]} : vector<8x512xf32> to vector<8x128xf32>
    %154 = math.tanh %153 : vector<8x128xf32>
    %155 = vector.extract_strided_slice %136 {offsets = [0, 384], sizes = [8, 128], strides = [1, 1]} : vector<8x512xf32> to vector<8x128xf32>
    %cst_90 = arith.constant 5.000000e-01 : f32
    %156 = vector.broadcast %cst_90 : f32 to vector<8x128xf32>
    %157 = arith.mulf %156, %155 : vector<8x128xf32>
    %158 = math.tanh %157 : vector<8x128xf32>
    %cst_91 = arith.constant 5.000000e-01 : f32
    %159 = vector.broadcast %cst_91 : f32 to vector<8x128xf32>
    %160 = arith.mulf %159, %158 : vector<8x128xf32>
    %cst_92 = arith.constant 5.000000e-01 : f32
    %161 = vector.broadcast %cst_92 : f32 to vector<8x128xf32>
    %162 = arith.addf %160, %161 : vector<8x128xf32>
    %c0_93 = arith.constant 0 : index
    %c0_94 = arith.constant 0 : index
    %163 = vector.load %arg12[%c0_93, %c0_94] : memref<8x128xf32, #tpu.memory_space<vmem>>, vector<8x128xf32>
    %164 = arith.mulf %152, %163 : vector<8x128xf32>
    %165 = arith.mulf %144, %154 : vector<8x128xf32>
    %166 = arith.addf %164, %165 : vector<8x128xf32>
    %167 = math.tanh %166 : vector<8x128xf32>
    %168 = arith.mulf %162, %167 : vector<8x128xf32>
    %c0_95 = arith.constant 0 : index
    %c0_96 = arith.constant 0 : index
    %169 = vector.load %arg12[%c0_95, %c0_96] : memref<8x128xf32, #tpu.memory_space<vmem>>, vector<8x128xf32>
    tpu.vector_store %arg12[%c0_95, %c0_96], %166 {strides = array<i32>} : memref<8x128xf32, #tpu.memory_space<vmem>>, vector<8x128xf32>,
    %c0_97 = arith.constant 0 : index
    %c0_98 = arith.constant 0 : index
    %170 = vector.load %arg11[%c0_97, %c0_98] : memref<8x128xf32, #tpu.memory_space<vmem>>, vector<8x128xf32>
    tpu.vector_store %arg11[%c0_97, %c0_98], %168 {strides = array<i32>} : memref<8x128xf32, #tpu.memory_space<vmem>>, vector<8x128xf32>,
    %c24_99 = arith.constant 24 : index
    %c0_100 = arith.constant 0 : index
    %171 = vector.load %arg9[%c24_99, %c0_100] : memref<64x128xf32, #tpu.memory_space<vmem>>, vector<8x128xf32>
    tpu.vector_store %arg9[%c24_99, %c0_100], %168 {strides = array<i32>} : memref<64x128xf32, #tpu.memory_space<vmem>>, vector<8x128xf32>,
    %c32 = arith.constant 32 : index
    %c0_101 = arith.constant 0 : index
    %172 = vector.load %arg10[%c32, %c0_101] : memref<64x512xf32, #tpu.memory_space<vmem>>, vector<8x512xf32>
    %c0_102 = arith.constant 0 : index
    %c0_103 = arith.constant 0 : index
    %173 = vector.load %arg11[%c0_102, %c0_103] : memref<8x128xf32, #tpu.memory_space<vmem>>, vector<8x128xf32>
    %cst_104 = arith.constant dense<0.000000e+00> : vector<8x512xf32>
    %174 = tpu.matmul %173, %3, %cst_104 {dimension_numbers = #tpu.dot_dimension_numbers<[1], [0], [0], [1], [0, 0, 1, 1], [], []>} : vector<8x128xf32>, vector<128x512xf32>, vector<8x512xf32> -> vector<8x512xf32>
    %175 = arith.addf %172, %174 : vector<8x512xf32>
    %176 = vector.extract_strided_slice %175 {offsets = [0, 0], sizes = [8, 128], strides = [1, 1]} : vector<8x512xf32> to vector<8x128xf32>
    %cst_105 = arith.constant 5.000000e-01 : f32
    %177 = vector.broadcast %cst_105 : f32 to vector<8x128xf32>
    %178 = arith.mulf %177, %176 : vector<8x128xf32>
    %179 = math.tanh %178 : vector<8x128xf32>
    %cst_106 = arith.constant 5.000000e-01 : f32
    %180 = vector.broadcast %cst_106 : f32 to vector<8x128xf32>
    %181 = arith.mulf %180, %179 : vector<8x128xf32>
    %cst_107 = arith.constant 5.000000e-01 : f32
    %182 = vector.broadcast %cst_107 : f32 to vector<8x128xf32>
    %183 = arith.addf %181, %182 : vector<8x128xf32>
    %184 = vector.extract_strided_slice %175 {offsets = [0, 128], sizes = [8, 128], strides = [1, 1]} : vector<8x512xf32> to vector<8x128xf32>
    %cst_108 = arith.constant 5.000000e-01 : f32
    %185 = vector.broadcast %cst_108 : f32 to vector<8x128xf32>
    %186 = arith.mulf %185, %184 : vector<8x128xf32>
    %187 = math.tanh %186 : vector<8x128xf32>
    %cst_109 = arith.constant 5.000000e-01 : f32
    %188 = vector.broadcast %cst_109 : f32 to vector<8x128xf32>
    %189 = arith.mulf %188, %187 : vector<8x128xf32>
    %cst_110 = arith.constant 5.000000e-01 : f32
    %190 = vector.broadcast %cst_110 : f32 to vector<8x128xf32>
    %191 = arith.addf %189, %190 : vector<8x128xf32>
    %192 = vector.extract_strided_slice %175 {offsets = [0, 256], sizes = [8, 128], strides = [1, 1]} : vector<8x512xf32> to vector<8x128xf32>
    %193 = math.tanh %192 : vector<8x128xf32>
    %194 = vector.extract_strided_slice %175 {offsets = [0, 384], sizes = [8, 128], strides = [1, 1]} : vector<8x512xf32> to vector<8x128xf32>
    %cst_111 = arith.constant 5.000000e-01 : f32
    %195 = vector.broadcast %cst_111 : f32 to vector<8x128xf32>
    %196 = arith.mulf %195, %194 : vector<8x128xf32>
    %197 = math.tanh %196 : vector<8x128xf32>
    %cst_112 = arith.constant 5.000000e-01 : f32
    %198 = vector.broadcast %cst_112 : f32 to vector<8x128xf32>
    %199 = arith.mulf %198, %197 : vector<8x128xf32>
    %cst_113 = arith.constant 5.000000e-01 : f32
    %200 = vector.broadcast %cst_113 : f32 to vector<8x128xf32>
    %201 = arith.addf %199, %200 : vector<8x128xf32>
    %c0_114 = arith.constant 0 : index
    %c0_115 = arith.constant 0 : index
    %202 = vector.load %arg12[%c0_114, %c0_115] : memref<8x128xf32, #tpu.memory_space<vmem>>, vector<8x128xf32>
    %203 = arith.mulf %191, %202 : vector<8x128xf32>
    %204 = arith.mulf %183, %193 : vector<8x128xf32>
    %205 = arith.addf %203, %204 : vector<8x128xf32>
    %206 = math.tanh %205 : vector<8x128xf32>
    %207 = arith.mulf %201, %206 : vector<8x128xf32>
    %c0_116 = arith.constant 0 : index
    %c0_117 = arith.constant 0 : index
    %208 = vector.load %arg12[%c0_116, %c0_117] : memref<8x128xf32, #tpu.memory_space<vmem>>, vector<8x128xf32>
    tpu.vector_store %arg12[%c0_116, %c0_117], %205 {strides = array<i32>} : memref<8x128xf32, #tpu.memory_space<vmem>>, vector<8x128xf32>,
    %c0_118 = arith.constant 0 : index
    %c0_119 = arith.constant 0 : index
    %209 = vector.load %arg11[%c0_118, %c0_119] : memref<8x128xf32, #tpu.memory_space<vmem>>, vector<8x128xf32>
    tpu.vector_store %arg11[%c0_118, %c0_119], %207 {strides = array<i32>} : memref<8x128xf32, #tpu.memory_space<vmem>>, vector<8x128xf32>,
    %c32_120 = arith.constant 32 : index
    %c0_121 = arith.constant 0 : index
    %210 = vector.load %arg9[%c32_120, %c0_121] : memref<64x128xf32, #tpu.memory_space<vmem>>, vector<8x128xf32>
    tpu.vector_store %arg9[%c32_120, %c0_121], %207 {strides = array<i32>} : memref<64x128xf32, #tpu.memory_space<vmem>>, vector<8x128xf32>,
    %c40 = arith.constant 40 : index
    %c0_122 = arith.constant 0 : index
    %211 = vector.load %arg10[%c40, %c0_122] : memref<64x512xf32, #tpu.memory_space<vmem>>, vector<8x512xf32>
    %c0_123 = arith.constant 0 : index
    %c0_124 = arith.constant 0 : index
    %212 = vector.load %arg11[%c0_123, %c0_124] : memref<8x128xf32, #tpu.memory_space<vmem>>, vector<8x128xf32>
    %cst_125 = arith.constant dense<0.000000e+00> : vector<8x512xf32>
    %213 = tpu.matmul %212, %3, %cst_125 {dimension_numbers = #tpu.dot_dimension_numbers<[1], [0], [0], [1], [0, 0, 1, 1], [], []>} : vector<8x128xf32>, vector<128x512xf32>, vector<8x512xf32> -> vector<8x512xf32>
    %214 = arith.addf %211, %213 : vector<8x512xf32>
    %215 = vector.extract_strided_slice %214 {offsets = [0, 0], sizes = [8, 128], strides = [1, 1]} : vector<8x512xf32> to vector<8x128xf32>
    %cst_126 = arith.constant 5.000000e-01 : f32
    %216 = vector.broadcast %cst_126 : f32 to vector<8x128xf32>
    %217 = arith.mulf %216, %215 : vector<8x128xf32>
    %218 = math.tanh %217 : vector<8x128xf32>
    %cst_127 = arith.constant 5.000000e-01 : f32
    %219 = vector.broadcast %cst_127 : f32 to vector<8x128xf32>
    %220 = arith.mulf %219, %218 : vector<8x128xf32>
    %cst_128 = arith.constant 5.000000e-01 : f32
    %221 = vector.broadcast %cst_128 : f32 to vector<8x128xf32>
    %222 = arith.addf %220, %221 : vector<8x128xf32>
    %223 = vector.extract_strided_slice %214 {offsets = [0, 128], sizes = [8, 128], strides = [1, 1]} : vector<8x512xf32> to vector<8x128xf32>
    %cst_129 = arith.constant 5.000000e-01 : f32
    %224 = vector.broadcast %cst_129 : f32 to vector<8x128xf32>
    %225 = arith.mulf %224, %223 : vector<8x128xf32>
    %226 = math.tanh %225 : vector<8x128xf32>
    %cst_130 = arith.constant 5.000000e-01 : f32
    %227 = vector.broadcast %cst_130 : f32 to vector<8x128xf32>
    %228 = arith.mulf %227, %226 : vector<8x128xf32>
    %cst_131 = arith.constant 5.000000e-01 : f32
    %229 = vector.broadcast %cst_131 : f32 to vector<8x128xf32>
    %230 = arith.addf %228, %229 : vector<8x128xf32>
    %231 = vector.extract_strided_slice %214 {offsets = [0, 256], sizes = [8, 128], strides = [1, 1]} : vector<8x512xf32> to vector<8x128xf32>
    %232 = math.tanh %231 : vector<8x128xf32>
    %233 = vector.extract_strided_slice %214 {offsets = [0, 384], sizes = [8, 128], strides = [1, 1]} : vector<8x512xf32> to vector<8x128xf32>
    %cst_132 = arith.constant 5.000000e-01 : f32
    %234 = vector.broadcast %cst_132 : f32 to vector<8x128xf32>
    %235 = arith.mulf %234, %233 : vector<8x128xf32>
    %236 = math.tanh %235 : vector<8x128xf32>
    %cst_133 = arith.constant 5.000000e-01 : f32
    %237 = vector.broadcast %cst_133 : f32 to vector<8x128xf32>
    %238 = arith.mulf %237, %236 : vector<8x128xf32>
    %cst_134 = arith.constant 5.000000e-01 : f32
    %239 = vector.broadcast %cst_134 : f32 to vector<8x128xf32>
    %240 = arith.addf %238, %239 : vector<8x128xf32>
    %c0_135 = arith.constant 0 : index
    %c0_136 = arith.constant 0 : index
    %241 = vector.load %arg12[%c0_135, %c0_136] : memref<8x128xf32, #tpu.memory_space<vmem>>, vector<8x128xf32>
    %242 = arith.mulf %230, %241 : vector<8x128xf32>
    %243 = arith.mulf %222, %232 : vector<8x128xf32>
    %244 = arith.addf %242, %243 : vector<8x128xf32>
    %245 = math.tanh %244 : vector<8x128xf32>
    %246 = arith.mulf %240, %245 : vector<8x128xf32>
    %c0_137 = arith.constant 0 : index
    %c0_138 = arith.constant 0 : index
    %247 = vector.load %arg12[%c0_137, %c0_138] : memref<8x128xf32, #tpu.memory_space<vmem>>, vector<8x128xf32>
    tpu.vector_store %arg12[%c0_137, %c0_138], %244 {strides = array<i32>} : memref<8x128xf32, #tpu.memory_space<vmem>>, vector<8x128xf32>,
    %c0_139 = arith.constant 0 : index
    %c0_140 = arith.constant 0 : index
    %248 = vector.load %arg11[%c0_139, %c0_140] : memref<8x128xf32, #tpu.memory_space<vmem>>, vector<8x128xf32>
    tpu.vector_store %arg11[%c0_139, %c0_140], %246 {strides = array<i32>} : memref<8x128xf32, #tpu.memory_space<vmem>>, vector<8x128xf32>,
    %c40_141 = arith.constant 40 : index
    %c0_142 = arith.constant 0 : index
    %249 = vector.load %arg9[%c40_141, %c0_142] : memref<64x128xf32, #tpu.memory_space<vmem>>, vector<8x128xf32>
    tpu.vector_store %arg9[%c40_141, %c0_142], %246 {strides = array<i32>} : memref<64x128xf32, #tpu.memory_space<vmem>>, vector<8x128xf32>,
    %c48 = arith.constant 48 : index
    %c0_143 = arith.constant 0 : index
    %250 = vector.load %arg10[%c48, %c0_143] : memref<64x512xf32, #tpu.memory_space<vmem>>, vector<8x512xf32>
    %c0_144 = arith.constant 0 : index
    %c0_145 = arith.constant 0 : index
    %251 = vector.load %arg11[%c0_144, %c0_145] : memref<8x128xf32, #tpu.memory_space<vmem>>, vector<8x128xf32>
    %cst_146 = arith.constant dense<0.000000e+00> : vector<8x512xf32>
    %252 = tpu.matmul %251, %3, %cst_146 {dimension_numbers = #tpu.dot_dimension_numbers<[1], [0], [0], [1], [0, 0, 1, 1], [], []>} : vector<8x128xf32>, vector<128x512xf32>, vector<8x512xf32> -> vector<8x512xf32>
    %253 = arith.addf %250, %252 : vector<8x512xf32>
    %254 = vector.extract_strided_slice %253 {offsets = [0, 0], sizes = [8, 128], strides = [1, 1]} : vector<8x512xf32> to vector<8x128xf32>
    %cst_147 = arith.constant 5.000000e-01 : f32
    %255 = vector.broadcast %cst_147 : f32 to vector<8x128xf32>
    %256 = arith.mulf %255, %254 : vector<8x128xf32>
    %257 = math.tanh %256 : vector<8x128xf32>
    %cst_148 = arith.constant 5.000000e-01 : f32
    %258 = vector.broadcast %cst_148 : f32 to vector<8x128xf32>
    %259 = arith.mulf %258, %257 : vector<8x128xf32>
    %cst_149 = arith.constant 5.000000e-01 : f32
    %260 = vector.broadcast %cst_149 : f32 to vector<8x128xf32>
    %261 = arith.addf %259, %260 : vector<8x128xf32>
    %262 = vector.extract_strided_slice %253 {offsets = [0, 128], sizes = [8, 128], strides = [1, 1]} : vector<8x512xf32> to vector<8x128xf32>
    %cst_150 = arith.constant 5.000000e-01 : f32
    %263 = vector.broadcast %cst_150 : f32 to vector<8x128xf32>
    %264 = arith.mulf %263, %262 : vector<8x128xf32>
    %265 = math.tanh %264 : vector<8x128xf32>
    %cst_151 = arith.constant 5.000000e-01 : f32
    %266 = vector.broadcast %cst_151 : f32 to vector<8x128xf32>
    %267 = arith.mulf %266, %265 : vector<8x128xf32>
    %cst_152 = arith.constant 5.000000e-01 : f32
    %268 = vector.broadcast %cst_152 : f32 to vector<8x128xf32>
    %269 = arith.addf %267, %268 : vector<8x128xf32>
    %270 = vector.extract_strided_slice %253 {offsets = [0, 256], sizes = [8, 128], strides = [1, 1]} : vector<8x512xf32> to vector<8x128xf32>
    %271 = math.tanh %270 : vector<8x128xf32>
    %272 = vector.extract_strided_slice %253 {offsets = [0, 384], sizes = [8, 128], strides = [1, 1]} : vector<8x512xf32> to vector<8x128xf32>
    %cst_153 = arith.constant 5.000000e-01 : f32
    %273 = vector.broadcast %cst_153 : f32 to vector<8x128xf32>
    %274 = arith.mulf %273, %272 : vector<8x128xf32>
    %275 = math.tanh %274 : vector<8x128xf32>
    %cst_154 = arith.constant 5.000000e-01 : f32
    %276 = vector.broadcast %cst_154 : f32 to vector<8x128xf32>
    %277 = arith.mulf %276, %275 : vector<8x128xf32>
    %cst_155 = arith.constant 5.000000e-01 : f32
    %278 = vector.broadcast %cst_155 : f32 to vector<8x128xf32>
    %279 = arith.addf %277, %278 : vector<8x128xf32>
    %c0_156 = arith.constant 0 : index
    %c0_157 = arith.constant 0 : index
    %280 = vector.load %arg12[%c0_156, %c0_157] : memref<8x128xf32, #tpu.memory_space<vmem>>, vector<8x128xf32>
    %281 = arith.mulf %269, %280 : vector<8x128xf32>
    %282 = arith.mulf %261, %271 : vector<8x128xf32>
    %283 = arith.addf %281, %282 : vector<8x128xf32>
    %284 = math.tanh %283 : vector<8x128xf32>
    %285 = arith.mulf %279, %284 : vector<8x128xf32>
    %c0_158 = arith.constant 0 : index
    %c0_159 = arith.constant 0 : index
    %286 = vector.load %arg12[%c0_158, %c0_159] : memref<8x128xf32, #tpu.memory_space<vmem>>, vector<8x128xf32>
    tpu.vector_store %arg12[%c0_158, %c0_159], %283 {strides = array<i32>} : memref<8x128xf32, #tpu.memory_space<vmem>>, vector<8x128xf32>,
    %c0_160 = arith.constant 0 : index
    %c0_161 = arith.constant 0 : index
    %287 = vector.load %arg11[%c0_160, %c0_161] : memref<8x128xf32, #tpu.memory_space<vmem>>, vector<8x128xf32>
    tpu.vector_store %arg11[%c0_160, %c0_161], %285 {strides = array<i32>} : memref<8x128xf32, #tpu.memory_space<vmem>>, vector<8x128xf32>,
    %c48_162 = arith.constant 48 : index
    %c0_163 = arith.constant 0 : index
    %288 = vector.load %arg9[%c48_162, %c0_163] : memref<64x128xf32, #tpu.memory_space<vmem>>, vector<8x128xf32>
    tpu.vector_store %arg9[%c48_162, %c0_163], %285 {strides = array<i32>} : memref<64x128xf32, #tpu.memory_space<vmem>>, vector<8x128xf32>,
    %c56 = arith.constant 56 : index
    %c0_164 = arith.constant 0 : index
    %289 = vector.load %arg10[%c56, %c0_164] : memref<64x512xf32, #tpu.memory_space<vmem>>, vector<8x512xf32>
    %c0_165 = arith.constant 0 : index
    %c0_166 = arith.constant 0 : index
    %290 = vector.load %arg11[%c0_165, %c0_166] : memref<8x128xf32, #tpu.memory_space<vmem>>, vector<8x128xf32>
    %cst_167 = arith.constant dense<0.000000e+00> : vector<8x512xf32>
    %291 = tpu.matmul %290, %3, %cst_167 {dimension_numbers = #tpu.dot_dimension_numbers<[1], [0], [0], [1], [0, 0, 1, 1], [], []>} : vector<8x128xf32>, vector<128x512xf32>, vector<8x512xf32> -> vector<8x512xf32>
    %292 = arith.addf %289, %291 : vector<8x512xf32>
    %293 = vector.extract_strided_slice %292 {offsets = [0, 0], sizes = [8, 128], strides = [1, 1]} : vector<8x512xf32> to vector<8x128xf32>
    %cst_168 = arith.constant 5.000000e-01 : f32
    %294 = vector.broadcast %cst_168 : f32 to vector<8x128xf32>
    %295 = arith.mulf %294, %293 : vector<8x128xf32>
    %296 = math.tanh %295 : vector<8x128xf32>
    %cst_169 = arith.constant 5.000000e-01 : f32
    %297 = vector.broadcast %cst_169 : f32 to vector<8x128xf32>
    %298 = arith.mulf %297, %296 : vector<8x128xf32>
    %cst_170 = arith.constant 5.000000e-01 : f32
    %299 = vector.broadcast %cst_170 : f32 to vector<8x128xf32>
    %300 = arith.addf %298, %299 : vector<8x128xf32>
    %301 = vector.extract_strided_slice %292 {offsets = [0, 128], sizes = [8, 128], strides = [1, 1]} : vector<8x512xf32> to vector<8x128xf32>
    %cst_171 = arith.constant 5.000000e-01 : f32
    %302 = vector.broadcast %cst_171 : f32 to vector<8x128xf32>
    %303 = arith.mulf %302, %301 : vector<8x128xf32>
    %304 = math.tanh %303 : vector<8x128xf32>
    %cst_172 = arith.constant 5.000000e-01 : f32
    %305 = vector.broadcast %cst_172 : f32 to vector<8x128xf32>
    %306 = arith.mulf %305, %304 : vector<8x128xf32>
    %cst_173 = arith.constant 5.000000e-01 : f32
    %307 = vector.broadcast %cst_173 : f32 to vector<8x128xf32>
    %308 = arith.addf %306, %307 : vector<8x128xf32>
    %309 = vector.extract_strided_slice %292 {offsets = [0, 256], sizes = [8, 128], strides = [1, 1]} : vector<8x512xf32> to vector<8x128xf32>
    %310 = math.tanh %309 : vector<8x128xf32>
    %311 = vector.extract_strided_slice %292 {offsets = [0, 384], sizes = [8, 128], strides = [1, 1]} : vector<8x512xf32> to vector<8x128xf32>
    %cst_174 = arith.constant 5.000000e-01 : f32
    %312 = vector.broadcast %cst_174 : f32 to vector<8x128xf32>
    %313 = arith.mulf %312, %311 : vector<8x128xf32>
    %314 = math.tanh %313 : vector<8x128xf32>
    %cst_175 = arith.constant 5.000000e-01 : f32
    %315 = vector.broadcast %cst_175 : f32 to vector<8x128xf32>
    %316 = arith.mulf %315, %314 : vector<8x128xf32>
    %cst_176 = arith.constant 5.000000e-01 : f32
    %317 = vector.broadcast %cst_176 : f32 to vector<8x128xf32>
    %318 = arith.addf %316, %317 : vector<8x128xf32>
    %c0_177 = arith.constant 0 : index
    %c0_178 = arith.constant 0 : index
    %319 = vector.load %arg12[%c0_177, %c0_178] : memref<8x128xf32, #tpu.memory_space<vmem>>, vector<8x128xf32>
    %320 = arith.mulf %308, %319 : vector<8x128xf32>
    %321 = arith.mulf %300, %310 : vector<8x128xf32>
    %322 = arith.addf %320, %321 : vector<8x128xf32>
    %323 = math.tanh %322 : vector<8x128xf32>
    %324 = arith.mulf %318, %323 : vector<8x128xf32>
    %c0_179 = arith.constant 0 : index
    %c0_180 = arith.constant 0 : index
    %325 = vector.load %arg12[%c0_179, %c0_180] : memref<8x128xf32, #tpu.memory_space<vmem>>, vector<8x128xf32>
    tpu.vector_store %arg12[%c0_179, %c0_180], %322 {strides = array<i32>} : memref<8x128xf32, #tpu.memory_space<vmem>>, vector<8x128xf32>,
    %c0_181 = arith.constant 0 : index
    %c0_182 = arith.constant 0 : index
    %326 = vector.load %arg11[%c0_181, %c0_182] : memref<8x128xf32, #tpu.memory_space<vmem>>, vector<8x128xf32>
    tpu.vector_store %arg11[%c0_181, %c0_182], %324 {strides = array<i32>} : memref<8x128xf32, #tpu.memory_space<vmem>>, vector<8x128xf32>,
    %c56_183 = arith.constant 56 : index
    %c0_184 = arith.constant 0 : index
    %327 = vector.load %arg9[%c56_183, %c0_184] : memref<64x128xf32, #tpu.memory_space<vmem>>, vector<8x128xf32>
    tpu.vector_store %arg9[%c56_183, %c0_184], %324 {strides = array<i32>} : memref<64x128xf32, #tpu.memory_space<vmem>>, vector<8x128xf32>,
    %c1_i32 = arith.constant 1 : i32
    %328 = arith.cmpi eq, %arg1, %c1_i32 : i32
    %329 = arith.extui %328 : i1 to i32
    %c0_i32_185 = arith.constant 0 : i32
    %330 = arith.cmpi ne, %329, %c0_i32_185 : i32
    scf.if %330 {
      %c0_186 = arith.constant 0 : index
      %c0_187 = arith.constant 0 : index
      %331 = vector.load %arg9[%c0_186, %c0_187] : memref<64x128xf32, #tpu.memory_space<vmem>>, vector<64x128xf32>
      %c0_188 = arith.constant 0 : index
      %c0_189 = arith.constant 0 : index
      %332 = vector.load %arg6[%c0_188, %c0_189] : memref<128x128xf32, #tpu.memory_space<vmem>>, vector<128x128xf32>
      %cst_190 = arith.constant dense<0.000000e+00> : vector<64x128xf32>
      %333 = tpu.matmul %331, %332, %cst_190 {dimension_numbers = #tpu.dot_dimension_numbers<[1], [0], [0], [1], [0, 0, 1, 1], [], []>} : vector<64x128xf32>, vector<128x128xf32>, vector<64x128xf32> -> vector<64x128xf32>
      %c0_191 = arith.constant 0 : index
      %c0_192 = arith.constant 0 : index
      %334 = vector.load %arg7[%c0_191, %c0_192] : memref<1x128xf32, #tpu.memory_space<vmem>>, vector<1x128xf32>
      %335 = vector.broadcast %334 : vector<1x128xf32> to vector<64x128xf32>
      %336 = arith.addf %333, %335 : vector<64x128xf32>
      %c0_193 = arith.constant 0 : index
      %c0_194 = arith.constant 0 : index
      %c0_195 = arith.constant 0 : index
      %337 = vector.load %arg8[%c0_193, %c0_194, %c0_195] : memref<1x64x128xf32, #tpu.memory_space<vmem>>, vector<1x64x128xf32>
      %338 = vector.shape_cast %337 : vector<1x64x128xf32> to vector<64x128xf32>
      %339 = vector.shape_cast %336 : vector<64x128xf32> to vector<1x64x128xf32>
      tpu.vector_store %arg8[%c0_193, %c0_194, %c0_195], %339 {strides = array<i32>} : memref<1x64x128xf32, #tpu.memory_space<vmem>>, vector<1x64x128xf32>,
    } else {
    }
    return
  }
  func.func @transform_0(%arg0: i32, %arg1: i32) -> (i32, i32, i32) {
    %c0_i32 = arith.constant 0 : i32
    %c0_i32_0 = arith.constant 0 : i32
    %c0_i32_1 = arith.constant 0 : i32
    return %arg0, %c0_i32, %c0_i32_0 : i32, i32, i32
  }
  func.func @transform_1(%arg0: i32, %arg1: i32) -> (i32, i32, i32) {
    %c0_i32 = arith.constant 0 : i32
    %c0_i32_0 = arith.constant 0 : i32
    %c0_i32_1 = arith.constant 0 : i32
    return %arg1, %c0_i32, %c0_i32_0 : i32, i32, i32
  }
  func.func @transform_2(%arg0: i32, %arg1: i32) -> (i32, i32, i32) {
    %c0_i32 = arith.constant 0 : i32
    %c0_i32_0 = arith.constant 0 : i32
    %c0_i32_1 = arith.constant 0 : i32
    return %arg1, %c0_i32, %c0_i32_0 : i32, i32, i32
  }
  func.func @transform_3(%arg0: i32, %arg1: i32) -> (i32, i32, i32) {
    %c0_i32 = arith.constant 0 : i32
    %c0_i32_0 = arith.constant 0 : i32
    %c0_i32_1 = arith.constant 0 : i32
    return %arg1, %c0_i32, %c0_i32_0 : i32, i32, i32
  }
  func.func @transform_4(%arg0: i32, %arg1: i32) -> (i32, i32) {
    %c0_i32 = arith.constant 0 : i32
    %c0_i32_0 = arith.constant 0 : i32
    %c0_i32_1 = arith.constant 0 : i32
    return %c0_i32, %c0_i32_0 : i32, i32
  }
  func.func @transform_5(%arg0: i32, %arg1: i32) -> (i32, i32) {
    %c0_i32 = arith.constant 0 : i32
    %c0_i32_0 = arith.constant 0 : i32
    %c0_i32_1 = arith.constant 0 : i32
    return %c0_i32, %c0_i32_0 : i32, i32
  }
  func.func @transform_6(%arg0: i32, %arg1: i32) -> (i32, i32, i32) {
    %c0_i32 = arith.constant 0 : i32
    %c0_i32_0 = arith.constant 0 : i32
    %c0_i32_1 = arith.constant 0 : i32
    return %arg0, %c0_i32, %c0_i32_0 : i32, i32, i32
  }
}

</mosaic_0001>

<bundles_post_ra>
// kernel: lstmnn_forward.1
= control target key start
LH: loop header
LB: loop body
LE: loop exit
PB: predicated region body
PF: predicated region fallthrough
CT: control target
= control target key end

     0   :  { %11 = vsyncpa [#allocation7], 0  ;;  %s5160_s0 = inlined_call_operand.vmem [shape: f32[1,64,128], index: 0, kind: input, shape index: {}]   ;;  %s5161_s1 = inlined_call_operand.hbm [shape: f32[2,128,512], index: 1, kind: input, shape index: {}]   ;;  %s5162_s2 = inlined_call_operand.hbm [shape: f32[2,128,512], index: 2, kind: input, shape index: {}]   ;;  %s5163_s3 = inlined_call_operand.vmem [shape: f32[2,1,512], index: 3, kind: input, shape index: {}]   ;;  %s5164_s4 = inlined_call_operand.vmem [shape: f32[128,128], index: 4, kind: input, shape index: {}]   ;;  %s5165_s5 = inlined_call_operand.vmem [shape: f32[1,128], index: 5, kind: input, shape index: {}]   ;;  %s5166_s6 = inlined_call_operand.vmem [shape: f32[1,64,128], index: 6, kind: output, shape index: {}]  }
   0x1   :  { %13 = vsyncpa [#allocation7 + $0x1], 0 }
   0x2   :  { %14 = vsyncpa [#allocation9], 0 }
   0x3   :  { %16 = vsyncpa [#allocation9 + $0x1], 0  ;;  %s3810_s21 = smov 0   ;;  %s3812_s22 = smov 0  }
   0x4   :  { %s3814_s23 = smov 0   ;;  %s3816_s24 = smov 0  }
   0x5   :  { %s3818_s25 = smov 0   ;;  %s3820_s26 = smov 0  }
   0x6 LB: > { %s2728_s27 = sadd.s32 4294967295, %s3766_s26   ;;  %s31_s28 = sadd.s32 1, %s3762_s25  ;;  %s3766_s26 = sphi %s3820_s26, %s22_s26   ;;  %s3762_s25 = sphi %s3818_s25, %s5368_s25   ;;  %s3758_s24 = sphi %s3816_s24, %s5367_s24   ;;  %s3754_s23 = sphi %s3814_s23, %s5366_s23   ;;  %s3750_s22 = sphi %s3812_s22, %s5365_s22   ;;  %s3746_s21 = sphi %s3810_s21, %s5364_s21  }
   0x7   : > { %p32_p0 = scmp.ge.s32.totalorder %s31_s28, 2  ;;  %s67_s29 = sadd.s32 1, %s3754_s23 }
   0x8   : > { %p74_p1 = scmp.ne.s32.totalorder %s3754_s23, %s3750_s22  ;;  %p75_p2 = scmp.eq.s32.totalorder %s3766_s26, 0 }
   0x9   : > { %s5370_s28 = smov (%p32_p0, %s31_s28), 0  ;;  %p80_p4 = scmp.ne.s32.totalorder %s3750_s22, %s3746_s21 }
   0xa   : > { %p3846_p3 = por %p75_p2, %p74_p1  ;;  %s64_s7 = ssub.s32 %s3762_s25, %s5370_s28 }
   0xb   : > { %p81_p5 = scmp.eq.s32.totalorder %s2728_s27, 0  ;;  %p65_p6 = scmp.eq.s32.totalorder %s64_s7, 0 }
   0xc   : > { %p3518_p8 = scmp.lt.s32.totalorder %s3766_s26, 2  ;;  %s3862_s10 = sand.u32 1, %s3754_s23  }
   0xd   : > { %p3853_p7 = por %p81_p5, %p80_p4  ;;  %s2749_s11 = sshll.u32 %s3762_s25, 13 }
   0xe   : > { %s3859_s9 = scalar_select %p65_p6, %s3754_s23, %s67_s29  }
   0xf   : > { %s5180_s8 = scalar_select %p3853_p7, 1, 0 }
  0x10   : > { %s2732_s12 = sshll.u32 %s3862_s10, 9  ;;  %s3871_s15 = scalar_lea.hbm %s5161_s1, %s2749_s11 }
  0x11   : > { %s242_s16 = scalar_lea.vmem [#allocation6], %s2732_s12  ;;  %p3877_p9 = pnand %p3518_p8, %p3846_p3 }
  0x12   : > { %s249_s17 = sshll.u32 %s242_s16, 4  ;;  %s239_s19 = scalar_lea.sflag [#allocation7], %s3862_s10  ;;  %s3881_s17 = int_to_ptr.vmem [resolvable:$true] %s249_s17 }
  0x13   : > { %s3652_s20 = scalar_lea.hbm %s3871_s15, 8192  ;;  %p3654_p11 = pneg %p3877_p9 }
  0x14   : > { %p3653_p10 = scmp.ne.s32.totalorder %s3871_s15, %s3652_s20  ;;  %s3657_s29 = scalar_lea.hbm %s5161_s1, 16384 }
  0x15   : > { %p3658_p0 = scmp.lt.u32.totalorder %s3871_s15, %s5161_s1  ;;  %p3659_p1 = scmp.lt.u32.totalorder %s3657_s29, %s3652_s20 }
  0x16   : > { %p3655_p12 = pnand %p3654_p11, %p3653_p10  ;;  %p3661_p3 = scmp.lt.u32.totalorder %s3652_s20, %s3871_s15 }
  0x17   : > { %p3660_p2 = por %p3659_p1, %p3658_p0 }
  0x18   : > { %p3656_p13 = pneg %p3655_p12 }
  0x19   : > { %p3662_p4 = por %p3661_p3, %p3660_p2 }
  0x1b   : > { %p3663_p5 = pnand %p3662_p4, %p3656_p13 }
  0x1d   : > { %3666 = shalt.err (!%p3663_p5)
}
  0x1e   : > { %s3667_s13 = scalar_lea.vmem %s3881_s17, 8192  ;;  %s3768_s14 = smov [#allocation6]  }
  0x1f   : > { %p3668_p6 = scmp.ne.s32.totalorder %s3881_s17, %s3667_s13  ;;  %s3672_s16 = sshll.u32 %s3768_s14, 4  ;;  %s3673_s16 = int_to_ptr.vmem [resolvable:$false] %s3672_s16 }
  0x20   : > { %s3674_s21 = scalar_lea.vmem %s3673_s16, 16384  ;;  %p3675_p12 = scmp.lt.s32.totalorder %s3881_s17, %s3673_s16 }
  0x21   : > { %p3670_p8 = pnand %p3668_p6, %p3654_p11  ;;  %p3676_p0 = scmp.lt.s32.totalorder %s3674_s21, %s3667_s13 }
  0x23   : > { %p3671_p10 = pneg %p3670_p8  ;;  %p3677_p1 = por %p3676_p0, %p3675_p12 }
  0x25   : > { %p3678_p2 = pnand %p3677_p1, %p3671_p10 }
  0x27   : > { %3681 = shalt.err (!%p3678_p2)
}
  0x28   : > { %s3769_s20 = smov 512   ;;  %s3770_s27 = smov 32  }
  0x29   : > { %3514 = dma.hbm_to_vmem [thread:$0]  (!%p3877_p9), %s3871_s15, 8192, %s3881_s17, %s239_s19, %s3769_s20, %s3769_s20, %s3770_s27  }
  0x2a   : > { %p2738_p13 = scmp.ge.s32.totalorder %s3766_s26, 1  ;;  %p285_p3 = scmp.lt.s32.totalorder %s3766_s26, 3 }
  0x2b   : > { %s3925_s13 = scalar_lea.hbm %s5162_s2, %s2749_s11  ;;  %s263_s14 = scalar_lea.vmem [#allocation8], %s2732_s12 }
  0x2c   : > { %p3916_p4 = pnand %p2738_p13, %p285_p3  ;;  %s270_s16 = sshll.u32 %s263_s14, 4  ;;  %s3929_s16 = int_to_ptr.vmem [resolvable:$true] %s270_s16 }
  0x2d   : > { %s260_s15 = scalar_lea.sflag [#allocation9], %s3862_s10  ;;  %s3682_s17 = scalar_lea.hbm %s3925_s13, 8192 }
  0x2e   : > { %p3683_p5 = scmp.ne.s32.totalorder %s3925_s13, %s3682_s17  ;;  %s3687_s11 = scalar_lea.hbm %s5162_s2, 16384 }
  0x2f   : > { %p3688_p10 = scmp.lt.u32.totalorder %s3925_s13, %s5162_s2  ;;  %p3689_p12 = scmp.lt.u32.totalorder %s3687_s11, %s3682_s17 }
  0x30   : > { %p3685_p6 = pnand %p3683_p5, %p3654_p11  ;;  %p3691_p1 = scmp.lt.u32.totalorder %s3682_s17, %s3925_s13 }
  0x31   : > { %p3690_p0 = por %p3689_p12, %p3688_p10 }
  0x32   : > { %p3686_p8 = pneg %p3685_p6 }
  0x33   : > { %p3692_p2 = por %p3691_p1, %p3690_p0 }
  0x35   : > { %p3693_p13 = pnand %p3692_p2, %p3686_p8 }
  0x37   : > { %3696 = shalt.err (!%p3693_p13)
}
  0x38   : > { %s3697_s12 = scalar_lea.vmem %s3929_s16, 8192  ;;  %s3771_s14 = smov [#allocation8]  }
  0x39   : > { %p3698_p3 = scmp.ne.s32.totalorder %s3929_s16, %s3697_s12  ;;  %s3702_s19 = sshll.u32 %s3771_s14, 4  ;;  %s3703_s19 = int_to_ptr.vmem [resolvable:$false] %s3702_s19 }
  0x3a   : > { %s3704_s21 = scalar_lea.vmem %s3703_s19, 16384  ;;  %p3705_p7 = scmp.lt.s32.totalorder %s3929_s16, %s3703_s19 }
  0x3b   : > { %p3700_p5 = pnand %p3698_p3, %p3654_p11  ;;  %p3706_p10 = scmp.lt.s32.totalorder %s3704_s21, %s3697_s12 }
  0x3d   : > { %p3701_p6 = pneg %p3700_p5  ;;  %p3707_p12 = por %p3706_p10, %p3705_p7 }
  0x3f   : > { %p3708_p0 = pnand %p3707_p12, %p3701_p6 }
  0x41   : > { %3711 = shalt.err (!%p3708_p0)
}
  0x42   : > { %3517 = dma.hbm_to_vmem [thread:$0]  (!%p3877_p9), %s3925_s13, 8192, %s3929_s16, %s260_s15, %s3769_s20, %s3769_s20, %s3770_s27  }
  0x43   : > { %289 = sbr.rel (%p3916_p4) target bundleno = 2943 (0xb7f), region = 44 }
  0x4a   : > { %s291_s17 = sand.u32 1, %s3750_s22   ;;  %p5183_p7 = scmp.ne.s32.totalorder %s5180_s8, 0 }
  0x4b   : > { %s2739_s11 = sshll.u32 %s291_s17, 9  ;;  %s292_s30 = scalar_lea.sflag [#allocation7], %s291_s17 }
  0x4c   : > { %s3963_s7 = scalar_lea.vmem [#allocation6], %s2739_s11 }
  0x4d   : > { %3737 = dma.done.wait (%p5183_p7), %s292_s30, 8192  }
  0x4e   : > { %3739 = vsyncadd (%p5183_p7), %s292_s30, 4294959104  ;;  %s301_s10 = scalar_lea.sflag [#allocation9], %s291_s17  ;;  %s3969_s18 = scalar_lea.vmem [#allocation8], %s2739_s11 }
  0x4f   : > { %3741 = dma.done.wait (%p5183_p7), %s301_s10, 8192  }
  0x50   : > { %3743 = vsyncadd (%p5183_p7), %s301_s10, 4294959104  ;;  %v3976_v0 = vld [vmem:[%s3963_s7] sm:$0xff]  ;;  %v3979_v1 = vld [vmem:[%s3963_s7 + $0x8] sm:$0xff]  ;;  %p352_p9 = scmp.lt.s32.totalorder %s3758_s24, 1  ;;  %p2742_p11 = scmp.ne.s32.totalorder %s3758_s24, 0 }
  0x51   : > { %v3982_v2 = vld [vmem:[%s3963_s7 + $0x10] sm:$0xff]  ;;  %v3985_v3 = vld [vmem:[%s3963_s7 + $0x18] sm:$0xff]  ;;  %v3988_v4 = vld [vmem:[%s3963_s7 + $0x20] sm:$0xff] }
  0x52   : > { %v3991_v5 = vld [vmem:[%s3963_s7 + $0x28] sm:$0xff]  ;;  %v3994_v6 = vld [vmem:[%s3963_s7 + $0x30] sm:$0xff]  ;;  %v3997_v7 = vld [vmem:[%s3963_s7 + $0x38] sm:$0xff]  ;;  %s353_s8 = scalar_select %p352_p9, %s3758_s24, 1 }
  0x53   : > { %v4000_v8 = vld [vmem:[%s3963_s7 + $0x40] sm:$0xff]  ;;  %v4003_v9 = vld [vmem:[%s3963_s7 + $0x48] sm:$0xff]  ;;  %v4006_v10 = vld [vmem:[%s3963_s7 + $0x50] sm:$0xff] }
  0x54   : > { %v4009_v11 = vld [vmem:[%s3963_s7 + $0x58] sm:$0xff]  ;;  %v4012_v12 = vld [vmem:[%s3963_s7 + $0x60] sm:$0xff]  ;;  %v4015_v13 = vld [vmem:[%s3963_s7 + $0x68] sm:$0xff]  ;;  %s2741_s20 = sshll.u32 %s353_s8, 2 }
  0x55   : > { %5184 = vst [vmem:[#allocation12_spill] sm:$0xff] %v4015_v13  ;;  %v4018_v14 = vld [vmem:[%s3963_s7 + $0x70] sm:$0xff]  ;;  %v4021_v15 = vld [vmem:[%s3963_s7 + $0x78] sm:$0xff]  ;;  %v4024_v16 = vld [vmem:[%s3963_s7 + $0x80] sm:$0xff]  ;;  %s355_s13 = scalar_lea.vmem %s5163_s3, %s2741_s20 }
  0x56   : > { %v4027_v17 = vld [vmem:[%s3963_s7 + $0x88] sm:$0xff]  ;;  %v4030_v18 = vld [vmem:[%s3963_s7 + $0x90] sm:$0xff]  ;;  %v4033_v19 = vld [vmem:[%s3963_s7 + $0x98] sm:$0xff] }
  0x57   : > { %v4036_v20 = vld [vmem:[%s3963_s7 + $0xa0] sm:$0xff]  ;;  %v4039_v21 = vld [vmem:[%s3963_s7 + $0xa8] sm:$0xff]  ;;  %v4042_v22 = vld [vmem:[%s3963_s7 + $0xb0] sm:$0xff] }
  0x58   : > { %v4045_v23 = vld [vmem:[%s3963_s7 + $0xb8] sm:$0xff]  ;;  %v4048_v24 = vld [vmem:[%s3963_s7 + $0xc0] sm:$0xff]  ;;  %v4051_v25 = vld [vmem:[%s3963_s7 + $0xc8] sm:$0xff] }
  0x59   : > { %v4054_v26 = vld [vmem:[%s3963_s7 + $0xd0] sm:$0xff]  ;;  %v4057_v27 = vld [vmem:[%s3963_s7 + $0xd8] sm:$0xff]  ;;  %v4060_v28 = vld [vmem:[%s3963_s7 + $0xe0] sm:$0xff] }
  0x5a   : > { %v4063_v29 = vld [vmem:[%s3963_s7 + $0xe8] sm:$0xff]  ;;  %v4066_v30 = vld [vmem:[%s3963_s7 + $0xf0] sm:$0xff]  ;;  %v4069_v31 = vld [vmem:[%s3963_s7 + $0xf8] sm:$0xff] }
  0x5b   : > { %v4072_v32 = vld [vmem:[%s3963_s7 + $0x100] sm:$0xff]  ;;  %v4075_v33 = vld [vmem:[%s3963_s7 + $0x108] sm:$0xff]  ;;  %v4078_v34 = vld [vmem:[%s3963_s7 + $0x110] sm:$0xff] }
  0x5c   : > { %v4081_v35 = vld [vmem:[%s3963_s7 + $0x118] sm:$0xff]  ;;  %v4084_v36 = vld [vmem:[%s3963_s7 + $0x120] sm:$0xff]  ;;  %v4087_v37 = vld [vmem:[%s3963_s7 + $0x128] sm:$0xff] }
  0x5d   : > { %v4090_v38 = vld [vmem:[%s3963_s7 + $0x130] sm:$0xff]  ;;  %v4093_v39 = vld [vmem:[%s3963_s7 + $0x138] sm:$0xff]  ;;  %v4096_v40 = vld [vmem:[%s3963_s7 + $0x140] sm:$0xff] }
  0x5e   : > { %5185 = vst [vmem:[#allocation13_spill] sm:$0xff] %v4096_v40  ;;  %v4099_v41 = vld [vmem:[%s3963_s7 + $0x148] sm:$0xff]  ;;  %v4102_v42 = vld [vmem:[%s3963_s7 + $0x150] sm:$0xff]  ;;  %v4105_v43 = vld [vmem:[%s3963_s7 + $0x158] sm:$0xff] }
  0x5f   : > { %5186 = vst [vmem:[#allocation14_spill] sm:$0xff] %v4102_v42  ;;  %v4108_v44 = vld [vmem:[%s3963_s7 + $0x160] sm:$0xff]  ;;  %v4111_v45 = vld [vmem:[%s3963_s7 + $0x168] sm:$0xff]  ;;  %v4114_v46 = vld [vmem:[%s3963_s7 + $0x170] sm:$0xff] }
  0x60   : > { %5187 = vst [vmem:[#allocation15_spill] sm:$0xff] %v4108_v44  ;;  %5188 = vst [vmem:[#allocation16_spill] sm:$0xff] %v4114_v46  ;;  %v4117_v47 = vld [vmem:[%s3963_s7 + $0x178] sm:$0xff]  ;;  %v4120_v48 = vld [vmem:[%s3963_s7 + $0x180] sm:$0xff] }
  0x61   : > { %v4123_v49 = vld [vmem:[%s3963_s7 + $0x188] sm:$0xff]  ;;  %v4126_v50 = vld [vmem:[%s3963_s7 + $0x190] sm:$0xff]  ;;  %v4129_v51 = vld [vmem:[%s3963_s7 + $0x198] sm:$0xff] }
  0x62   : > { %5189 = vst [vmem:[#allocation17_spill] sm:$0xff] %v4123_v49  ;;  %5190 = vst [vmem:[#allocation18_spill] sm:$0xff] %v4126_v50  ;;  %v4132_v52 = vld [vmem:[%s3963_s7 + $0x1a0] sm:$0xff]  ;;  %v4135_v53 = vld [vmem:[%s3963_s7 + $0x1a8] sm:$0xff] }
  0x63   : > { %5191 = vst [vmem:[#allocation19_spill] sm:$0xff] %v4129_v51  ;;  %5192 = vst [vmem:[#allocation20_spill] sm:$0xff] %v4132_v52  ;;  %v4138_v54 = vld [vmem:[%s3963_s7 + $0x1b0] sm:$0xff]  ;;  %v4141_v55 = vld [vmem:[%s3963_s7 + $0x1b8] sm:$0xff] }
  0x64   : > { %5193 = vst [vmem:[#allocation21_spill] sm:$0xff] %v4135_v53  ;;  %5194 = vst [vmem:[#allocation22_spill] sm:$0xff] %v4138_v54  ;;  %v4144_v56 = vld [vmem:[%s3963_s7 + $0x1c0] sm:$0xff]  ;;  %v4147_v57 = vld [vmem:[%s3963_s7 + $0x1c8] sm:$0xff] }
  0x65   : > { %5195 = vst [vmem:[#allocation23_spill] sm:$0xff] %v4141_v55  ;;  %5196 = vst [vmem:[#allocation24_spill] sm:$0xff] %v4144_v56  ;;  %v4150_v58 = vld [vmem:[%s3963_s7 + $0x1d0] sm:$0xff]  ;;  %v4153_v59 = vld [vmem:[%s3963_s7 + $0x1d8] sm:$0xff] }
  0x66   : > { %5197 = vst [vmem:[#allocation25_spill] sm:$0xff] %v4147_v57  ;;  %5198 = vst [vmem:[#allocation26_spill] sm:$0xff] %v4150_v58  ;;  %v4156_v60 = vld [vmem:[%s3963_s7 + $0x1e0] sm:$0xff]  ;;  %v4159_v61 = vld [vmem:[%s3963_s7 + $0x1e8] sm:$0xff] }
  0x67   : > { %5199 = vst [vmem:[#allocation27_spill] sm:$0xff] %v4153_v59  ;;  %5200 = vst [vmem:[#allocation28_spill] sm:$0xff] %v4156_v60  ;;  %v4162_v62 = vld [vmem:[%s3963_s7 + $0x1f0] sm:$0xff]  ;;  %v4165_v63 = vld [vmem:[%s3963_s7 + $0x1f8] sm:$0xff] }
  0x68   : > { %5201 = vst [vmem:[#allocation29_spill] sm:$0xff] %v4159_v61  ;;  %5202 = vst [vmem:[#allocation30_spill] sm:$0xff] %v4162_v62  ;;  %v4168_v56 = vld [vmem:[%s3969_s18] sm:$0xff]  ;;  %v4171_v58 = vld [vmem:[%s3969_s18 + $0x8] sm:$0xff] }
  0x69   : > { %5203 = vst [vmem:[#allocation31_spill] sm:$0xff] %v4165_v63  ;;  %5204 = vst [vmem:[#allocation32_spill] sm:$0xff] %v4168_v56  ;;  %v4174_v59 = vld [vmem:[%s3969_s18 + $0x10] sm:$0xff]  ;;  %v4177_v60 = vld [vmem:[%s3969_s18 + $0x18] sm:$0xff] }
  0x6a   : > { %5205 = vst [vmem:[#allocation33_spill] sm:$0xff] %v4171_v58  ;;  %5206 = vst [vmem:[#allocation34_spill] sm:$0xff] %v4174_v59  ;;  %v4180_v61 = vld [vmem:[%s3969_s18 + $0x20] sm:$0xff]  ;;  %v4183_v62 = vld [vmem:[%s3969_s18 + $0x28] sm:$0xff] }
  0x6b   : > { %5207 = vst [vmem:[#allocation35_spill] sm:$0xff] %v4177_v60  ;;  %5208 = vst [vmem:[#allocation36_spill] sm:$0xff] %v4180_v61  ;;  %v4186_v63 = vld [vmem:[%s3969_s18 + $0x30] sm:$0xff]  ;;  %v4189_v56 = vld [vmem:[%s3969_s18 + $0x38] sm:$0xff] }
  0x6c   : > { %5209 = vst [vmem:[#allocation37_spill] sm:$0xff] %v4183_v62  ;;  %5210 = vst [vmem:[#allocation38_spill] sm:$0xff] %v4186_v63  ;;  %v4192_v58 = vld [vmem:[%s3969_s18 + $0x40] sm:$0xff]  ;;  %v4195_v59 = vld [vmem:[%s3969_s18 + $0x48] sm:$0xff] }
  0x6d   : > { %5211 = vst [vmem:[#allocation39_spill] sm:$0xff] %v4189_v56  ;;  %5212 = vst [vmem:[#allocation40_spill] sm:$0xff] %v4192_v58  ;;  %v4198_v60 = vld [vmem:[%s3969_s18 + $0x50] sm:$0xff]  ;;  %v4201_v61 = vld [vmem:[%s3969_s18 + $0x58] sm:$0xff] }
  0x6e   : > { %5213 = vst [vmem:[#allocation41_spill] sm:$0xff] %v4195_v59  ;;  %5214 = vst [vmem:[#allocation42_spill] sm:$0xff] %v4198_v60  ;;  %v4204_v62 = vld [vmem:[%s3969_s18 + $0x60] sm:$0xff]  ;;  %v4207_v63 = vld [vmem:[%s3969_s18 + $0x68] sm:$0xff] }
  0x6f   : > { %5215 = vst [vmem:[#allocation43_spill] sm:$0xff] %v4201_v61  ;;  %5216 = vst [vmem:[#allocation44_spill] sm:$0xff] %v4204_v62  ;;  %v4210_v56 = vld [vmem:[%s3969_s18 + $0x70] sm:$0xff]  ;;  %v4213_v58 = vld [vmem:[%s3969_s18 + $0x78] sm:$0xff] }
  0x70   : > { %5217 = vst [vmem:[#allocation45_spill] sm:$0xff] %v4207_v63  ;;  %5218 = vst [vmem:[#allocation46_spill] sm:$0xff] %v4210_v56  ;;  %v4216_v59 = vld [vmem:[%s3969_s18 + $0x80] sm:$0xff]  ;;  %v4219_v60 = vld [vmem:[%s3969_s18 + $0x88] sm:$0xff] }
  0x71   : > { %5219 = vst [vmem:[#allocation47_spill] sm:$0xff] %v4213_v58  ;;  %5220 = vst [vmem:[#allocation48_spill] sm:$0xff] %v4216_v59  ;;  %v4222_v61 = vld [vmem:[%s3969_s18 + $0x90] sm:$0xff]  ;;  %v4225_v62 = vld [vmem:[%s3969_s18 + $0x98] sm:$0xff] }
  0x72   : > { %5221 = vst [vmem:[#allocation49_spill] sm:$0xff] %v4219_v60  ;;  %5222 = vst [vmem:[#allocation50_spill] sm:$0xff] %v4222_v61  ;;  %v4229_v63 = vld [vmem:[%s3969_s18 + $0xa0] sm:$0xff]  ;;  %v4232_v56 = vld [vmem:[%s3969_s18 + $0xa8] sm:$0xff] }
  0x73   : > { %5223 = vst [vmem:[#allocation51_spill] sm:$0xff] %v4225_v62  ;;  %5224 = vst [vmem:[#allocation52_spill] sm:$0xff] %v4229_v63  ;;  %v4235_v58 = vld [vmem:[%s3969_s18 + $0xb0] sm:$0xff]  ;;  %v4238_v59 = vld [vmem:[%s3969_s18 + $0xb8] sm:$0xff] }
  0x74   : > { %5225 = vst [vmem:[#allocation53_spill] sm:$0xff] %v4232_v56  ;;  %5226 = vst [vmem:[#allocation54_spill] sm:$0xff] %v4235_v58  ;;  %v4241_v60 = vld [vmem:[%s3969_s18 + $0xc0] sm:$0xff]  ;;  %v4244_v61 = vld [vmem:[%s3969_s18 + $0xc8] sm:$0xff] }
  0x75   : > { %5227 = vst [vmem:[#allocation55_spill] sm:$0xff] %v4238_v59  ;;  %5228 = vst [vmem:[#allocation56_spill] sm:$0xff] %v4241_v60  ;;  %v4247_v62 = vld [vmem:[%s3969_s18 + $0xd0] sm:$0xff]  ;;  %v4250_v63 = vld [vmem:[%s3969_s18 + $0xd8] sm:$0xff] }
  0x76   : > { %5229 = vst [vmem:[#allocation57_spill] sm:$0xff] %v4244_v61  ;;  %5230 = vst [vmem:[#allocation58_spill] sm:$0xff] %v4247_v62  ;;  %v4253_v56 = vld [vmem:[%s3969_s18 + $0xe0] sm:$0xff]  ;;  %v4256_v58 = vld [vmem:[%s3969_s18 + $0xe8] sm:$0xff] }
  0x77   : > { %5231 = vst [vmem:[#allocation59_spill] sm:$0xff] %v4250_v63  ;;  %5232 = vst [vmem:[#allocation60_spill] sm:$0xff] %v4253_v56  ;;  %v4259_v57 = vld [vmem:[%s3969_s18 + $0xf0] sm:$0xff]  ;;  %v4262_v59 = vld [vmem:[%s3969_s18 + $0xf8] sm:$0xff] }
  0x78   : > { %5233 = vst [vmem:[#allocation61_spill] sm:$0xff] %v4256_v58  ;;  %5234 = vst [vmem:[#allocation62_spill] sm:$0xff] %v4259_v57  ;;  %v4266_v60 = vld [vmem:[%s3969_s18 + $0x100] sm:$0xff]  ;;  %v4269_v62 = vld [vmem:[%s3969_s18 + $0x108] sm:$0xff] }
  0x79   : > { %5235 = vst [vmem:[#allocation63_spill] sm:$0xff] %v4262_v59  ;;  %5236 = vst [vmem:[#allocation64_spill] sm:$0xff] %v4266_v60  ;;  %v4272_v63 = vld [vmem:[%s3969_s18 + $0x110] sm:$0xff]  ;;  %v4275_v56 = vld [vmem:[%s3969_s18 + $0x118] sm:$0xff] }
  0x7a   : > { %5237 = vst [vmem:[#allocation65_spill] sm:$0xff] %v4269_v62  ;;  %5238 = vst [vmem:[#allocation66_spill] sm:$0xff] %v4272_v63  ;;  %v4278_v58 = vld [vmem:[%s3969_s18 + $0x120] sm:$0xff]  ;;  %v4281_v57 = vld [vmem:[%s3969_s18 + $0x128] sm:$0xff] }
  0x7b   : > { %5239 = vst [vmem:[#allocation67_spill] sm:$0xff] %v4275_v56  ;;  %5240 = vst [vmem:[#allocation68_spill] sm:$0xff] %v4278_v58  ;;  %v4284_v59 = vld [vmem:[%s3969_s18 + $0x130] sm:$0xff]  ;;  %v4287_v61 = vld [vmem:[%s3969_s18 + $0x138] sm:$0xff] }
  0x7c   : > { %5241 = vst [vmem:[#allocation69_spill] sm:$0xff] %v4281_v57  ;;  %5242 = vst [vmem:[#allocation70_spill] sm:$0xff] %v4284_v59  ;;  %v4290_v60 = vld [vmem:[%s3969_s18 + $0x140] sm:$0xff]  ;;  %v4293_v62 = vld [vmem:[%s3969_s18 + $0x148] sm:$0xff] }
  0x7d   : > { %5243 = vst [vmem:[#allocation71_spill] sm:$0xff] %v4287_v61  ;;  %5244 = vst [vmem:[#allocation72_spill] sm:$0xff] %v4290_v60  ;;  %v4296_v63 = vld [vmem:[%s3969_s18 + $0x150] sm:$0xff]  ;;  %v4299_v56 = vld [vmem:[%s3969_s18 + $0x158] sm:$0xff] }
  0x7e   : > { %5245 = vst [vmem:[#allocation73_spill] sm:$0xff] %v4293_v62  ;;  %5246 = vst [vmem:[#allocation74_spill] sm:$0xff] %v4296_v63  ;;  %v4302_v58 = vld [vmem:[%s3969_s18 + $0x160] sm:$0xff]  ;;  %v4305_v59 = vld [vmem:[%s3969_s18 + $0x168] sm:$0xff] }
  0x7f   : > { %5247 = vst [vmem:[#allocation75_spill] sm:$0xff] %v4299_v56  ;;  %5248 = vst [vmem:[#allocation76_spill] sm:$0xff] %v4302_v58  ;;  %v4308_v61 = vld [vmem:[%s3969_s18 + $0x170] sm:$0xff]  ;;  %v4311_v60 = vld [vmem:[%s3969_s18 + $0x178] sm:$0xff] }
  0x80   : > { %5249 = vst [vmem:[#allocation77_spill] sm:$0xff] %v4305_v59  ;;  %5250 = vst [vmem:[#allocation78_spill] sm:$0xff] %v4308_v61  ;;  %v4314_v62 = vld [vmem:[%s3969_s18 + $0x180] sm:$0xff]  ;;  %v4317_v63 = vld [vmem:[%s3969_s18 + $0x188] sm:$0xff] }
  0x81   : > { %5251 = vst [vmem:[#allocation79_spill] sm:$0xff] %v4311_v60  ;;  %5252 = vst [vmem:[#allocation80_spill] sm:$0xff] %v4314_v62  ;;  %v4320_v56 = vld [vmem:[%s3969_s18 + $0x190] sm:$0xff]  ;;  %v4323_v57 = vld [vmem:[%s3969_s18 + $0x198] sm:$0xff] }
  0x82   : > { %5253 = vst [vmem:[#allocation81_spill] sm:$0xff] %v4317_v63  ;;  %5254 = vst [vmem:[#allocation82_spill] sm:$0xff] %v4320_v56  ;;  %v4326_v58 = vld [vmem:[%s3969_s18 + $0x1a0] sm:$0xff]  ;;  %v4332_v61 = vld [vmem:[%s3969_s18 + $0x1a8] sm:$0xff] }
  0x83   : > { %5255 = vst [vmem:[#allocation83_spill] sm:$0xff] %v4323_v57  ;;  %5256 = vst [vmem:[#allocation84_spill] sm:$0xff] %v4326_v58  ;;  %v4335_v59 = vld [vmem:[%s3969_s18 + $0x1b0] sm:$0xff]  ;;  %v4338_v60 = vld [vmem:[%s3969_s18 + $0x1b8] sm:$0xff]  ;;  %493 = sbr.rel (%p2742_p11) target bundleno = 412 (0x19c), region = 56 }
  0x84   : > { %5257 = vst [vmem:[#allocation85_spill] sm:$0xff] %v4332_v61  ;;  %5258 = vst [vmem:[#allocation86_spill] sm:$0xff] %v4335_v59  ;;  %v4341_v62 = vld [vmem:[%s3969_s18 + $0x1c0] sm:$0xff]  ;;  %v4344_v54 = vld [vmem:[%s3969_s18 + $0x1c8] sm:$0xff]  ;;  %v2825_v59 = vpack.c.bf16 (!%p2742_p11), %v4012_v12, %v4000_v8 }
  0x85   : > { %5259 = vst [vmem:[#allocation87_spill] sm:$0xff] %v4338_v60  ;;  %5260 = vst [vmem:[#allocation88_spill] sm:$0xff] %v4341_v62  ;;  %v4347_v63 = vld [vmem:[%s3969_s18 + $0x1d0] sm:$0xff]  ;;  %v4350_v56 = vld [vmem:[%s3969_s18 + $0x1d8] sm:$0xff]  ;;  %v2819_v62 = vpack.c.bf16 (!%p2742_p11), %v3991_v5, %v3979_v1  ;;  %v2859_v60 = vpack.c.bf16 (!%p2742_p11), %v4045_v23, %v4033_v19 }
  0x86   : > { %5261 = vst [vmem:[#allocation89_spill] sm:$0xff] %v4344_v54  ;;  %5262 = vst [vmem:[#allocation90_spill] sm:$0xff] %v4347_v63  ;;  %v4353_v57 = vld [vmem:[%s3969_s18 + $0x1e0] sm:$0xff]  ;;  %v4356_v58 = vld [vmem:[%s3969_s18 + $0x1e8] sm:$0xff]  ;;  %v2851_v63 = vpack.c.bf16 (!%p2742_p11), %v3997_v7, %v3985_v3  ;;  %v2827_v54 = vpack.c.bf16 (!%p2742_p11), %v4039_v21, %v4027_v17 }
  0x87   : > { %5263 = vst [vmem:[#allocation91_spill] sm:$0xff] %v4350_v56  ;;  %5264 = vst [vmem:[#allocation92_spill] sm:$0xff] %v4353_v57  ;;  %v4359_v50 = vld [vmem:[%s3969_s18 + $0x1f0] sm:$0xff]  ;;  %v4362_v52 = vld [vmem:[%s3969_s18 + $0x1f8] sm:$0xff]  ;;  %v2821_v57 = vpack.c.bf16 (!%p2742_p11), %v3988_v4, %v3976_v0  ;;  %v2853_v56 = vpack.c.bf16 (!%p2742_p11), %v3994_v6, %v3982_v2  ;;  %2820 = vmatprep.subr.bf16.mxu0 (!%p2742_p11), %v2819_v62  ;;  %v2837_v62 = vpack.c.bf16 (!%p2742_p11), %v4084_v36, %v4072_v32 }
  0x88   : > { %5265 = vst [vmem:[#allocation93_spill] sm:$0xff] %v4356_v58  ;;  %5266 = vst [vmem:[#allocation94_spill] sm:$0xff] %v4359_v50  ;;  %v4364_v61 = vld [vmem:[%s355_s13] sm:$0xf]  ;;  %v2823_v50 = vpack.c.bf16 (!%p2742_p11), %v4015_v13, %v4003_v9  ;;  %2852 = vmatprep.subr.bf16.mxu1 (!%p2742_p11), %v2851_v63  ;;  %v2857_v58 = vpack.c.bf16 (!%p2742_p11), %v4018_v14, %v4006_v10  ;;  %v5169_v13 = vmov (!%p2742_p11), 0.0   ;;  %v2869_v63 = vpack.c.bf16 (!%p2742_p11), %v4090_v38, %v4078_v34 }
  0x89   : > { %5267 = vst [vmem:[#allocation95_spill] sm:$0xff] %v4362_v52  ;;  %v2855_v52 = vpack.c.bf16 (!%p2742_p11), %v4021_v15, %v4009_v11  ;;  %2822 = vmatpush1.bf16.msra.mxu0 (!%p2742_p11), %v2821_v57  ;;  %2854 = vmatpush1.bf16.msra.mxu1 (!%p2742_p11), %v2853_v56  ;;  %v2829_v56 = vpack.c.bf16 (!%p2742_p11), %v4036_v20, %v4024_v16 }
  0x8a   : > { %2824 = vmatprep.subr.bf16.mxu0 %v2823_v50  ;;  %587 = vmatprep.mubr.f32.mxu0 %v5169_v13  ;;  %v2861_v50 = vpack.c.bf16 %v4042_v22, %v4030_v18  ;;  %v2863_v57 = vpack.c.bf16 %v4069_v31, %v4057_v27 }
  0x8b   : > { %2856 = vmatprep.subr.bf16.mxu1 %v2855_v52  ;;  %700 = vmatprep.mubr.f32.mxu1 %v5169_v13  ;;  %v2831_v52 = vpack.c.bf16 %v4063_v29, %v4051_v25 }
  0x8d   : > { %2826 = vmatpush1.bf16.msra.mxu0 %v2825_v59  ;;  %2858 = vmatpush1.bf16.msra.mxu1 %v2857_v58  ;;  %v2833_v59 = vpack.c.bf16 %v4060_v28, %v4048_v24  ;;  %v2865_v58 = vpack.c.bf16 %v4066_v30, %v4054_v26 }
  0x8e   : > { %2828 = vmatprep.subr.bf16.mxu0 %v2827_v54  ;;  %2860 = vmatprep.subr.bf16.mxu1 %v2859_v60  ;;  %v2835_v54 = vpack.c.bf16 %v4087_v37, %v4075_v33  ;;  %v2867_v60 = vpack.c.bf16 %v4093_v39, %v4081_v35 }
  0x91   : > { %2830 = vmatpush1.bf16.msra.mxu0 %v2829_v56  ;;  %2862 = vmatpush1.bf16.msra.mxu1 %v2861_v50  ;;  %v2839_v56 = vpack.c.bf16 %v4111_v45, %v4099_v41  ;;  %v2871_v50 = vpack.c.bf16 %v4117_v47, %v4105_v43 }
  0x92   : > { %2832 = vmatprep.subr.bf16.mxu0 %v2831_v52  ;;  %2864 = vmatprep.subr.bf16.mxu1 %v2863_v57  ;;  %v2841_v52 = vpack.c.bf16 %v4108_v44, %v4096_v40  ;;  %v2873_v57 = vpack.c.bf16 %v4114_v46, %v4102_v42  ;;  %v5271_v44 = vld [vmem:[#allocation25_spill] sm:$0xff]  ;;  %v5274_v42 = vld [vmem:[#allocation31_spill] sm:$0xff] }
  0x93   : > { %v5272_v46 = vld [vmem:[#allocation29_spill] sm:$0xff] }
  0x95   : > { %2834 = vmatpush1.bf16.msra.mxu0 %v2833_v59  ;;  %2866 = vmatpush1.bf16.msra.mxu1 %v2865_v58  ;;  %v2843_v59 = vpack.c.bf16 %v4135_v53, %v4123_v49  ;;  %v2875_v58 = vpack.c.bf16 %v4141_v55, %v4129_v51  ;;  %v5275_v53 = vld [vmem:[#allocation24_spill] sm:$0xff]  ;;  %v5278_v51 = vld [vmem:[#allocation30_spill] sm:$0xff] }
  0x96   : > { %2836 = vmatprep.subr.bf16.mxu0 %v2835_v54  ;;  %2868 = vmatprep.subr.bf16.mxu1 %v2867_v60  ;;  %v5268_v54 = vld [vmem:[#allocation20_spill] sm:$0xff] }
  0x97   : > { %v2845_v60 = vpack.c.bf16 %v5268_v54, %v4120_v48  ;;  %v5276_v55 = vld [vmem:[#allocation28_spill] sm:$0xff] }
  0x99   : > { %2838 = vmatpush1.bf16.msra.mxu0 %v2837_v62  ;;  %2870 = vmatpush1.bf16.msra.mxu1 %v2869_v63  ;;  %v5269_v62 = vld [vmem:[#allocation18_spill] sm:$0xff] }
  0x9a   : > { %2840 = vmatprep.subr.bf16.mxu0 %v2839_v56  ;;  %2872 = vmatprep.subr.bf16.mxu1 %v2871_v50  ;;  %v5270_v63 = vld [vmem:[#allocation22_spill] sm:$0xff]  ;;  %v2847_v56 = vpack.c.bf16 %v5272_v46, %v5271_v44  ;;  %v5273_v50 = vld [vmem:[#allocation27_spill] sm:$0xff]  ;;  %v5279_v44 = vmov 0.0   ;;  %v498_v46 = vld [vmem:[%s5160_s0 + $0x20] sm:$0xff] }
  0x9b   : > { %v2877_v13 = vpack.c.bf16 %v5270_v63, %v5269_v62  ;;  %v2879_v40 = vpack.c.bf16 %v5274_v42, %v5273_v50  ;;  %v497_v42 = vld [vmem:[%s5160_s0 + $0x18] sm:$0xff] }
  0x9d   : > { %2842 = vmatpush1.bf16.msra.mxu0 %v2841_v52  ;;  %2874 = vmatpush1.bf16.msra.mxu1 %v2873_v57  ;;  %v2849_v52 = vpack.c.bf16 %v5276_v55, %v5275_v53  ;;  %v5277_v57 = vld [vmem:[#allocation26_spill] sm:$0xff]  ;;  %v501_v53 = vld [vmem:[%s5160_s0 + $0x38] sm:$0xff]  ;;  %v503_v55 = vlaneseq }
  0x9e   : > { %2844 = vmatprep.subr.bf16.mxu0 %v2843_v59  ;;  %2876 = vmatprep.subr.bf16.mxu1 %v2875_v58  ;;  %v2881_v49 = vpack.c.bf16 %v5278_v51, %v5277_v57  ;;  %v494_v59 = vld [vmem:[%s5160_s0] sm:$0xff]  ;;  %v500_v51 = vld [vmem:[%s5160_s0 + $0x30] sm:$0xff] }
  0x9f   : > { %v504_v58 = vshrl.u32 %v503_v55, 7 }
  0xa1   : > { %2846 = vmatpush1.bf16.msra.mxu0 %v2845_v60  ;;  %2878 = vmatpush1.bf16.msra.mxu1 %v2877_v13  ;;  %v495_v13 = vld [vmem:[%s5160_s0 + $0x8] sm:$0xff]  ;;  %v505_v54 = vsub.s32 0, %v504_v58  ;;  %v513_v60 = vsub.s32 2, %v504_v58  ;;  %v509_v62 = vsub.s32 1, %v504_v58  ;;  %v517_v63 = vsub.s32 3, %v504_v58 }
  0xa2   : > { %2848 = vmatprep.subr.bf16.mxu0 %v2847_v56  ;;  %2880 = vmatprep.subr.bf16.mxu1 %v2879_v40  ;;  %v496_v40 = vld [vmem:[%s5160_s0 + $0x10] sm:$0xff] }
  0xa3   : > { %v4472_v56 = vrot.slane %v4364_v61, %v505_v54  ;;  %v4475_v50 = vrot.slane %v4364_v61, %v513_v60  ;;  %v4481_v57 = vrot.slane %v4364_v61, %v517_v63 }
  0xa5   : > { %2850 = vmatpush1.bf16.msra.mxu0 %v2849_v52  ;;  %2882 = vmatpush1.bf16.msra.mxu1 %v2881_v49  ;;  %v499_v49 = vld [vmem:[%s5160_s0 + $0x28] sm:$0xff]  ;;  %v4478_v52 = vrot.slane %v4364_v61, %v509_v62 }
  0xa8   : > { %588 = vmatmul.mubr.f32.vlgmr.msra.gmra.mrb[0].mxu0 %v494_v59  ;;  %701 = vmatmul.mubr.f32.vlgmr.msra.gmra.mrb[0].mxu1 %v494_v59 }
  0xa9   : > { %593 = vmatprep.mubr.f32.mxu0 %v5279_v44  ;;  %706 = vmatprep.mubr.f32.mxu1 %v5279_v44 }
  0xac   : > { %594 = vmatmul.mubr.f32.gmra.mrb[2].mxu0 %v495_v13  ;;  %707 = vmatmul.mubr.f32.gmra.mrb[2].mxu1 %v495_v13 }
  0xad   : > { %599 = vmatprep.mubr.f32.mxu0 %v5279_v44  ;;  %712 = vmatprep.mubr.f32.mxu1 %v5279_v44 }
  0xb0   : > { %600 = vmatmul.mubr.f32.gmra.mrb[4].mxu0 %v496_v40  ;;  %713 = vmatmul.mubr.f32.gmra.mrb[4].mxu1 %v496_v40 }
  0xb1   : > { %605 = vmatprep.mubr.f32.mxu0 %v5279_v44  ;;  %718 = vmatprep.mubr.f32.mxu1 %v5279_v44 }
  0xb4   : > { %606 = vmatmul.mubr.f32.gmra.mrb[6].mxu0 %v497_v42  ;;  %719 = vmatmul.mubr.f32.gmra.mrb[6].mxu1 %v497_v42 }
  0xb5   : > { %611 = vmatprep.mubr.f32.mxu0 %v5279_v44  ;;  %724 = vmatprep.mubr.f32.mxu1 %v5279_v44 }
  0xb8   : > { %612 = vmatmul.mubr.f32.gmra.mrb[8].mxu0 %v498_v46  ;;  %725 = vmatmul.mubr.f32.gmra.mrb[8].mxu1 %v498_v46 }
  0xb9   : > { %617 = vmatprep.mubr.f32.mxu0 %v5279_v44  ;;  %730 = vmatprep.mubr.f32.mxu1 %v5279_v44 }
  0xbc   : > { %618 = vmatmul.mubr.f32.gmra.mrb[10].mxu0 %v499_v49  ;;  %731 = vmatmul.mubr.f32.gmra.mrb[10].mxu1 %v499_v49 }
  0xbd   : > { %623 = vmatprep.mubr.f32.mxu0 %v5279_v44  ;;  %736 = vmatprep.mubr.f32.mxu1 %v5279_v44 }
  0xc0   : > { %624 = vmatmul.mubr.f32.gmra.mrb[12].mxu0 %v500_v51  ;;  %737 = vmatmul.mubr.f32.gmra.mrb[12].mxu1 %v500_v51 }
  0xc1   : > { %629 = vmatprep.mubr.f32.mxu0 %v5279_v44  ;;  %742 = vmatprep.mubr.f32.mxu1 %v5279_v44 }
  0xc4   : > { %630 = vmatmul.mubr.f32.gmra.mrb[14].mxu0 %v501_v53  ;;  %743 = vmatmul.mubr.f32.gmra.mrb[14].mxu1 %v501_v53 }
 0x17b   : > { %v589_v59 = vpop.f32.mrb[0].mxu0  ;;  %v702_v44 = vpop.f32.mrb[0].mxu1 }
 0x17c   : > { %v590_v13 = vadd.f32 %v589_v59, %v4472_v56  ;;  %v703_v40 = vadd.f32 %v702_v44, %v4475_v50  ;;  %v591_v42 = vpop.f32.mrb[1].mxu0  ;;  %v704_v46 = vpop.f32.mrb[1].mxu1 }
 0x17d   : > { %v592_v49 = vadd.f32 %v591_v42, %v4478_v52  ;;  %v705_v51 = vadd.f32 %v704_v46, %v4481_v57 }
 0x17e   : > { %749 = vst [vmem:[#allocation3] sm:$0xff] %v590_v13  ;;  %751 = vst [vmem:[#allocation3 + $0x10] sm:$0xff] %v703_v40 }
 0x17f   : > { %750 = vst [vmem:[#allocation3 + $0x8] sm:$0xff] %v592_v49  ;;  %752 = vst [vmem:[#allocation3 + $0x18] sm:$0xff] %v705_v51  ;;  %v595_v53 = vpop.f32.mrb[2].mxu0  ;;  %v708_v55 = vpop.f32.mrb[2].mxu1 }
 0x180   : > { %v596_v58 = vadd.f32 %v595_v53, %v4472_v56  ;;  %v709_v54 = vadd.f32 %v708_v55, %v4475_v50  ;;  %v597_v60 = vpop.f32.mrb[3].mxu0  ;;  %v710_v62 = vpop.f32.mrb[3].mxu1 }
 0x181   : > { %v598_v63 = vadd.f32 %v597_v60, %v4478_v52  ;;  %v711_v59 = vadd.f32 %v710_v62, %v4481_v57 }
 0x182   : > { %753 = vst [vmem:[#allocation3 + $0x20] sm:$0xff] %v596_v58  ;;  %755 = vst [vmem:[#allocation3 + $0x30] sm:$0xff] %v709_v54 }
 0x183   : > { %754 = vst [vmem:[#allocation3 + $0x28] sm:$0xff] %v598_v63  ;;  %756 = vst [vmem:[#allocation3 + $0x38] sm:$0xff] %v711_v59  ;;  %v601_v44 = vpop.f32.mrb[4].mxu0  ;;  %v714_v13 = vpop.f32.mrb[4].mxu1 }
 0x184   : > { %v602_v40 = vadd.f32 %v601_v44, %v4472_v56  ;;  %v715_v42 = vadd.f32 %v714_v13, %v4475_v50  ;;  %v603_v46 = vpop.f32.mrb[5].mxu0  ;;  %v716_v49 = vpop.f32.mrb[5].mxu1 }
 0x185   : > { %v604_v51 = vadd.f32 %v603_v46, %v4478_v52  ;;  %v717_v53 = vadd.f32 %v716_v49, %v4481_v57 }
 0x186   : > { %757 = vst [vmem:[#allocation3 + $0x40] sm:$0xff] %v602_v40  ;;  %759 = vst [vmem:[#allocation3 + $0x50] sm:$0xff] %v715_v42 }
 0x187   : > { %758 = vst [vmem:[#allocation3 + $0x48] sm:$0xff] %v604_v51  ;;  %760 = vst [vmem:[#allocation3 + $0x58] sm:$0xff] %v717_v53  ;;  %v607_v55 = vpop.f32.mrb[6].mxu0  ;;  %v720_v58 = vpop.f32.mrb[6].mxu1 }
 0x188   : > { %v608_v54 = vadd.f32 %v607_v55, %v4472_v56  ;;  %v721_v60 = vadd.f32 %v720_v58, %v4475_v50  ;;  %v609_v62 = vpop.f32.mrb[7].mxu0  ;;  %v722_v63 = vpop.f32.mrb[7].mxu1 }
 0x189   : > { %v610_v59 = vadd.f32 %v609_v62, %v4478_v52  ;;  %v723_v44 = vadd.f32 %v722_v63, %v4481_v57 }
 0x18a   : > { %761 = vst [vmem:[#allocation3 + $0x60] sm:$0xff] %v608_v54  ;;  %763 = vst [vmem:[#allocation3 + $0x70] sm:$0xff] %v721_v60 }
 0x18b   : > { %762 = vst [vmem:[#allocation3 + $0x68] sm:$0xff] %v610_v59  ;;  %764 = vst [vmem:[#allocation3 + $0x78] sm:$0xff] %v723_v44  ;;  %v613_v13 = vpop.f32.mrb[8].mxu0  ;;  %v726_v40 = vpop.f32.mrb[8].mxu1 }
 0x18c   : > { %v614_v42 = vadd.f32 %v613_v13, %v4472_v56  ;;  %v727_v46 = vadd.f32 %v726_v40, %v4475_v50  ;;  %v615_v49 = vpop.f32.mrb[9].mxu0  ;;  %v728_v51 = vpop.f32.mrb[9].mxu1 }
 0x18d   : > { %v616_v53 = vadd.f32 %v615_v49, %v4478_v52  ;;  %v729_v55 = vadd.f32 %v728_v51, %v4481_v57 }
 0x18e   : > { %765 = vst [vmem:[#allocation3 + $0x80] sm:$0xff] %v614_v42  ;;  %767 = vst [vmem:[#allocation3 + $0x90] sm:$0xff] %v727_v46 }
 0x18f   : > { %766 = vst [vmem:[#allocation3 + $0x88] sm:$0xff] %v616_v53  ;;  %768 = vst [vmem:[#allocation3 + $0x98] sm:$0xff] %v729_v55  ;;  %v619_v58 = vpop.f32.mrb[10].mxu0  ;;  %v732_v54 = vpop.f32.mrb[10].mxu1 }
 0x190   : > { %v620_v60 = vadd.f32 %v619_v58, %v4472_v56  ;;  %v733_v62 = vadd.f32 %v732_v54, %v4475_v50  ;;  %v621_v63 = vpop.f32.mrb[11].mxu0  ;;  %v734_v59 = vpop.f32.mrb[11].mxu1 }
 0x191   : > { %v622_v44 = vadd.f32 %v621_v63, %v4478_v52  ;;  %v735_v13 = vadd.f32 %v734_v59, %v4481_v57 }
 0x192   : > { %769 = vst [vmem:[#allocation3 + $0xa0] sm:$0xff] %v620_v60  ;;  %771 = vst [vmem:[#allocation3 + $0xb0] sm:$0xff] %v733_v62 }
 0x193   : > { %770 = vst [vmem:[#allocation3 + $0xa8] sm:$0xff] %v622_v44  ;;  %772 = vst [vmem:[#allocation3 + $0xb8] sm:$0xff] %v735_v13  ;;  %v625_v40 = vpop.f32.mrb[12].mxu0  ;;  %v738_v42 = vpop.f32.mrb[12].mxu1 }
 0x194   : > { %v626_v46 = vadd.f32 %v625_v40, %v4472_v56  ;;  %v739_v49 = vadd.f32 %v738_v42, %v4475_v50  ;;  %v627_v51 = vpop.f32.mrb[13].mxu0  ;;  %v740_v53 = vpop.f32.mrb[13].mxu1 }
 0x195   : > { %v628_v55 = vadd.f32 %v627_v51, %v4478_v52  ;;  %v741_v58 = vadd.f32 %v740_v53, %v4481_v57 }
 0x196   : > { %773 = vst [vmem:[#allocation3 + $0xc0] sm:$0xff] %v626_v46  ;;  %775 = vst [vmem:[#allocation3 + $0xd0] sm:$0xff] %v739_v49 }
 0x197   : > { %774 = vst [vmem:[#allocation3 + $0xc8] sm:$0xff] %v628_v55  ;;  %776 = vst [vmem:[#allocation3 + $0xd8] sm:$0xff] %v741_v58  ;;  %v631_v54 = vpop.f32.mrb[14].mxu0  ;;  %v744_v60 = vpop.f32.mrb[14].mxu1 }
 0x198   : > { %v632_v62 = vadd.f32 %v631_v54, %v4472_v56  ;;  %v745_v63 = vadd.f32 %v744_v60, %v4475_v50  ;;  %v633_v59 = vpop.f32.mrb[15].mxu0  ;;  %v746_v44 = vpop.f32.mrb[15].mxu1 }
 0x199   : > { %v634_v13 = vadd.f32 %v633_v59, %v4478_v52  ;;  %v747_v40 = vadd.f32 %v746_v44, %v4481_v57 }
 0x19a   : > { %777 = vst [vmem:[#allocation3 + $0xe0] sm:$0xff] %v632_v62  ;;  %779 = vst [vmem:[#allocation3 + $0xf0] sm:$0xff] %v745_v63 }
 0x19b   : > { %778 = vst [vmem:[#allocation3 + $0xe8] sm:$0xff] %v634_v13  ;;  %780 = vst [vmem:[#allocation3 + $0xf8] sm:$0xff] %v747_v40 }
 0x19c PF: > { %p2743_p4 = scmp.le.s32.totalorder %s3758_s24, 0 }
 0x19d   : > { %v2883_v42 = vpack.c.bf16 (!%p2743_p4), %v3991_v5, %v3979_v1  ;;  %v2915_v56 = vpack.c.bf16 (!%p2743_p4), %v3997_v7, %v3985_v3  ;;  %v2885_v50 = vpack.c.bf16 (!%p2743_p4), %v3988_v4, %v3976_v0  ;;  %v2917_v52 = vpack.c.bf16 (!%p2743_p4), %v3994_v6, %v3982_v2  ;;  %v5280_v57 = vld [vmem:[#allocation12_spill] sm:$0xff] (!%p2743_p4)  ;;  %v5298_v51 = vld [vmem:[#allocation26_spill] sm:$0xff] (!%p2743_p4)  ;;  %v786_v58 = vld [vmem:[#allocation2 + $0x8] sm:$0xff] (!%p2743_p4) }
 0x19e   : > { %784 = sbr.rel (%p2743_p4) target bundleno = 691 (0x2b3), region = 60  ;;  %v2887_v46 = vpack.c.bf16 (!%p2743_p4), %v5280_v57, %v4003_v9  ;;  %v2919_v49 = vpack.c.bf16 (!%p2743_p4), %v4021_v15, %v4009_v11  ;;  %v2889_v1 = vpack.c.bf16 (!%p2743_p4), %v4012_v12, %v4000_v8  ;;  %v2921_v3 = vpack.c.bf16 (!%p2743_p4), %v4018_v14, %v4006_v10  ;;  %v5299_v53 = vld [vmem:[#allocation30_spill] sm:$0xff] (!%p2743_p4)  ;;  %v788_v60 = vld [vmem:[#allocation2 + $0x18] sm:$0xff] (!%p2743_p4)  ;;  %v789_v62 = vld [vmem:[#allocation2 + $0x20] sm:$0xff] (!%p2743_p4) }
 0x19f   : > { %2884 = vmatprep.subr.bf16.mxu0 (!%p2743_p4), %v2883_v42  ;;  %2916 = vmatprep.subr.bf16.mxu1 (!%p2743_p4), %v2915_v56  ;;  %v2891_v0 = vpack.c.bf16 (!%p2743_p4), %v4039_v21, %v4027_v17  ;;  %v2923_v2 = vpack.c.bf16 (!%p2743_p4), %v4045_v23, %v4033_v19  ;;  %v3773_v4 = vmov (!%p2743_p4), 0.0   ;;  %v2893_v5 = vpack.c.bf16 (!%p2743_p4), %v4036_v20, %v4024_v16  ;;  %v5282_v19 = vld [vmem:[#allocation15_spill] sm:$0xff] (!%p2743_p4)  ;;  %v5283_v21 = vld [vmem:[#allocation14_spill] sm:$0xff] (!%p2743_p4)  ;;  %v790_v63 = vld [vmem:[#allocation2 + $0x28] sm:$0xff] (!%p2743_p4) }
 0x1a0   : > { %2886 = vmatpush1.bf16.msra.mxu0 (!%p2743_p4), %v2885_v50  ;;  %2918 = vmatpush1.bf16.msra.mxu1 (!%p2743_p4), %v2917_v52  ;;  %v2925_v6 = vpack.c.bf16 (!%p2743_p4), %v4042_v22, %v4030_v18  ;;  %v2895_v7 = vpack.c.bf16 (!%p2743_p4), %v4063_v29, %v4051_v25  ;;  %v2927_v8 = vpack.c.bf16 (!%p2743_p4), %v4069_v31, %v4057_v27  ;;  %v5281_v18 = vld [vmem:[#allocation13_spill] sm:$0xff] (!%p2743_p4)  ;;  %v5284_v22 = vld [vmem:[#allocation16_spill] sm:$0xff] (!%p2743_p4)  ;;  %v5287_v27 = vld [vmem:[#allocation19_spill] sm:$0xff] (!%p2743_p4)  ;;  %v794_v13 = vlaneseq (!%p2743_p4) }
 0x1a1   : > { %2888 = vmatprep.subr.bf16.mxu0 (!%p2743_p4), %v2887_v46  ;;  %2920 = vmatprep.subr.bf16.mxu1 (!%p2743_p4), %v2919_v49  ;;  %v2897_v9 = vpack.c.bf16 (!%p2743_p4), %v4060_v28, %v4048_v24  ;;  %v2929_v10 = vpack.c.bf16 (!%p2743_p4), %v4066_v30, %v4054_v26  ;;  %v2899_v11 = vpack.c.bf16 (!%p2743_p4), %v4087_v37, %v4075_v33  ;;  %v5285_v24 = vld [vmem:[#allocation17_spill] sm:$0xff] (!%p2743_p4)  ;;  %v5288_v28 = vld [vmem:[#allocation23_spill] sm:$0xff] (!%p2743_p4)  ;;  %v5289_v30 = vld [vmem:[#allocation20_spill] sm:$0xff] (!%p2743_p4) }
 0x1a2   : > { %878 = vmatprep.mubr.f32.mxu0 (!%p2743_p4), %v3773_v4  ;;  %991 = vmatprep.mubr.f32.mxu1 (!%p2743_p4), %v3773_v4  ;;  %v2931_v12 = vpack.c.bf16 (!%p2743_p4), %v4093_v39, %v4081_v35  ;;  %v2901_v14 = vpack.c.bf16 (!%p2743_p4), %v4084_v36, %v4072_v32  ;;  %v2933_v15 = vpack.c.bf16 (!%p2743_p4), %v4090_v38, %v4078_v34  ;;  %v5286_v25 = vld [vmem:[#allocation21_spill] sm:$0xff] (!%p2743_p4)  ;;  %v5290_v32 = vld [vmem:[#allocation18_spill] sm:$0xff] (!%p2743_p4)  ;;  %v5294_v38 = vld [vmem:[#allocation27_spill] sm:$0xff] (!%p2743_p4)  ;;  %v795_v40 = vshrl.u32 (!%p2743_p4), %v794_v13, 7 }
 0x1a3   : > { %v2903_v16 = vpack.c.bf16 (!%p2743_p4), %v4111_v45, %v4099_v41  ;;  %v2935_v17 = vpack.c.bf16 (!%p2743_p4), %v4117_v47, %v4105_v43  ;;  %v2905_v20 = vpack.c.bf16 (!%p2743_p4), %v5282_v19, %v5281_v18  ;;  %v2937_v23 = vpack.c.bf16 (!%p2743_p4), %v5284_v22, %v5283_v21  ;;  %v5291_v33 = vld [vmem:[#allocation22_spill] sm:$0xff] (!%p2743_p4)  ;;  %v5292_v35 = vld [vmem:[#allocation25_spill] sm:$0xff] (!%p2743_p4)  ;;  %v5295_v39 = vld [vmem:[#allocation31_spill] sm:$0xff] (!%p2743_p4) }
 0x1a4   : > { %2890 = vmatpush1.bf16.msra.mxu0 (!%p2743_p4), %v2889_v1  ;;  %2922 = vmatpush1.bf16.msra.mxu1 (!%p2743_p4), %v2921_v3  ;;  %v2907_v26 = vpack.c.bf16 (!%p2743_p4), %v5286_v25, %v5285_v24  ;;  %v2939_v29 = vpack.c.bf16 (!%p2743_p4), %v5288_v28, %v5287_v27  ;;  %v2909_v31 = vpack.c.bf16 (!%p2743_p4), %v5289_v30, %v4120_v48  ;;  %v5293_v36 = vld [vmem:[#allocation29_spill] sm:$0xff] (!%p2743_p4)  ;;  %v5296_v43 = vld [vmem:[#allocation24_spill] sm:$0xff] (!%p2743_p4)  ;;  %v787_v54 = vld [vmem:[#allocation2 + $0x10] sm:$0xff] (!%p2743_p4)  ;;  %v796_v42 = vsub.s32 (!%p2743_p4), 0, %v795_v40 }
 0x1a5   : > { %2892 = vmatprep.subr.bf16.mxu0 %v2891_v0  ;;  %2924 = vmatprep.subr.bf16.mxu1 %v2923_v2  ;;  %v2941_v34 = vpack.c.bf16 %v5291_v33, %v5290_v32  ;;  %v2911_v37 = vpack.c.bf16 %v5293_v36, %v5292_v35  ;;  %v2943_v41 = vpack.c.bf16 %v5295_v39, %v5294_v38  ;;  %v5297_v45 = vld [vmem:[#allocation28_spill] sm:$0xff]  ;;  %v791_v59 = vld [vmem:[#allocation2 + $0x30] sm:$0xff]  ;;  %v792_v44 = vld [vmem:[#allocation2 + $0x38] sm:$0xff]  ;;  %v804_v56 = vsub.s32 2, %v795_v40 }
 0x1a6   : > { %v2913_v47 = vpack.c.bf16 %v5297_v45, %v5296_v43  ;;  %v2945_v55 = vpack.c.bf16 %v5299_v53, %v5298_v51  ;;  %v785_v48 = vld [vmem:[#allocation2] sm:$0xff]  ;;  %v800_v50 = vsub.s32 1, %v795_v40  ;;  %v808_v52 = vsub.s32 3, %v795_v40 }
 0x1a7   : > { %v4597_v57 = vrot.slane %v4364_v61, %v796_v42  ;;  %v4600_v46 = vrot.slane %v4364_v61, %v804_v56 }
 0x1a8   : > { %2894 = vmatpush1.bf16.msra.mxu0 %v2893_v5  ;;  %2926 = vmatpush1.bf16.msra.mxu1 %v2925_v6  ;;  %v4603_v49 = vrot.slane %v4364_v61, %v800_v50  ;;  %v4606_v1 = vrot.slane %v4364_v61, %v808_v52 }
 0x1a9   : > { %2896 = vmatprep.subr.bf16.mxu0 %v2895_v7  ;;  %2928 = vmatprep.subr.bf16.mxu1 %v2927_v8 }
 0x1ac   : > { %2898 = vmatpush1.bf16.msra.mxu0 %v2897_v9  ;;  %2930 = vmatpush1.bf16.msra.mxu1 %v2929_v10 }
 0x1ad   : > { %2900 = vmatprep.subr.bf16.mxu0 %v2899_v11  ;;  %2932 = vmatprep.subr.bf16.mxu1 %v2931_v12 }
 0x1b0   : > { %2902 = vmatpush1.bf16.msra.mxu0 %v2901_v14  ;;  %2934 = vmatpush1.bf16.msra.mxu1 %v2933_v15 }
 0x1b1   : > { %2904 = vmatprep.subr.bf16.mxu0 %v2903_v16  ;;  %2936 = vmatprep.subr.bf16.mxu1 %v2935_v17 }
 0x1b4   : > { %2906 = vmatpush1.bf16.msra.mxu0 %v2905_v20  ;;  %2938 = vmatpush1.bf16.msra.mxu1 %v2937_v23 }
 0x1b5   : > { %2908 = vmatprep.subr.bf16.mxu0 %v2907_v26  ;;  %2940 = vmatprep.subr.bf16.mxu1 %v2939_v29 }
 0x1b8   : > { %2910 = vmatpush1.bf16.msra.mxu0 %v2909_v31  ;;  %2942 = vmatpush1.bf16.msra.mxu1 %v2941_v34 }
 0x1b9   : > { %2912 = vmatprep.subr.bf16.mxu0 %v2911_v37  ;;  %2944 = vmatprep.subr.bf16.mxu1 %v2943_v41 }
 0x1bc   : > { %2914 = vmatpush1.bf16.msra.mxu0 %v2913_v47  ;;  %2946 = vmatpush1.bf16.msra.mxu1 %v2945_v55 }
 0x1bf   : > { %879 = vmatmul.mubr.f32.vlgmr.msra.gmra.mrb[0].mxu0 %v785_v48  ;;  %992 = vmatmul.mubr.f32.vlgmr.msra.gmra.mrb[0].mxu1 %v785_v48 }
 0x1c0   : > { %884 = vmatprep.mubr.f32.mxu0 %v3773_v4  ;;  %997 = vmatprep.mubr.f32.mxu1 %v3773_v4 }
 0x1c3   : > { %885 = vmatmul.mubr.f32.gmra.mrb[2].mxu0 %v786_v58  ;;  %998 = vmatmul.mubr.f32.gmra.mrb[2].mxu1 %v786_v58 }
 0x1c4   : > { %890 = vmatprep.mubr.f32.mxu0 %v3773_v4  ;;  %1003 = vmatprep.mubr.f32.mxu1 %v3773_v4 }
 0x1c7   : > { %891 = vmatmul.mubr.f32.gmra.mrb[4].mxu0 %v787_v54  ;;  %1004 = vmatmul.mubr.f32.gmra.mrb[4].mxu1 %v787_v54 }
 0x1c8   : > { %896 = vmatprep.mubr.f32.mxu0 %v3773_v4  ;;  %1009 = vmatprep.mubr.f32.mxu1 %v3773_v4 }
 0x1cb   : > { %897 = vmatmul.mubr.f32.gmra.mrb[6].mxu0 %v788_v60  ;;  %1010 = vmatmul.mubr.f32.gmra.mrb[6].mxu1 %v788_v60 }
 0x1cc   : > { %902 = vmatprep.mubr.f32.mxu0 %v3773_v4  ;;  %1015 = vmatprep.mubr.f32.mxu1 %v3773_v4 }
 0x1cf   : > { %903 = vmatmul.mubr.f32.gmra.mrb[8].mxu0 %v789_v62  ;;  %1016 = vmatmul.mubr.f32.gmra.mrb[8].mxu1 %v789_v62 }
 0x1d0   : > { %908 = vmatprep.mubr.f32.mxu0 %v3773_v4  ;;  %1021 = vmatprep.mubr.f32.mxu1 %v3773_v4 }
 0x1d3   : > { %909 = vmatmul.mubr.f32.gmra.mrb[10].mxu0 %v790_v63  ;;  %1022 = vmatmul.mubr.f32.gmra.mrb[10].mxu1 %v790_v63 }
 0x1d4   : > { %914 = vmatprep.mubr.f32.mxu0 %v3773_v4  ;;  %1027 = vmatprep.mubr.f32.mxu1 %v3773_v4 }
 0x1d7   : > { %915 = vmatmul.mubr.f32.gmra.mrb[12].mxu0 %v791_v59  ;;  %1028 = vmatmul.mubr.f32.gmra.mrb[12].mxu1 %v791_v59 }
 0x1d8   : > { %920 = vmatprep.mubr.f32.mxu0 %v3773_v4  ;;  %1033 = vmatprep.mubr.f32.mxu1 %v3773_v4 }
 0x1db   : > { %921 = vmatmul.mubr.f32.gmra.mrb[14].mxu0 %v792_v44  ;;  %1034 = vmatmul.mubr.f32.gmra.mrb[14].mxu1 %v792_v44 }
 0x292   : > { %v880_v3 = vpop.f32.mrb[0].mxu0  ;;  %v993_v0 = vpop.f32.mrb[0].mxu1 }
 0x293   : > { %v881_v2 = vadd.f32 %v880_v3, %v4597_v57  ;;  %v994_v4 = vadd.f32 %v993_v0, %v4600_v46  ;;  %v882_v5 = vpop.f32.mrb[1].mxu0  ;;  %v995_v6 = vpop.f32.mrb[1].mxu1 }
 0x294   : > { %v883_v7 = vadd.f32 %v882_v5, %v4603_v49  ;;  %v996_v8 = vadd.f32 %v995_v6, %v4606_v1 }
 0x295   : > { %1040 = vst [vmem:[#allocation3] sm:$0xff] %v881_v2  ;;  %1042 = vst [vmem:[#allocation3 + $0x10] sm:$0xff] %v994_v4 }
 0x296   : > { %1041 = vst [vmem:[#allocation3 + $0x8] sm:$0xff] %v883_v7  ;;  %1043 = vst [vmem:[#allocation3 + $0x18] sm:$0xff] %v996_v8  ;;  %v886_v9 = vpop.f32.mrb[2].mxu0  ;;  %v999_v10 = vpop.f32.mrb[2].mxu1 }
 0x297   : > { %v887_v61 = vadd.f32 %v886_v9, %v4597_v57  ;;  %v1000_v11 = vadd.f32 %v999_v10, %v4600_v46  ;;  %v888_v12 = vpop.f32.mrb[3].mxu0  ;;  %v1001_v14 = vpop.f32.mrb[3].mxu1 }
 0x298   : > { %v889_v15 = vadd.f32 %v888_v12, %v4603_v49  ;;  %v1002_v16 = vadd.f32 %v1001_v14, %v4606_v1 }
 0x299   : > { %1044 = vst [vmem:[#allocation3 + $0x20] sm:$0xff] %v887_v61  ;;  %1046 = vst [vmem:[#allocation3 + $0x30] sm:$0xff] %v1000_v11 }
 0x29a   : > { %1045 = vst [vmem:[#allocation3 + $0x28] sm:$0xff] %v889_v15  ;;  %1047 = vst [vmem:[#allocation3 + $0x38] sm:$0xff] %v1002_v16  ;;  %v892_v17 = vpop.f32.mrb[4].mxu0  ;;  %v1005_v18 = vpop.f32.mrb[4].mxu1 }
 0x29b   : > { %v893_v19 = vadd.f32 %v892_v17, %v4597_v57  ;;  %v1006_v20 = vadd.f32 %v1005_v18, %v4600_v46  ;;  %v894_v21 = vpop.f32.mrb[5].mxu0  ;;  %v1007_v22 = vpop.f32.mrb[5].mxu1 }
 0x29c   : > { %v895_v23 = vadd.f32 %v894_v21, %v4603_v49  ;;  %v1008_v24 = vadd.f32 %v1007_v22, %v4606_v1 }
 0x29d   : > { %1048 = vst [vmem:[#allocation3 + $0x40] sm:$0xff] %v893_v19  ;;  %1050 = vst [vmem:[#allocation3 + $0x50] sm:$0xff] %v1006_v20 }
 0x29e   : > { %1049 = vst [vmem:[#allocation3 + $0x48] sm:$0xff] %v895_v23  ;;  %1051 = vst [vmem:[#allocation3 + $0x58] sm:$0xff] %v1008_v24  ;;  %v898_v25 = vpop.f32.mrb[6].mxu0  ;;  %v1011_v26 = vpop.f32.mrb[6].mxu1 }
 0x29f   : > { %v899_v27 = vadd.f32 %v898_v25, %v4597_v57  ;;  %v1012_v28 = vadd.f32 %v1011_v26, %v4600_v46  ;;  %v900_v29 = vpop.f32.mrb[7].mxu0  ;;  %v1013_v30 = vpop.f32.mrb[7].mxu1 }
 0x2a0   : > { %v901_v31 = vadd.f32 %v900_v29, %v4603_v49  ;;  %v1014_v32 = vadd.f32 %v1013_v30, %v4606_v1 }
 0x2a1   : > { %1052 = vst [vmem:[#allocation3 + $0x60] sm:$0xff] %v899_v27  ;;  %1054 = vst [vmem:[#allocation3 + $0x70] sm:$0xff] %v1012_v28 }
 0x2a2   : > { %1053 = vst [vmem:[#allocation3 + $0x68] sm:$0xff] %v901_v31  ;;  %1055 = vst [vmem:[#allocation3 + $0x78] sm:$0xff] %v1014_v32  ;;  %v904_v33 = vpop.f32.mrb[8].mxu0  ;;  %v1017_v34 = vpop.f32.mrb[8].mxu1 }
 0x2a3   : > { %v905_v35 = vadd.f32 %v904_v33, %v4597_v57  ;;  %v1018_v36 = vadd.f32 %v1017_v34, %v4600_v46  ;;  %v906_v37 = vpop.f32.mrb[9].mxu0  ;;  %v1019_v38 = vpop.f32.mrb[9].mxu1 }
 0x2a4   : > { %v907_v39 = vadd.f32 %v906_v37, %v4603_v49  ;;  %v1020_v41 = vadd.f32 %v1019_v38, %v4606_v1 }
 0x2a5   : > { %1056 = vst [vmem:[#allocation3 + $0x80] sm:$0xff] %v905_v35  ;;  %1058 = vst [vmem:[#allocation3 + $0x90] sm:$0xff] %v1018_v36 }
 0x2a6   : > { %1057 = vst [vmem:[#allocation3 + $0x88] sm:$0xff] %v907_v39  ;;  %1059 = vst [vmem:[#allocation3 + $0x98] sm:$0xff] %v1020_v41  ;;  %v910_v43 = vpop.f32.mrb[10].mxu0  ;;  %v1023_v45 = vpop.f32.mrb[10].mxu1 }
 0x2a7   : > { %v911_v47 = vadd.f32 %v910_v43, %v4597_v57  ;;  %v1024_v51 = vadd.f32 %v1023_v45, %v4600_v46  ;;  %v912_v53 = vpop.f32.mrb[11].mxu0  ;;  %v1025_v55 = vpop.f32.mrb[11].mxu1 }
 0x2a8   : > { %v913_v48 = vadd.f32 %v912_v53, %v4603_v49  ;;  %v1026_v58 = vadd.f32 %v1025_v55, %v4606_v1 }
 0x2a9   : > { %1060 = vst [vmem:[#allocation3 + $0xa0] sm:$0xff] %v911_v47  ;;  %1062 = vst [vmem:[#allocation3 + $0xb0] sm:$0xff] %v1024_v51 }
 0x2aa   : > { %1061 = vst [vmem:[#allocation3 + $0xa8] sm:$0xff] %v913_v48  ;;  %1063 = vst [vmem:[#allocation3 + $0xb8] sm:$0xff] %v1026_v58  ;;  %v916_v54 = vpop.f32.mrb[12].mxu0  ;;  %v1029_v60 = vpop.f32.mrb[12].mxu1 }
 0x2ab   : > { %v917_v62 = vadd.f32 %v916_v54, %v4597_v57  ;;  %v1030_v63 = vadd.f32 %v1029_v60, %v4600_v46  ;;  %v918_v59 = vpop.f32.mrb[13].mxu0  ;;  %v1031_v44 = vpop.f32.mrb[13].mxu1 }
 0x2ac   : > { %v919_v13 = vadd.f32 %v918_v59, %v4603_v49  ;;  %v1032_v40 = vadd.f32 %v1031_v44, %v4606_v1 }
 0x2ad   : > { %1064 = vst [vmem:[#allocation3 + $0xc0] sm:$0xff] %v917_v62  ;;  %1066 = vst [vmem:[#allocation3 + $0xd0] sm:$0xff] %v1030_v63 }
 0x2ae   : > { %1065 = vst [vmem:[#allocation3 + $0xc8] sm:$0xff] %v919_v13  ;;  %1067 = vst [vmem:[#allocation3 + $0xd8] sm:$0xff] %v1032_v40  ;;  %v922_v42 = vpop.f32.mrb[14].mxu0  ;;  %v1035_v56 = vpop.f32.mrb[14].mxu1 }
 0x2af   : > { %v923_v50 = vadd.f32 %v922_v42, %v4597_v57  ;;  %v1036_v52 = vadd.f32 %v1035_v56, %v4600_v46  ;;  %v924_v3 = vpop.f32.mrb[15].mxu0  ;;  %v1037_v0 = vpop.f32.mrb[15].mxu1 }
 0x2b0   : > { %v925_v2 = vadd.f32 %v924_v3, %v4603_v49  ;;  %v1038_v4 = vadd.f32 %v1037_v0, %v4606_v1 }
 0x2b1   : > { %1068 = vst [vmem:[#allocation3 + $0xe0] sm:$0xff] %v923_v50  ;;  %1070 = vst [vmem:[#allocation3 + $0xf0] sm:$0xff] %v1036_v52 }
 0x2b2   : > { %1069 = vst [vmem:[#allocation3 + $0xe8] sm:$0xff] %v925_v2  ;;  %1071 = vst [vmem:[#allocation3 + $0xf8] sm:$0xff] %v1038_v4 }
 0x2b3 PF: > { %v5300_v5 = vld [vmem:[#allocation33_spill] sm:$0xff]  ;;  %v5302_v8 = vld [vmem:[#allocation32_spill] sm:$0xff]  ;;  %v5306_v49 = vld [vmem:[#allocation35_spill] sm:$0xff]  ;;  %v3774_v31 = vmov 0.0   ;;  %p2744_p8 = scmp.ne.s32.totalorder %s3758_s24, 1 }
 0x2b4   : > { %v5301_v6 = vld [vmem:[#allocation37_spill] sm:$0xff]  ;;  %v5303_v9 = vld [vmem:[#allocation36_spill] sm:$0xff]  ;;  %v5307_v11 = vld [vmem:[#allocation39_spill] sm:$0xff]  ;;  %1143 = vmatprep.mubr.f32.mxu0 %v3774_v31  ;;  %1214 = vmatprep.mubr.f32.mxu1 %v3774_v31 }
 0x2b5   : > { %v4642_v7 = vpack.c.bf16 %v5301_v6, %v5300_v5  ;;  %v4646_v57 = vpack.c.bf16 %v5303_v9, %v5302_v8  ;;  %v5304_v46 = vld [vmem:[#allocation41_spill] sm:$0xff]  ;;  %v4654_v1 = vpack.c.bf16 %v5307_v11, %v5306_v49  ;;  %v5308_v12 = vld [vmem:[#allocation34_spill] sm:$0xff]  ;;  %v5310_v16 = vld [vmem:[#allocation43_spill] sm:$0xff] }
 0x2b6   : > { %v5305_v10 = vld [vmem:[#allocation45_spill] sm:$0xff]  ;;  %v5309_v14 = vld [vmem:[#allocation38_spill] sm:$0xff]  ;;  %v5311_v17 = vld [vmem:[#allocation47_spill] sm:$0xff] }
 0x2b7   : > { %v4650_v61 = vpack.c.bf16 %v5305_v10, %v5304_v46  ;;  %v4658_v15 = vpack.c.bf16 %v5309_v14, %v5308_v12  ;;  %2948 = vmatprep.subr.bf16.mxu0 %v4642_v7  ;;  %v4663_v18 = vpack.c.bf16 %v5311_v17, %v5310_v16  ;;  %v5312_v19 = vld [vmem:[#allocation40_spill] sm:$0xff]  ;;  %2980 = vmatprep.subr.bf16.mxu1 %v4654_v1  ;;  %v5314_v22 = vld [vmem:[#allocation49_spill] sm:$0xff]  ;;  %v5316_v25 = vld [vmem:[#allocation42_spill] sm:$0xff] }
 0x2b8   : > { %2950 = vmatpush1.bf16.msra.mxu0 %v4646_v57  ;;  %v5313_v20 = vld [vmem:[#allocation44_spill] sm:$0xff]  ;;  %v5315_v23 = vld [vmem:[#allocation53_spill] sm:$0xff]  ;;  %v5317_v26 = vld [vmem:[#allocation46_spill] sm:$0xff] }
 0x2b9   : > { %v4668_v21 = vpack.c.bf16 %v5313_v20, %v5312_v19  ;;  %2952 = vmatprep.subr.bf16.mxu0 %v4650_v61  ;;  %2982 = vmatpush1.bf16.msra.mxu1 %v4658_v15  ;;  %v4675_v24 = vpack.c.bf16 %v5315_v23, %v5314_v22  ;;  %v4679_v27 = vpack.c.bf16 %v5317_v26, %v5316_v25  ;;  %v5318_v28 = vld [vmem:[#allocation51_spill] sm:$0xff]  ;;  %v5320_v32 = vld [vmem:[#allocation48_spill] sm:$0xff]  ;;  %v5322_v35 = vld [vmem:[#allocation57_spill] sm:$0xff] }
 0x2ba   : > { %2984 = vmatprep.subr.bf16.mxu1 %v4663_v18  ;;  %v5319_v29 = vld [vmem:[#allocation55_spill] sm:$0xff]  ;;  %v5321_v33 = vld [vmem:[#allocation52_spill] sm:$0xff]  ;;  %v5323_v36 = vld [vmem:[#allocation61_spill] sm:$0xff] }
 0x2bb   : > { %v4684_v30 = vpack.c.bf16 %v5319_v29, %v5318_v28  ;;  %v4690_v34 = vpack.c.bf16 %v5321_v33, %v5320_v32  ;;  %v4696_v37 = vpack.c.bf16 %v5323_v36, %v5322_v35  ;;  %v5324_v38 = vld [vmem:[#allocation50_spill] sm:$0xff]  ;;  %v5326_v43 = vld [vmem:[#allocation59_spill] sm:$0xff]  ;;  %v5328_v51 = vld [vmem:[#allocation56_spill] sm:$0xff] }
 0x2bc   : > { %2954 = vmatpush1.bf16.msra.mxu0 %v4668_v21  ;;  %v5325_v39 = vld [vmem:[#allocation54_spill] sm:$0xff]  ;;  %v5327_v45 = vld [vmem:[#allocation63_spill] sm:$0xff]  ;;  %v5329_v53 = vld [vmem:[#allocation60_spill] sm:$0xff] }
 0x2bd   : > { %2956 = vmatprep.subr.bf16.mxu0 %v4675_v24  ;;  %2986 = vmatpush1.bf16.msra.mxu1 %v4679_v27  ;;  %v4700_v41 = vpack.c.bf16 %v5325_v39, %v5324_v38  ;;  %v4705_v47 = vpack.c.bf16 %v5327_v45, %v5326_v43  ;;  %v4711_v55 = vpack.c.bf16 %v5329_v53, %v5328_v51  ;;  %v5330_v48 = vld [vmem:[#allocation65_spill] sm:$0xff]  ;;  %v5332_v60 = vld [vmem:[#allocation58_spill] sm:$0xff]  ;;  %v5334_v59 = vld [vmem:[#allocation67_spill] sm:$0xff] }
 0x2be   : > { %2988 = vmatprep.subr.bf16.mxu1 %v4684_v30  ;;  %v5331_v58 = vld [vmem:[#allocation69_spill] sm:$0xff]  ;;  %v5333_v62 = vld [vmem:[#allocation62_spill] sm:$0xff]  ;;  %v5335_v44 = vld [vmem:[#allocation71_spill] sm:$0xff] }
 0x2bf   : > { %v4717_v54 = vpack.c.bf16 %v5331_v58, %v5330_v48  ;;  %v4721_v63 = vpack.c.bf16 %v5333_v62, %v5332_v60  ;;  %v4726_v13 = vpack.c.bf16 %v5335_v44, %v5334_v59  ;;  %v5336_v40 = vld [vmem:[#allocation64_spill] sm:$0xff]  ;;  %v5338_v50 = vld [vmem:[#allocation73_spill] sm:$0xff]  ;;  %v5340_v0 = vld [vmem:[#allocation66_spill] sm:$0xff] }
 0x2c0   : > { %2958 = vmatpush1.bf16.msra.mxu0 %v4690_v34  ;;  %v5337_v42 = vld [vmem:[#allocation68_spill] sm:$0xff]  ;;  %v5339_v52 = vld [vmem:[#allocation77_spill] sm:$0xff]  ;;  %v5341_v2 = vld [vmem:[#allocation70_spill] sm:$0xff] }
 0x2c1   : > { %2960 = vmatprep.subr.bf16.mxu0 %v4696_v37  ;;  %2990 = vmatpush1.bf16.msra.mxu1 %v4700_v41  ;;  %v4731_v56 = vpack.c.bf16 %v5337_v42, %v5336_v40  ;;  %v4737_v3 = vpack.c.bf16 %v5339_v52, %v5338_v50  ;;  %v4741_v4 = vpack.c.bf16 %v5341_v2, %v5340_v0  ;;  %v5342_v5 = vld [vmem:[#allocation75_spill] sm:$0xff]  ;;  %v5344_v9 = vld [vmem:[#allocation72_spill] sm:$0xff]  ;;  %v5346_v49 = vld [vmem:[#allocation81_spill] sm:$0xff] }
 0x2c2   : > { %2992 = vmatprep.subr.bf16.mxu1 %v4705_v47  ;;  %v5343_v6 = vld [vmem:[#allocation79_spill] sm:$0xff]  ;;  %v5345_v46 = vld [vmem:[#allocation76_spill] sm:$0xff]  ;;  %v5347_v11 = vld [vmem:[#allocation85_spill] sm:$0xff] }
 0x2c3   : > { %v4746_v8 = vpack.c.bf16 %v5343_v6, %v5342_v5  ;;  %v4751_v10 = vpack.c.bf16 %v5345_v46, %v5344_v9  ;;  %v4757_v12 = vpack.c.bf16 %v5347_v11, %v5346_v49  ;;  %v5348_v14 = vld [vmem:[#allocation74_spill] sm:$0xff]  ;;  %v5350_v19 = vld [vmem:[#allocation83_spill] sm:$0xff]  ;;  %v5352_v23 = vld [vmem:[#allocation80_spill] sm:$0xff] }
 0x2c4   : > { %2962 = vmatpush1.bf16.msra.mxu0 %v4711_v55  ;;  %v5349_v16 = vld [vmem:[#allocation78_spill] sm:$0xff]  ;;  %v5351_v20 = vld [vmem:[#allocation87_spill] sm:$0xff]  ;;  %v5353_v25 = vld [vmem:[#allocation84_spill] sm:$0xff] }
 0x2c5   : > { %2964 = vmatprep.subr.bf16.mxu0 %v4717_v54  ;;  %2994 = vmatpush1.bf16.msra.mxu1 %v4721_v63  ;;  %v4761_v17 = vpack.c.bf16 %v5349_v16, %v5348_v14  ;;  %v4766_v22 = vpack.c.bf16 %v5351_v20, %v5350_v19  ;;  %v4771_v26 = vpack.c.bf16 %v5353_v25, %v5352_v23  ;;  %v5354_v28 = vld [vmem:[#allocation89_spill] sm:$0xff]  ;;  %v5356_v33 = vld [vmem:[#allocation82_spill] sm:$0xff]  ;;  %v5358_v38 = vld [vmem:[#allocation91_spill] sm:$0xff] }
 0x2c6   : > { %2996 = vmatprep.subr.bf16.mxu1 %v4726_v13  ;;  %v5355_v29 = vld [vmem:[#allocation93_spill] sm:$0xff]  ;;  %v5357_v35 = vld [vmem:[#allocation86_spill] sm:$0xff]  ;;  %v5359_v39 = vld [vmem:[#allocation95_spill] sm:$0xff] }
 0x2c7   : > { %v4777_v32 = vpack.c.bf16 %v5355_v29, %v5354_v28  ;;  %v4781_v36 = vpack.c.bf16 %v5357_v35, %v5356_v33  ;;  %v4786_v43 = vpack.c.bf16 %v5359_v39, %v5358_v38  ;;  %v5360_v45 = vld [vmem:[#allocation88_spill] sm:$0xff]  ;;  %v5362_v48 = vld [vmem:[#allocation90_spill] sm:$0xff]  ;;  %v1075_v59 = vld [vmem:[#allocation3 + $0x8] sm:$0xff] }
 0x2c8   : > { %2966 = vmatpush1.bf16.msra.mxu0 %v4731_v56  ;;  %v5361_v51 = vld [vmem:[#allocation92_spill] sm:$0xff]  ;;  %v5363_v58 = vld [vmem:[#allocation94_spill] sm:$0xff]  ;;  %v1077_v46 = vld [vmem:[#allocation3 + $0x18] sm:$0xff] }
 0x2c9   : > { %2968 = vmatprep.subr.bf16.mxu0 %v4737_v3  ;;  %2998 = vmatpush1.bf16.msra.mxu1 %v4741_v4  ;;  %v4791_v53 = vpack.c.bf16 %v5361_v51, %v5360_v45  ;;  %v4797_v60 = vpack.c.bf16 %v5363_v58, %v5362_v48  ;;  %v1074_v62 = vld [vmem:[#allocation3] sm:$0xff]  ;;  %v1076_v40 = vld [vmem:[#allocation3 + $0x10] sm:$0xff] }
 0x2ca   : > { %3000 = vmatprep.subr.bf16.mxu1 %v4746_v8  ;;  %v1247_v58 = vld [vmem:[#allocation3 + $0x20] sm:$0xff] }
 0x2cc   : > { %2970 = vmatpush1.bf16.msra.mxu0 %v4751_v10 }
 0x2cd   : > { %2972 = vmatprep.subr.bf16.mxu0 %v4757_v12  ;;  %3002 = vmatpush1.bf16.msra.mxu1 %v4761_v17 }
 0x2ce   : > { %3004 = vmatprep.subr.bf16.mxu1 %v4766_v22 }
 0x2d0   : > { %2974 = vmatpush1.bf16.msra.mxu0 %v4771_v26 }
 0x2d1   : > { %2976 = vmatprep.subr.bf16.mxu0 %v4777_v32  ;;  %3006 = vmatpush1.bf16.msra.mxu1 %v4781_v36 }
 0x2d2   : > { %3008 = vmatprep.subr.bf16.mxu1 %v4786_v43 }
 0x2d4   : > { %2978 = vmatpush1.bf16.msra.mxu0 %v4791_v53 }
 0x2d5   : > { %3010 = vmatpush1.bf16.msra.mxu1 %v4797_v60  ;;  %3012 = vmatprep.subr.bf16.mxu0 %v4642_v7 }
 0x2d6   : > { %3044 = vmatprep.subr.bf16.mxu1 %v4654_v1 }
 0x2d7   : > { %1144 = vmatmul.mubr.f32.vlgmr.msra.gmra.mrb[0].mxu0 %v3774_v31 }
 0x2d8   : > { %1215 = vmatmul.mubr.f32.vlgmr.msra.gmra.mrb[0].mxu1 %v3774_v31  ;;  %3014 = vmatpush1.bf16.msra.mxu0 %v4646_v57 }
 0x2d9   : > { %3046 = vmatpush1.bf16.msra.mxu1 %v4658_v15  ;;  %3016 = vmatprep.subr.bf16.mxu0 %v4650_v61 }
 0x2da   : > { %3048 = vmatprep.subr.bf16.mxu1 %v4663_v18  ;;  %1316 = vmatprep.mubr.f32.mxu0 %v3774_v31 }
 0x2db   : > { %1387 = vmatprep.mubr.f32.mxu1 %v3774_v31 }
 0x2dc   : > { %3018 = vmatpush1.bf16.msra.mxu0 %v4668_v21 }
 0x2dd   : > { %3050 = vmatpush1.bf16.msra.mxu1 %v4679_v27  ;;  %3020 = vmatprep.subr.bf16.mxu0 %v4675_v24 }
 0x2de   : > { %3052 = vmatprep.subr.bf16.mxu1 %v4684_v30 }
 0x2e0   : > { %3022 = vmatpush1.bf16.msra.mxu0 %v4690_v34 }
 0x2e1   : > { %3054 = vmatpush1.bf16.msra.mxu1 %v4700_v41  ;;  %3024 = vmatprep.subr.bf16.mxu0 %v4696_v37 }
 0x2e2   : > { %3056 = vmatprep.subr.bf16.mxu1 %v4705_v47 }
 0x2e4   : > { %3026 = vmatpush1.bf16.msra.mxu0 %v4711_v55 }
 0x2e5   : > { %3058 = vmatpush1.bf16.msra.mxu1 %v4721_v63  ;;  %3028 = vmatprep.subr.bf16.mxu0 %v4717_v54 }
 0x2e6   : > { %3060 = vmatprep.subr.bf16.mxu1 %v4726_v13 }
 0x2e8   : > { %3030 = vmatpush1.bf16.msra.mxu0 %v4731_v56 }
 0x2e9   : > { %3062 = vmatpush1.bf16.msra.mxu1 %v4741_v4  ;;  %3032 = vmatprep.subr.bf16.mxu0 %v4737_v3 }
 0x2ea   : > { %3064 = vmatprep.subr.bf16.mxu1 %v4746_v8 }
 0x2ec   : > { %3034 = vmatpush1.bf16.msra.mxu0 %v4751_v10 }
 0x2ed   : > { %3066 = vmatpush1.bf16.msra.mxu1 %v4761_v17  ;;  %3036 = vmatprep.subr.bf16.mxu0 %v4757_v12 }
 0x2ee   : > { %3068 = vmatprep.subr.bf16.mxu1 %v4766_v22 }
 0x2f0   : > { %3038 = vmatpush1.bf16.msra.mxu0 %v4771_v26 }
 0x2f1   : > { %3070 = vmatpush1.bf16.msra.mxu1 %v4781_v36  ;;  %3040 = vmatprep.subr.bf16.mxu0 %v4777_v32 }
 0x2f2   : > { %3072 = vmatprep.subr.bf16.mxu1 %v4786_v43 }
 0x2f4   : > { %3042 = vmatpush1.bf16.msra.mxu0 %v4791_v53 }
 0x2f5   : > { %3074 = vmatpush1.bf16.msra.mxu1 %v4797_v60  ;;  %3076 = vmatprep.subr.bf16.mxu0 %v4642_v7 }
 0x2f6   : > { %3108 = vmatprep.subr.bf16.mxu1 %v4654_v1 }
 0x3aa   : > { %v1145_v44 = vpop.f32.mrb[0].mxu0 }
 0x3ab   : > { %v1221_v42 = vadd.f32 %v1145_v44, %v1074_v62  ;;  %v1147_v50 = vpop.f32.mrb[1].mxu0  ;;  %v1216_v52 = vpop.f32.mrb[0].mxu1  ;;  %v1248_v62 = vld [vmem:[#allocation3 + $0x28] sm:$0xff] }
 0x3ac   : > { %v1222_v0 = vadd.f32 %v1147_v50, %v1075_v59  ;;  %v1218_v2 = vpop.f32.mrb[1].mxu1  ;;  %v1223_v6 = vadd.f32 %v1216_v52, %v1076_v40  ;;  %v1249_v52 = vld [vmem:[#allocation3 + $0x30] sm:$0xff] }
 0x3ad   : > { %v1225_v5 = vmul.f32 0.5, %v1221_v42  ;;  %v1224_v49 = vadd.f32 %v1218_v2, %v1077_v46 }
 0x3ae   : > { %v1229_v9 = vmul.f32 0.5, %v1222_v0 }
 0x3af   : > { %3572 = vtanh.f32 %v1225_v5  ;;  %v1234_v11 = vmul.f32 0.5, %v1224_v49 }
 0x3b0   : > { %3574 = vtanh.f32 %v1229_v9  ;;  %v1250_v9 = vld [vmem:[#allocation3 + $0x38] sm:$0xff] }
 0x3b1   : > { %3576 = vtanh.f32 %v1223_v6 }
 0x3b2   : > { %3578 = vtanh.f32 %v1234_v11 }
 0x3b9   : > { %v3573_v14 = vpop.eup %3572 }
 0x3ba   : > { %v3575_v16 = vpop.eup %3574  ;;  %v1227_v19 = vmul.f32 0.5, %v3573_v14 }
 0x3bb   : > { %v3577_v20 = vpop.eup %3576  ;;  %v1231_v23 = vmul.f32 0.5, %v3575_v16 }
 0x3bc   : > { %v1228_v25 = vadd.f32 0.5, %v1227_v19  ;;  %v3579_v38 = vpop.eup %3578 }
 0x3bd   : > { %v1232_v28 = vadd.f32 0.5, %v1231_v23  ;;  %v1236_v39 = vmul.f32 0.5, %v3579_v38 }
 0x3be   : > { %v1240_v29 = vmul.f32 %v3577_v20, %v1228_v25 }
 0x3bf   : > { %v1239_v33 = vmul.f32 0.0, %v1232_v28  ;;  %v1237_v45 = vadd.f32 0.5, %v1236_v39 }
 0x3c1   : > { %v4840_v35 = vadd.f32 %v1240_v29, %v1239_v33 }
 0x3c3   : > { %3580 = vtanh.f32 %v4840_v35 }
 0x3cd   : > { %v3581_v51 = vpop.eup %3580 }
 0x3ce   : > { %v1243_v48 = vmul.f32 %v3581_v51, %v1237_v45 }
 0x3d0   : > { %1246 = vst [vmem:[#allocation2] sm:$0xff] %v1243_v48  ;;  %1317 = vmatmul.mubr.f32.vlgmr.msra.gmra.mrb[2].mxu0 %v1243_v48  ;;  %1388 = vmatmul.mubr.f32.vlgmr.msra.gmra.mrb[2].mxu1 %v1243_v48 }
 0x3d1   : > { %3078 = vmatpush1.bf16.msra.mxu0 %v4646_v57  ;;  %3110 = vmatpush1.bf16.msra.mxu1 %v4658_v15 }
 0x3d2   : > { %3080 = vmatprep.subr.bf16.mxu0 %v4650_v61  ;;  %3112 = vmatprep.subr.bf16.mxu1 %v4663_v18 }
 0x3d3   : > { %1489 = vmatprep.mubr.f32.mxu0 %v3774_v31  ;;  %1560 = vmatprep.mubr.f32.mxu1 %v3774_v31 }
 0x3d5   : > { %3082 = vmatpush1.bf16.msra.mxu0 %v4668_v21  ;;  %3114 = vmatpush1.bf16.msra.mxu1 %v4679_v27 }
 0x3d6   : > { %3084 = vmatprep.subr.bf16.mxu0 %v4675_v24  ;;  %3116 = vmatprep.subr.bf16.mxu1 %v4684_v30 }
 0x3d9   : > { %3086 = vmatpush1.bf16.msra.mxu0 %v4690_v34  ;;  %3118 = vmatpush1.bf16.msra.mxu1 %v4700_v41 }
 0x3da   : > { %3088 = vmatprep.subr.bf16.mxu0 %v4696_v37  ;;  %3120 = vmatprep.subr.bf16.mxu1 %v4705_v47 }
 0x3dd   : > { %3090 = vmatpush1.bf16.msra.mxu0 %v4711_v55  ;;  %3122 = vmatpush1.bf16.msra.mxu1 %v4721_v63 }
 0x3de   : > { %3092 = vmatprep.subr.bf16.mxu0 %v4717_v54  ;;  %3124 = vmatprep.subr.bf16.mxu1 %v4726_v13 }
 0x3e1   : > { %3094 = vmatpush1.bf16.msra.mxu0 %v4731_v56  ;;  %3126 = vmatpush1.bf16.msra.mxu1 %v4741_v4 }
 0x3e2   : > { %3096 = vmatprep.subr.bf16.mxu0 %v4737_v3  ;;  %3128 = vmatprep.subr.bf16.mxu1 %v4746_v8 }
 0x3e5   : > { %3098 = vmatpush1.bf16.msra.mxu0 %v4751_v10  ;;  %3130 = vmatpush1.bf16.msra.mxu1 %v4761_v17 }
 0x3e6   : > { %3100 = vmatprep.subr.bf16.mxu0 %v4757_v12  ;;  %3132 = vmatprep.subr.bf16.mxu1 %v4766_v22 }
 0x3e9   : > { %3102 = vmatpush1.bf16.msra.mxu0 %v4771_v26  ;;  %3134 = vmatpush1.bf16.msra.mxu1 %v4781_v36 }
 0x3ea   : > { %3104 = vmatprep.subr.bf16.mxu0 %v4777_v32  ;;  %3136 = vmatprep.subr.bf16.mxu1 %v4786_v43 }
 0x3ed   : > { %3106 = vmatpush1.bf16.msra.mxu0 %v4791_v53  ;;  %3138 = vmatpush1.bf16.msra.mxu1 %v4797_v60 }
 0x3ee   : > { %3140 = vmatprep.subr.bf16.mxu0 %v4642_v7  ;;  %3172 = vmatprep.subr.bf16.mxu1 %v4654_v1 }
 0x4a3   : > { %v1318_v59 = vpop.f32.mrb[2].mxu0  ;;  %v1389_v44 = vpop.f32.mrb[2].mxu1 }
 0x4a4   : > { %v1394_v40 = vadd.f32 %v1318_v59, %v1247_v58  ;;  %v1320_v42 = vpop.f32.mrb[3].mxu0  ;;  %v1391_v50 = vpop.f32.mrb[3].mxu1  ;;  %v1396_v6 = vadd.f32 %v1389_v44, %v1249_v52  ;;  %v1421_v58 = vld [vmem:[#allocation3 + $0x48] sm:$0xff] }
 0x4a5   : > { %v1395_v0 = vadd.f32 %v1320_v42, %v1248_v62  ;;  %v1397_v46 = vadd.f32 %v1391_v50, %v1250_v9  ;;  %v1422_v50 = vld [vmem:[#allocation3 + $0x50] sm:$0xff] }
 0x4a6   : > { %v1398_v2 = vmul.f32 0.5, %v1394_v40 }
 0x4a7   : > { %v1402_v5 = vmul.f32 0.5, %v1395_v0  ;;  %v1407_v49 = vmul.f32 0.5, %v1397_v46 }
 0x4a8   : > { %3582 = vtanh.f32 %v1398_v2 }
 0x4a9   : > { %3584 = vtanh.f32 %v1402_v5 }
 0x4aa   : > { %3586 = vtanh.f32 %v1396_v6  ;;  %v1423_v6 = vld [vmem:[#allocation3 + $0x58] sm:$0xff] }
 0x4ab   : > { %3588 = vtanh.f32 %v1407_v49 }
 0x4b2   : > { %v3583_v11 = vpop.eup %3582 }
 0x4b3   : > { %v3585_v14 = vpop.eup %3584  ;;  %v1400_v16 = vmul.f32 0.5, %v3583_v11 }
 0x4b4   : > { %v1404_v19 = vmul.f32 0.5, %v3585_v14  ;;  %v3587_v23 = vpop.eup %3586 }
 0x4b5   : > { %v1401_v20 = vadd.f32 0.5, %v1400_v16  ;;  %v3589_v38 = vpop.eup %3588 }
 0x4b6   : > { %v1405_v25 = vadd.f32 0.5, %v1404_v19  ;;  %v1409_v39 = vmul.f32 0.5, %v3589_v38 }
 0x4b7   : > { %v1413_v28 = vmul.f32 %v3587_v23, %v1401_v20 }
 0x4b8   : > { %v1412_v29 = vmul.f32 %v1405_v25, %v4840_v35  ;;  %v1410_v45 = vadd.f32 0.5, %v1409_v39  ;;  %v1420_v35 = vld [vmem:[#allocation3 + $0x40] sm:$0xff] }
 0x4ba   : > { %v4878_v33 = vadd.f32 %v1413_v28, %v1412_v29 }
 0x4bc   : > { %3590 = vtanh.f32 %v4878_v33 }
 0x4c6   : > { %v3591_v51 = vpop.eup %3590 }
 0x4c7   : > { %v1416_v48 = vmul.f32 %v3591_v51, %v1410_v45 }
 0x4c9   : > { %1419 = vst [vmem:[#allocation2 + $0x8] sm:$0xff] %v1416_v48  ;;  %1490 = vmatmul.mubr.f32.vlgmr.msra.gmra.mrb[4].mxu0 %v1416_v48  ;;  %1561 = vmatmul.mubr.f32.vlgmr.msra.gmra.mrb[4].mxu1 %v1416_v48 }
 0x4ca   : > { %3142 = vmatpush1.bf16.msra.mxu0 %v4646_v57  ;;  %3174 = vmatpush1.bf16.msra.mxu1 %v4658_v15 }
 0x4cb   : > { %3144 = vmatprep.subr.bf16.mxu0 %v4650_v61  ;;  %3176 = vmatprep.subr.bf16.mxu1 %v4663_v18 }
 0x4cc   : > { %1662 = vmatprep.mubr.f32.mxu0 %v3774_v31  ;;  %1733 = vmatprep.mubr.f32.mxu1 %v3774_v31 }
 0x4ce   : > { %3146 = vmatpush1.bf16.msra.mxu0 %v4668_v21  ;;  %3178 = vmatpush1.bf16.msra.mxu1 %v4679_v27 }
 0x4cf   : > { %3148 = vmatprep.subr.bf16.mxu0 %v4675_v24  ;;  %3180 = vmatprep.subr.bf16.mxu1 %v4684_v30 }
 0x4d2   : > { %3150 = vmatpush1.bf16.msra.mxu0 %v4690_v34  ;;  %3182 = vmatpush1.bf16.msra.mxu1 %v4700_v41 }
 0x4d3   : > { %3152 = vmatprep.subr.bf16.mxu0 %v4696_v37  ;;  %3184 = vmatprep.subr.bf16.mxu1 %v4705_v47 }
 0x4d6   : > { %3154 = vmatpush1.bf16.msra.mxu0 %v4711_v55  ;;  %3186 = vmatpush1.bf16.msra.mxu1 %v4721_v63 }
 0x4d7   : > { %3156 = vmatprep.subr.bf16.mxu0 %v4717_v54  ;;  %3188 = vmatprep.subr.bf16.mxu1 %v4726_v13 }
 0x4da   : > { %3158 = vmatpush1.bf16.msra.mxu0 %v4731_v56  ;;  %3190 = vmatpush1.bf16.msra.mxu1 %v4741_v4 }
 0x4db   : > { %3160 = vmatprep.subr.bf16.mxu0 %v4737_v3  ;;  %3192 = vmatprep.subr.bf16.mxu1 %v4746_v8 }
 0x4de   : > { %3162 = vmatpush1.bf16.msra.mxu0 %v4751_v10  ;;  %3194 = vmatpush1.bf16.msra.mxu1 %v4761_v17 }
 0x4df   : > { %3164 = vmatprep.subr.bf16.mxu0 %v4757_v12  ;;  %3196 = vmatprep.subr.bf16.mxu1 %v4766_v22 }
 0x4e2   : > { %3166 = vmatpush1.bf16.msra.mxu0 %v4771_v26  ;;  %3198 = vmatpush1.bf16.msra.mxu1 %v4781_v36 }
 0x4e3   : > { %3168 = vmatprep.subr.bf16.mxu0 %v4777_v32  ;;  %3200 = vmatprep.subr.bf16.mxu1 %v4786_v43 }
 0x4e6   : > { %3170 = vmatpush1.bf16.msra.mxu0 %v4791_v53  ;;  %3202 = vmatpush1.bf16.msra.mxu1 %v4797_v60 }
 0x4e7   : > { %3204 = vmatprep.subr.bf16.mxu0 %v4642_v7  ;;  %3236 = vmatprep.subr.bf16.mxu1 %v4654_v1 }
 0x59c   : > { %v1491_v62 = vpop.f32.mrb[4].mxu0  ;;  %v1562_v59 = vpop.f32.mrb[4].mxu1 }
 0x59d   : > { %v1567_v44 = vadd.f32 %v1491_v62, %v1420_v35  ;;  %v1493_v40 = vpop.f32.mrb[5].mxu0  ;;  %v1564_v42 = vpop.f32.mrb[5].mxu1  ;;  %v1569_v5 = vadd.f32 %v1562_v59, %v1422_v50  ;;  %v1594_v35 = vld [vmem:[#allocation3 + $0x68] sm:$0xff] }
 0x59e   : > { %v1568_v52 = vadd.f32 %v1493_v40, %v1421_v58  ;;  %v1570_v9 = vadd.f32 %v1564_v42, %v1423_v6  ;;  %v1595_v42 = vld [vmem:[#allocation3 + $0x70] sm:$0xff] }
 0x59f   : > { %v1571_v0 = vmul.f32 0.5, %v1567_v44 }
 0x5a0   : > { %v1575_v2 = vmul.f32 0.5, %v1568_v52  ;;  %v1580_v46 = vmul.f32 0.5, %v1570_v9 }
 0x5a1   : > { %3592 = vtanh.f32 %v1571_v0 }
 0x5a2   : > { %3594 = vtanh.f32 %v1575_v2 }
 0x5a3   : > { %3596 = vtanh.f32 %v1569_v5  ;;  %v1596_v5 = vld [vmem:[#allocation3 + $0x78] sm:$0xff] }
 0x5a4   : > { %3598 = vtanh.f32 %v1580_v46 }
 0x5ab   : > { %v3593_v49 = vpop.eup %3592 }
 0x5ac   : > { %v3595_v11 = vpop.eup %3594  ;;  %v1573_v14 = vmul.f32 0.5, %v3593_v49 }
 0x5ad   : > { %v1577_v16 = vmul.f32 0.5, %v3595_v11  ;;  %v3597_v20 = vpop.eup %3596 }
 0x5ae   : > { %v1574_v19 = vadd.f32 0.5, %v1573_v14  ;;  %v3599_v38 = vpop.eup %3598 }
 0x5af   : > { %v1578_v23 = vadd.f32 0.5, %v1577_v16  ;;  %v1582_v39 = vmul.f32 0.5, %v3599_v38 }
 0x5b0   : > { %v1586_v25 = vmul.f32 %v3597_v20, %v1574_v19 }
 0x5b1   : > { %v1585_v28 = vmul.f32 %v1578_v23, %v4878_v33  ;;  %v1583_v45 = vadd.f32 0.5, %v1582_v39  ;;  %v1593_v33 = vld [vmem:[#allocation3 + $0x60] sm:$0xff] }
 0x5b3   : > { %v4916_v29 = vadd.f32 %v1586_v25, %v1585_v28 }
 0x5b5   : > { %3600 = vtanh.f32 %v4916_v29 }
 0x5bf   : > { %v3601_v51 = vpop.eup %3600 }
 0x5c0   : > { %v1589_v48 = vmul.f32 %v3601_v51, %v1583_v45 }
 0x5c2   : > { %1592 = vst [vmem:[#allocation2 + $0x10] sm:$0xff] %v1589_v48  ;;  %1663 = vmatmul.mubr.f32.vlgmr.msra.gmra.mrb[6].mxu0 %v1589_v48  ;;  %1734 = vmatmul.mubr.f32.vlgmr.msra.gmra.mrb[6].mxu1 %v1589_v48 }
 0x5c3   : > { %3206 = vmatpush1.bf16.msra.mxu0 %v4646_v57  ;;  %3238 = vmatpush1.bf16.msra.mxu1 %v4658_v15 }
 0x5c4   : > { %3208 = vmatprep.subr.bf16.mxu0 %v4650_v61  ;;  %3240 = vmatprep.subr.bf16.mxu1 %v4663_v18 }
 0x5c5   : > { %1835 = vmatprep.mubr.f32.mxu0 %v3774_v31  ;;  %1906 = vmatprep.mubr.f32.mxu1 %v3774_v31 }
 0x5c7   : > { %3210 = vmatpush1.bf16.msra.mxu0 %v4668_v21  ;;  %3242 = vmatpush1.bf16.msra.mxu1 %v4679_v27 }
 0x5c8   : > { %3212 = vmatprep.subr.bf16.mxu0 %v4675_v24  ;;  %3244 = vmatprep.subr.bf16.mxu1 %v4684_v30 }
 0x5cb   : > { %3214 = vmatpush1.bf16.msra.mxu0 %v4690_v34  ;;  %3246 = vmatpush1.bf16.msra.mxu1 %v4700_v41 }
 0x5cc   : > { %3216 = vmatprep.subr.bf16.mxu0 %v4696_v37  ;;  %3248 = vmatprep.subr.bf16.mxu1 %v4705_v47 }
 0x5cf   : > { %3218 = vmatpush1.bf16.msra.mxu0 %v4711_v55  ;;  %3250 = vmatpush1.bf16.msra.mxu1 %v4721_v63 }
 0x5d0   : > { %3220 = vmatprep.subr.bf16.mxu0 %v4717_v54  ;;  %3252 = vmatprep.subr.bf16.mxu1 %v4726_v13 }
 0x5d3   : > { %3222 = vmatpush1.bf16.msra.mxu0 %v4731_v56  ;;  %3254 = vmatpush1.bf16.msra.mxu1 %v4741_v4 }
 0x5d4   : > { %3224 = vmatprep.subr.bf16.mxu0 %v4737_v3  ;;  %3256 = vmatprep.subr.bf16.mxu1 %v4746_v8 }
 0x5d7   : > { %3226 = vmatpush1.bf16.msra.mxu0 %v4751_v10  ;;  %3258 = vmatpush1.bf16.msra.mxu1 %v4761_v17 }
 0x5d8   : > { %3228 = vmatprep.subr.bf16.mxu0 %v4757_v12  ;;  %3260 = vmatprep.subr.bf16.mxu1 %v4766_v22 }
 0x5db   : > { %3230 = vmatpush1.bf16.msra.mxu0 %v4771_v26  ;;  %3262 = vmatpush1.bf16.msra.mxu1 %v4781_v36 }
 0x5dc   : > { %3232 = vmatprep.subr.bf16.mxu0 %v4777_v32  ;;  %3264 = vmatprep.subr.bf16.mxu1 %v4786_v43 }
 0x5df   : > { %3234 = vmatpush1.bf16.msra.mxu0 %v4791_v53  ;;  %3266 = vmatpush1.bf16.msra.mxu1 %v4797_v60 }
 0x5e0   : > { %3268 = vmatprep.subr.bf16.mxu0 %v4642_v7  ;;  %3300 = vmatprep.subr.bf16.mxu1 %v4654_v1 }
 0x695   : > { %v1664_v58 = vpop.f32.mrb[6].mxu0  ;;  %v1735_v62 = vpop.f32.mrb[6].mxu1 }
 0x696   : > { %v1740_v59 = vadd.f32 %v1664_v58, %v1593_v33  ;;  %v1666_v44 = vpop.f32.mrb[7].mxu0  ;;  %v1737_v40 = vpop.f32.mrb[7].mxu1  ;;  %v1742_v2 = vadd.f32 %v1735_v62, %v1595_v42  ;;  %v1767_v33 = vld [vmem:[#allocation3 + $0x88] sm:$0xff] }
 0x697   : > { %v1741_v50 = vadd.f32 %v1666_v44, %v1594_v35  ;;  %v1743_v6 = vadd.f32 %v1737_v40, %v1596_v5  ;;  %v1768_v40 = vld [vmem:[#allocation3 + $0x90] sm:$0xff] }
 0x698   : > { %v1744_v52 = vmul.f32 0.5, %v1740_v59 }
 0x699   : > { %v1748_v0 = vmul.f32 0.5, %v1741_v50  ;;  %v1753_v9 = vmul.f32 0.5, %v1743_v6 }
 0x69a   : > { %3602 = vtanh.f32 %v1744_v52 }
 0x69b   : > { %3604 = vtanh.f32 %v1748_v0 }
 0x69c   : > { %3606 = vtanh.f32 %v1742_v2  ;;  %v1769_v2 = vld [vmem:[#allocation3 + $0x98] sm:$0xff] }
 0x69d   : > { %3608 = vtanh.f32 %v1753_v9 }
 0x6a4   : > { %v3603_v46 = vpop.eup %3602 }
 0x6a5   : > { %v3605_v49 = vpop.eup %3604  ;;  %v1746_v11 = vmul.f32 0.5, %v3603_v46 }
 0x6a6   : > { %v1750_v14 = vmul.f32 0.5, %v3605_v49  ;;  %v3607_v19 = vpop.eup %3606 }
 0x6a7   : > { %v1747_v16 = vadd.f32 0.5, %v1746_v11  ;;  %v3609_v38 = vpop.eup %3608 }
 0x6a8   : > { %v1751_v20 = vadd.f32 0.5, %v1750_v14  ;;  %v1755_v39 = vmul.f32 0.5, %v3609_v38 }
 0x6a9   : > { %v1759_v23 = vmul.f32 %v3607_v19, %v1747_v16 }
 0x6aa   : > { %v1758_v25 = vmul.f32 %v1751_v20, %v4916_v29  ;;  %v1756_v45 = vadd.f32 0.5, %v1755_v39  ;;  %v1766_v29 = vld [vmem:[#allocation3 + $0x80] sm:$0xff] }
 0x6ac   : > { %v4954_v28 = vadd.f32 %v1759_v23, %v1758_v25 }
 0x6ae   : > { %3610 = vtanh.f32 %v4954_v28 }
 0x6b8   : > { %v3611_v51 = vpop.eup %3610 }
 0x6b9   : > { %v1762_v48 = vmul.f32 %v3611_v51, %v1756_v45 }
 0x6bb   : > { %1765 = vst [vmem:[#allocation2 + $0x18] sm:$0xff] %v1762_v48  ;;  %1836 = vmatmul.mubr.f32.vlgmr.msra.gmra.mrb[8].mxu0 %v1762_v48  ;;  %1907 = vmatmul.mubr.f32.vlgmr.msra.gmra.mrb[8].mxu1 %v1762_v48 }
 0x6bc   : > { %3270 = vmatpush1.bf16.msra.mxu0 %v4646_v57  ;;  %3302 = vmatpush1.bf16.msra.mxu1 %v4658_v15 }
 0x6bd   : > { %3272 = vmatprep.subr.bf16.mxu0 %v4650_v61  ;;  %3304 = vmatprep.subr.bf16.mxu1 %v4663_v18 }
 0x6be   : > { %2008 = vmatprep.mubr.f32.mxu0 %v3774_v31  ;;  %2079 = vmatprep.mubr.f32.mxu1 %v3774_v31 }
 0x6c0   : > { %3274 = vmatpush1.bf16.msra.mxu0 %v4668_v21  ;;  %3306 = vmatpush1.bf16.msra.mxu1 %v4679_v27 }
 0x6c1   : > { %3276 = vmatprep.subr.bf16.mxu0 %v4675_v24  ;;  %3308 = vmatprep.subr.bf16.mxu1 %v4684_v30 }
 0x6c4   : > { %3278 = vmatpush1.bf16.msra.mxu0 %v4690_v34  ;;  %3310 = vmatpush1.bf16.msra.mxu1 %v4700_v41 }
 0x6c5   : > { %3280 = vmatprep.subr.bf16.mxu0 %v4696_v37  ;;  %3312 = vmatprep.subr.bf16.mxu1 %v4705_v47 }
 0x6c8   : > { %3282 = vmatpush1.bf16.msra.mxu0 %v4711_v55  ;;  %3314 = vmatpush1.bf16.msra.mxu1 %v4721_v63 }
 0x6c9   : > { %3284 = vmatprep.subr.bf16.mxu0 %v4717_v54  ;;  %3316 = vmatprep.subr.bf16.mxu1 %v4726_v13 }
 0x6cc   : > { %3286 = vmatpush1.bf16.msra.mxu0 %v4731_v56  ;;  %3318 = vmatpush1.bf16.msra.mxu1 %v4741_v4 }
 0x6cd   : > { %3288 = vmatprep.subr.bf16.mxu0 %v4737_v3  ;;  %3320 = vmatprep.subr.bf16.mxu1 %v4746_v8 }
 0x6d0   : > { %3290 = vmatpush1.bf16.msra.mxu0 %v4751_v10  ;;  %3322 = vmatpush1.bf16.msra.mxu1 %v4761_v17 }
 0x6d1   : > { %3292 = vmatprep.subr.bf16.mxu0 %v4757_v12  ;;  %3324 = vmatprep.subr.bf16.mxu1 %v4766_v22 }
 0x6d4   : > { %3294 = vmatpush1.bf16.msra.mxu0 %v4771_v26  ;;  %3326 = vmatpush1.bf16.msra.mxu1 %v4781_v36 }
 0x6d5   : > { %3296 = vmatprep.subr.bf16.mxu0 %v4777_v32  ;;  %3328 = vmatprep.subr.bf16.mxu1 %v4786_v43 }
 0x6d8   : > { %3298 = vmatpush1.bf16.msra.mxu0 %v4791_v53  ;;  %3330 = vmatpush1.bf16.msra.mxu1 %v4797_v60 }
 0x6d9   : > { %3332 = vmatprep.subr.bf16.mxu0 %v4642_v7  ;;  %3364 = vmatprep.subr.bf16.mxu1 %v4654_v1 }
 0x78e   : > { %v1837_v35 = vpop.f32.mrb[8].mxu0  ;;  %v1908_v58 = vpop.f32.mrb[8].mxu1 }
 0x78f   : > { %v1913_v62 = vadd.f32 %v1837_v35, %v1766_v29  ;;  %v1839_v59 = vpop.f32.mrb[9].mxu0  ;;  %v1910_v44 = vpop.f32.mrb[9].mxu1  ;;  %v1915_v0 = vadd.f32 %v1908_v58, %v1768_v40  ;;  %v1940_v29 = vld [vmem:[#allocation3 + $0xa8] sm:$0xff] }
 0x790   : > { %v1914_v42 = vadd.f32 %v1839_v59, %v1767_v33  ;;  %v1916_v5 = vadd.f32 %v1910_v44, %v1769_v2  ;;  %v1941_v44 = vld [vmem:[#allocation3 + $0xb0] sm:$0xff] }
 0x791   : > { %v1917_v50 = vmul.f32 0.5, %v1913_v62 }
 0x792   : > { %v1921_v52 = vmul.f32 0.5, %v1914_v42  ;;  %v1926_v6 = vmul.f32 0.5, %v1916_v5 }
 0x793   : > { %3612 = vtanh.f32 %v1917_v50 }
 0x794   : > { %3614 = vtanh.f32 %v1921_v52 }
 0x795   : > { %3616 = vtanh.f32 %v1915_v0  ;;  %v1942_v0 = vld [vmem:[#allocation3 + $0xb8] sm:$0xff] }
 0x796   : > { %3618 = vtanh.f32 %v1926_v6 }
 0x79d   : > { %v3613_v9 = vpop.eup %3612 }
 0x79e   : > { %v3615_v46 = vpop.eup %3614  ;;  %v1919_v49 = vmul.f32 0.5, %v3613_v9 }
 0x79f   : > { %v1923_v11 = vmul.f32 0.5, %v3615_v46  ;;  %v3617_v16 = vpop.eup %3616 }
 0x7a0   : > { %v1920_v14 = vadd.f32 0.5, %v1919_v49  ;;  %v3619_v38 = vpop.eup %3618 }
 0x7a1   : > { %v1924_v19 = vadd.f32 0.5, %v1923_v11  ;;  %v1928_v39 = vmul.f32 0.5, %v3619_v38 }
 0x7a2   : > { %v1932_v20 = vmul.f32 %v3617_v16, %v1920_v14 }
 0x7a3   : > { %v1931_v23 = vmul.f32 %v1924_v19, %v4954_v28  ;;  %v1929_v45 = vadd.f32 0.5, %v1928_v39  ;;  %v1939_v28 = vld [vmem:[#allocation3 + $0xa0] sm:$0xff] }
 0x7a5   : > { %v4992_v25 = vadd.f32 %v1932_v20, %v1931_v23 }
 0x7a7   : > { %3620 = vtanh.f32 %v4992_v25 }
 0x7b1   : > { %v3621_v51 = vpop.eup %3620 }
 0x7b2   : > { %v1935_v48 = vmul.f32 %v3621_v51, %v1929_v45 }
 0x7b4   : > { %1938 = vst [vmem:[#allocation2 + $0x20] sm:$0xff] %v1935_v48  ;;  %2009 = vmatmul.mubr.f32.vlgmr.msra.gmra.mrb[10].mxu0 %v1935_v48  ;;  %2080 = vmatmul.mubr.f32.vlgmr.msra.gmra.mrb[10].mxu1 %v1935_v48 }
 0x7b5   : > { %3334 = vmatpush1.bf16.msra.mxu0 %v4646_v57  ;;  %3366 = vmatpush1.bf16.msra.mxu1 %v4658_v15 }
 0x7b6   : > { %3336 = vmatprep.subr.bf16.mxu0 %v4650_v61  ;;  %3368 = vmatprep.subr.bf16.mxu1 %v4663_v18 }
 0x7b7   : > { %2181 = vmatprep.mubr.f32.mxu0 %v3774_v31  ;;  %2252 = vmatprep.mubr.f32.mxu1 %v3774_v31 }
 0x7b9   : > { %3338 = vmatpush1.bf16.msra.mxu0 %v4668_v21  ;;  %3370 = vmatpush1.bf16.msra.mxu1 %v4679_v27 }
 0x7ba   : > { %3340 = vmatprep.subr.bf16.mxu0 %v4675_v24  ;;  %3372 = vmatprep.subr.bf16.mxu1 %v4684_v30 }
 0x7bd   : > { %3342 = vmatpush1.bf16.msra.mxu0 %v4690_v34  ;;  %3374 = vmatpush1.bf16.msra.mxu1 %v4700_v41 }
 0x7be   : > { %3344 = vmatprep.subr.bf16.mxu0 %v4696_v37  ;;  %3376 = vmatprep.subr.bf16.mxu1 %v4705_v47 }
 0x7c1   : > { %3346 = vmatpush1.bf16.msra.mxu0 %v4711_v55  ;;  %3378 = vmatpush1.bf16.msra.mxu1 %v4721_v63 }
 0x7c2   : > { %3348 = vmatprep.subr.bf16.mxu0 %v4717_v54  ;;  %3380 = vmatprep.subr.bf16.mxu1 %v4726_v13 }
 0x7c5   : > { %3350 = vmatpush1.bf16.msra.mxu0 %v4731_v56  ;;  %3382 = vmatpush1.bf16.msra.mxu1 %v4741_v4 }
 0x7c6   : > { %3352 = vmatprep.subr.bf16.mxu0 %v4737_v3  ;;  %3384 = vmatprep.subr.bf16.mxu1 %v4746_v8 }
 0x7c9   : > { %3354 = vmatpush1.bf16.msra.mxu0 %v4751_v10  ;;  %3386 = vmatpush1.bf16.msra.mxu1 %v4761_v17 }
 0x7ca   : > { %3356 = vmatprep.subr.bf16.mxu0 %v4757_v12  ;;  %3388 = vmatprep.subr.bf16.mxu1 %v4766_v22 }
 0x7cd   : > { %3358 = vmatpush1.bf16.msra.mxu0 %v4771_v26  ;;  %3390 = vmatpush1.bf16.msra.mxu1 %v4781_v36 }
 0x7ce   : > { %3360 = vmatprep.subr.bf16.mxu0 %v4777_v32  ;;  %3392 = vmatprep.subr.bf16.mxu1 %v4786_v43 }
 0x7d1   : > { %3362 = vmatpush1.bf16.msra.mxu0 %v4791_v53  ;;  %3394 = vmatpush1.bf16.msra.mxu1 %v4797_v60 }
 0x7d2   : > { %3396 = vmatprep.subr.bf16.mxu0 %v4642_v7  ;;  %3428 = vmatprep.subr.bf16.mxu1 %v4654_v1 }
 0x887   : > { %v2010_v33 = vpop.f32.mrb[10].mxu0  ;;  %v2081_v35 = vpop.f32.mrb[10].mxu1 }
 0x888   : > { %v2086_v58 = vadd.f32 %v2010_v33, %v1939_v28  ;;  %v2012_v62 = vpop.f32.mrb[11].mxu0  ;;  %v2083_v59 = vpop.f32.mrb[11].mxu1  ;;  %v2088_v52 = vadd.f32 %v2081_v35, %v1941_v44  ;;  %v2287_v35 = vld [vmem:[#allocation3 + $0xf0] sm:$0xff] }
 0x889   : > { %v2087_v40 = vadd.f32 %v2012_v62, %v1940_v29  ;;  %v2089_v2 = vadd.f32 %v2083_v59, %v1942_v0 }
 0x88a   : > { %v2090_v42 = vmul.f32 0.5, %v2086_v58 }
 0x88b   : > { %v2094_v50 = vmul.f32 0.5, %v2087_v40  ;;  %v2099_v7 = vmul.f32 0.5, %v2089_v2  ;;  %v2288_v40 = vld [vmem:[#allocation3 + $0xf8] sm:$0xff] }
 0x88c   : > { %3622 = vtanh.f32 %v2090_v42 }
 0x88d   : > { %3624 = vtanh.f32 %v2094_v50 }
 0x88e   : > { %3626 = vtanh.f32 %v2088_v52 }
 0x88f   : > { %3628 = vtanh.f32 %v2099_v7 }
 0x896   : > { %v3623_v5 = vpop.eup %3622 }
 0x897   : > { %v3625_v1 = vpop.eup %3624  ;;  %v2092_v6 = vmul.f32 0.5, %v3623_v5 }
 0x898   : > { %v2096_v9 = vmul.f32 0.5, %v3625_v1  ;;  %v3627_v49 = vpop.eup %3626 }
 0x899   : > { %v2093_v46 = vadd.f32 0.5, %v2092_v6  ;;  %v3629_v20 = vpop.eup %3628 }
 0x89a   : > { %v2097_v11 = vadd.f32 0.5, %v2096_v9  ;;  %v2101_v23 = vmul.f32 0.5, %v3629_v20 }
 0x89b   : > { %v2105_v14 = vmul.f32 %v3627_v49, %v2093_v46 }
 0x89c   : > { %v2104_v16 = vmul.f32 %v2097_v11, %v4992_v25  ;;  %v2102_v38 = vadd.f32 0.5, %v2101_v23  ;;  %v2286_v25 = vld [vmem:[#allocation3 + $0xe8] sm:$0xff]  ;;  %v2470_v23 = vld [vmem:[%s5164_s4] sm:$0xff] (!%p2744_p8) }
 0x89e   : > { %v5030_v19 = vadd.f32 %v2105_v14, %v2104_v16 }
 0x8a0   : > { %3630 = vtanh.f32 %v5030_v19 }
 0x8aa   : > { %v3631_v39 = vpop.eup %3630 }
 0x8ab   : > { %v2108_v45 = vmul.f32 %v3631_v39, %v2102_v38  ;;  %v2471_v38 = vld [vmem:[%s5164_s4 + $0x8] sm:$0xff] (!%p2744_p8)  ;;  %v2472_v39 = vld [vmem:[%s5164_s4 + $0x10] sm:$0xff] (!%p2744_p8) }
 0x8ad   : > { %2111 = vst [vmem:[#allocation2 + $0x28] sm:$0xff] %v2108_v45  ;;  %2182 = vmatmul.mubr.f32.vlgmr.msra.gmra.mrb[12].mxu0 %v2108_v45  ;;  %2253 = vmatmul.mubr.f32.vlgmr.msra.gmra.mrb[12].mxu1 %v2108_v45  ;;  %v3459_v45 = vpack.c.bf16 (!%p2744_p8), %v2471_v38, %v2470_v23 }
 0x8ae   : > { %3398 = vmatpush1.bf16.msra.mxu0 %v4646_v57  ;;  %3430 = vmatpush1.bf16.msra.mxu1 %v4658_v15  ;;  %v2112_v57 = vld [vmem:[#allocation3 + $0xc0] sm:$0xff] }
 0x8af   : > { %3400 = vmatprep.subr.bf16.mxu0 %v4650_v61  ;;  %3432 = vmatprep.subr.bf16.mxu1 %v4663_v18  ;;  %v2113_v61 = vld [vmem:[#allocation3 + $0xc8] sm:$0xff] }
 0x8b0   : > { %2354 = vmatprep.mubr.f32.mxu0 %v3774_v31  ;;  %2425 = vmatprep.mubr.f32.mxu1 %v3774_v31 }
 0x8b2   : > { %3402 = vmatpush1.bf16.msra.mxu0 %v4668_v21  ;;  %3434 = vmatpush1.bf16.msra.mxu1 %v4679_v27 }
 0x8b3   : > { %3404 = vmatprep.subr.bf16.mxu0 %v4675_v24  ;;  %3436 = vmatprep.subr.bf16.mxu1 %v4684_v30  ;;  %v2114_v30 = vld [vmem:[#allocation3 + $0xd0] sm:$0xff] }
 0x8b6   : > { %3406 = vmatpush1.bf16.msra.mxu0 %v4690_v34  ;;  %3438 = vmatpush1.bf16.msra.mxu1 %v4700_v41 }
 0x8b7   : > { %3408 = vmatprep.subr.bf16.mxu0 %v4696_v37  ;;  %3440 = vmatprep.subr.bf16.mxu1 %v4705_v47  ;;  %v2115_v47 = vld [vmem:[#allocation3 + $0xd8] sm:$0xff] }
 0x8ba   : > { %3410 = vmatpush1.bf16.msra.mxu0 %v4711_v55  ;;  %3442 = vmatpush1.bf16.msra.mxu1 %v4721_v63 }
 0x8bb   : > { %3412 = vmatprep.subr.bf16.mxu0 %v4717_v54  ;;  %3444 = vmatprep.subr.bf16.mxu1 %v4726_v13 }
 0x8be   : > { %3414 = vmatpush1.bf16.msra.mxu0 %v4731_v56  ;;  %3446 = vmatpush1.bf16.msra.mxu1 %v4741_v4 }
 0x8bf   : > { %3416 = vmatprep.subr.bf16.mxu0 %v4737_v3  ;;  %3448 = vmatprep.subr.bf16.mxu1 %v4746_v8 }
 0x8c2   : > { %3418 = vmatpush1.bf16.msra.mxu0 %v4751_v10  ;;  %3450 = vmatpush1.bf16.msra.mxu1 %v4761_v17 }
 0x8c3   : > { %3420 = vmatprep.subr.bf16.mxu0 %v4757_v12  ;;  %3452 = vmatprep.subr.bf16.mxu1 %v4766_v22 }
 0x8c6   : > { %3422 = vmatpush1.bf16.msra.mxu0 %v4771_v26  ;;  %3454 = vmatpush1.bf16.msra.mxu1 %v4781_v36 }
 0x8c7   : > { %3424 = vmatprep.subr.bf16.mxu0 %v4777_v32  ;;  %3456 = vmatprep.subr.bf16.mxu1 %v4786_v43 }
 0x8ca   : > { %3426 = vmatpush1.bf16.msra.mxu0 %v4791_v53  ;;  %3458 = vmatpush1.bf16.msra.mxu1 %v4797_v60  ;;  %v2285_v60 = vld [vmem:[#allocation3 + $0xe0] sm:$0xff] }
 0x8cb   : > { %3460 = vmatprep.subr.bf16.mxu0 (!%p2744_p8), %v3459_v45  ;;  %3491 = vmatprep.subr.bf16.mxu1 (!%p2744_p8), %v3459_v45 }
 0x980   : > { %v2183_v15 = vpop.f32.mrb[12].mxu0  ;;  %v2254_v18 = vpop.f32.mrb[12].mxu1 }
 0x981   : > { %v2259_v21 = vadd.f32 %v2183_v15, %v2112_v57  ;;  %v2185_v24 = vpop.f32.mrb[13].mxu0  ;;  %v2256_v27 = vpop.f32.mrb[13].mxu1  ;;  %v2261_v41 = vadd.f32 %v2254_v18, %v2114_v30  ;;  %v2473_v57 = vld [vmem:[%s5164_s4 + $0x18] sm:$0xff] (!%p2744_p8)  ;;  %v2474_v15 = vld [vmem:[%s5164_s4 + $0x20] sm:$0xff] (!%p2744_p8)  ;;  %v2475_v18 = vld [vmem:[%s5164_s4 + $0x28] sm:$0xff] (!%p2744_p8) }
 0x982   : > { %v2260_v31 = vadd.f32 %v2185_v24, %v2113_v61  ;;  %v2262_v55 = vadd.f32 %v2256_v27, %v2115_v47  ;;  %v3463_v61 = vpack.c.bf16 (!%p2744_p8), %v2473_v57, %v2472_v39  ;;  %v2462_v24 = vld [vmem:[#allocation2] sm:$0xff] (!%p2744_p8)  ;;  %v2476_v30 = vld [vmem:[%s5164_s4 + $0x30] sm:$0xff] (!%p2744_p8) }
 0x983   : > { %v2263_v34 = vmul.f32 0.5, %v2259_v21  ;;  %v3467_v21 = vpack.c.bf16 (!%p2744_p8), %v2475_v18, %v2474_v15  ;;  %v2466_v27 = vld [vmem:[#allocation2 + $0x20] sm:$0xff] (!%p2744_p8) }
 0x984   : > { %v2267_v37 = vmul.f32 0.5, %v2260_v31  ;;  %v2272_v54 = vmul.f32 0.5, %v2262_v55  ;;  %v2477_v31 = vld [vmem:[%s5164_s4 + $0x38] sm:$0xff] (!%p2744_p8)  ;;  %v2480_v55 = vld [vmem:[%s5164_s4 + $0x50] sm:$0xff] (!%p2744_p8) }
 0x985   : > { %3632 = vtanh.f32 %v2263_v34  ;;  %v3471_v34 = vpack.c.bf16 (!%p2744_p8), %v2477_v31, %v2476_v30 }
 0x986   : > { %3634 = vtanh.f32 %v2267_v37  ;;  %v2478_v37 = vld [vmem:[%s5164_s4 + $0x40] sm:$0xff] (!%p2744_p8) }
 0x987   : > { %3636 = vtanh.f32 %v2261_v41  ;;  %v2479_v41 = vld [vmem:[%s5164_s4 + $0x48] sm:$0xff] (!%p2744_p8) }
 0x988   : > { %3638 = vtanh.f32 %v2272_v54  ;;  %v3475_v47 = vpack.c.bf16 (!%p2744_p8), %v2479_v41, %v2478_v37  ;;  %v2481_v54 = vld [vmem:[%s5164_s4 + $0x58] sm:$0xff] (!%p2744_p8) }
 0x98f   : > { %v3633_v63 = vpop.eup %3632 }
 0x990   : > { %v3635_v13 = vpop.eup %3634  ;;  %v2265_v56 = vmul.f32 0.5, %v3633_v63  ;;  %v3479_v63 = vpack.c.bf16 (!%p2744_p8), %v2481_v54, %v2480_v55 }
 0x991   : > { %v2269_v3 = vmul.f32 0.5, %v3635_v13  ;;  %v3637_v8 = vpop.eup %3636  ;;  %v2482_v13 = vld [vmem:[%s5164_s4 + $0x60] sm:$0xff] (!%p2744_p8) }
 0x992   : > { %v2266_v4 = vadd.f32 0.5, %v2265_v56  ;;  %v3639_v26 = vpop.eup %3638  ;;  %v2483_v56 = vld [vmem:[%s5164_s4 + $0x68] sm:$0xff] (!%p2744_p8) }
 0x993   : > { %v2270_v10 = vadd.f32 0.5, %v2269_v3  ;;  %v2274_v32 = vmul.f32 0.5, %v3639_v26  ;;  %v3483_v3 = vpack.c.bf16 (!%p2744_p8), %v2483_v56, %v2482_v13 }
 0x994   : > { %v2278_v12 = vmul.f32 %v3637_v8, %v2266_v4  ;;  %v2484_v4 = vld [vmem:[%s5164_s4 + $0x70] sm:$0xff] (!%p2744_p8)  ;;  %v2485_v8 = vld [vmem:[%s5164_s4 + $0x78] sm:$0xff] (!%p2744_p8) }
 0x995   : > { %v2277_v17 = vmul.f32 %v2270_v10, %v5030_v19  ;;  %v2275_v36 = vadd.f32 0.5, %v2274_v32  ;;  %v3487_v10 = vpack.c.bf16 (!%p2744_p8), %v2485_v8, %v2484_v4  ;;  %v2465_v32 = vld [vmem:[#allocation2 + $0x18] sm:$0xff] (!%p2744_p8) }
 0x997   : > { %v2279_v22 = vadd.f32 %v2278_v12, %v2277_v17  ;;  %v2463_v12 = vld [vmem:[#allocation2 + $0x8] sm:$0xff] (!%p2744_p8) }
 0x998   : > { %v2467_v17 = vld [vmem:[#allocation2 + $0x28] sm:$0xff] (!%p2744_p8) }
 0x999   : > { %3640 = vtanh.f32 %v2279_v22 }
 0x9a3   : > { %v3641_v43 = vpop.eup %3640 }
 0x9a4   : > { %v2281_v53 = vmul.f32 %v3641_v43, %v2275_v36  ;;  %v2745_v43 = vld [vmem:[%s5165_s5] ss:$0 sm:$0xff] (!%p2744_p8) }
 0x9a6   : > { %2284 = vst [vmem:[#allocation2 + $0x30] sm:$0xff] %v2281_v53  ;;  %2355 = vmatmul.mubr.f32.vlgmr.msra.gmra.mrb[14].mxu0 %v2281_v53  ;;  %2426 = vmatmul.mubr.f32.vlgmr.msra.gmra.mrb[14].mxu1 %v2281_v53 }
 0x9a7   : > { %3462 = vmatpush3.bf16.msra.mxu0 (!%p2744_p8), %v3459_v45  ;;  %3499 = vmatpush3.bf16.msra.mxu1 (!%p2744_p8), %v3459_v45 }
 0x9a8   : > { %3464 = vmatprep.subr.bf16.mxu0 (!%p2744_p8), %v3463_v61  ;;  %3492 = vmatprep.subr.bf16.mxu1 (!%p2744_p8), %v3463_v61 }
 0x9a9   : > { %2807 = vmatprep.mubr.f32.mxu0 (!%p2744_p8), %v2462_v24  ;;  %2813 = vmatprep.mubr.f32.mxu1 (!%p2744_p8), %v2466_v27 }
 0x9ab   : > { %3466 = vmatpush3.bf16.msra.mxu0 (!%p2744_p8), %v3463_v61  ;;  %3500 = vmatpush3.bf16.msra.mxu1 (!%p2744_p8), %v3463_v61 }
 0x9ac   : > { %3468 = vmatprep.subr.bf16.mxu0 (!%p2744_p8), %v3467_v21  ;;  %3493 = vmatprep.subr.bf16.mxu1 (!%p2744_p8), %v3467_v21 }
 0x9ad   : > { %v2468_v26 = vld [vmem:[#allocation2 + $0x30] sm:$0xff] (!%p2744_p8) }
 0x9af   : > { %3470 = vmatpush3.bf16.msra.mxu0 (!%p2744_p8), %v3467_v21  ;;  %3501 = vmatpush3.bf16.msra.mxu1 (!%p2744_p8), %v3467_v21 }
 0x9b0   : > { %3472 = vmatprep.subr.bf16.mxu0 (!%p2744_p8), %v3471_v34  ;;  %3494 = vmatprep.subr.bf16.mxu1 (!%p2744_p8), %v3471_v34 }
 0x9b3   : > { %3474 = vmatpush3.bf16.msra.mxu0 (!%p2744_p8), %v3471_v34  ;;  %3502 = vmatpush3.bf16.msra.mxu1 (!%p2744_p8), %v3471_v34 }
 0x9b4   : > { %3476 = vmatprep.subr.bf16.mxu0 (!%p2744_p8), %v3475_v47  ;;  %3495 = vmatprep.subr.bf16.mxu1 (!%p2744_p8), %v3475_v47 }
 0x9b7   : > { %3478 = vmatpush3.bf16.msra.mxu0 (!%p2744_p8), %v3475_v47  ;;  %3503 = vmatpush3.bf16.msra.mxu1 (!%p2744_p8), %v3475_v47 }
 0x9b8   : > { %3480 = vmatprep.subr.bf16.mxu0 (!%p2744_p8), %v3479_v63  ;;  %3496 = vmatprep.subr.bf16.mxu1 (!%p2744_p8), %v3479_v63 }
 0x9bb   : > { %3482 = vmatpush3.bf16.msra.mxu0 (!%p2744_p8), %v3479_v63  ;;  %3504 = vmatpush3.bf16.msra.mxu1 (!%p2744_p8), %v3479_v63 }
 0x9bc   : > { %3484 = vmatprep.subr.bf16.mxu0 (!%p2744_p8), %v3483_v3  ;;  %3497 = vmatprep.subr.bf16.mxu1 (!%p2744_p8), %v3483_v3 }
 0x9bf   : > { %3486 = vmatpush3.bf16.msra.mxu0 (!%p2744_p8), %v3483_v3  ;;  %3505 = vmatpush3.bf16.msra.mxu1 (!%p2744_p8), %v3483_v3 }
 0x9c0   : > { %3488 = vmatprep.subr.bf16.mxu0 (!%p2744_p8), %v3487_v10  ;;  %3498 = vmatprep.subr.bf16.mxu1 (!%p2744_p8), %v3487_v10 }
 0x9c3   : > { %3490 = vmatpush3.bf16.msra.mxu0 (!%p2744_p8), %v3487_v10  ;;  %3506 = vmatpush3.bf16.msra.mxu1 (!%p2744_p8), %v3487_v10 }
 0x9c6   : > { %2808 = vmatmul.mubr.f32.vlgmr.msra.gmra.mrb[0].mxu0 (!%p2744_p8), %v2463_v12  ;;  %2814 = vmatmul.mubr.f32.vlgmr.msra.gmra.mrb[0].mxu1 (!%p2744_p8), %v2467_v17 }
 0x9c7   : > { %2816 = vmatprep.mubr.f32.mxu1 (!%p2744_p8), %v2468_v26 }
 0xa79   : > { %v2356_v51 = vpop.f32.mrb[14].mxu0  ;;  %v2427_v48 = vpop.f32.mrb[14].mxu1 }
 0xa7a   : > { %v2432_v28 = vadd.f32 %v2356_v51, %v2285_v60  ;;  %v2358_v29 = vpop.f32.mrb[15].mxu0  ;;  %v2429_v33 = vpop.f32.mrb[15].mxu1  ;;  %v2434_v44 = vadd.f32 %v2427_v48, %v2287_v35 }
 0xa7b   : > { %v2433_v58 = vadd.f32 %v2358_v29, %v2286_v25  ;;  %v2435_v42 = vadd.f32 %v2429_v33, %v2288_v40 }
 0xa7c   : > { %v2436_v62 = vmul.f32 0.5, %v2432_v28 }
 0xa7d   : > { %v2440_v59 = vmul.f32 0.5, %v2433_v58  ;;  %v2445_v50 = vmul.f32 0.5, %v2435_v42 }
 0xa7e   : > { %3642 = vtanh.f32 %v2436_v62 }
 0xa7f   : > { %3644 = vtanh.f32 %v2440_v59 }
 0xa80   : > { %3646 = vtanh.f32 %v2434_v44 }
 0xa81   : > { %3648 = vtanh.f32 %v2445_v50 }
 0xa88   : > { %v3643_v52 = vpop.eup %3642 }
 0xa89   : > { %v3645_v0 = vpop.eup %3644  ;;  %v2438_v2 = vmul.f32 0.5, %v3643_v52 }
 0xa8a   : > { %v2442_v7 = vmul.f32 0.5, %v3645_v0  ;;  %v3647_v1 = vpop.eup %3646 }
 0xa8b   : > { %v2439_v5 = vadd.f32 0.5, %v2438_v2  ;;  %v3649_v11 = vpop.eup %3648 }
 0xa8c   : > { %v2443_v6 = vadd.f32 0.5, %v2442_v7  ;;  %v2447_v14 = vmul.f32 0.5, %v3649_v11 }
 0xa8d   : > { %v2451_v9 = vmul.f32 %v3647_v1, %v2439_v5 }
 0xa8e   : > { %v2450_v46 = vmul.f32 %v2443_v6, %v2279_v22  ;;  %v2448_v16 = vadd.f32 0.5, %v2447_v14  ;;  %v2464_v22 = vld [vmem:[#allocation2 + $0x10] sm:$0xff] (!%p2744_p8) }
 0xa8f   : > { %2810 = vmatprep.mubr.f32.mxu0 (!%p2744_p8), %v2464_v22 }
 0xa90   : > { %v2452_v49 = vadd.f32 %v2451_v9, %v2450_v46  ;;  %2811 = vmatmul.mubr.f32.gmra.mrb[2].mxu0 (!%p2744_p8), %v2465_v32 }
 0xa92   : > { %3650 = vtanh.f32 %v2452_v49 }
 0xa99   : > { %2461 = sbr.rel (%p2744_p8) target bundleno = 2943 (0xb7f), region = 64  ;;  %v2809_v53 = vpop.f32.mrb[0].mxu0 (!%p2744_p8)  ;;  %v2815_v60 = vpop.f32.mrb[0].mxu1 (!%p2744_p8) }
 0xa9a   : > { %v2565_v25 = vadd.f32 (!%p2744_p8), %v2809_v53, %v2745_v43  ;;  %v2585_v51 = vadd.f32 (!%p2744_p8), %v2815_v60, %v2745_v43  ;;  %v2559_v48 = vpop.f32.mrb[1].mxu0 (!%p2744_p8)  ;;  %v2579_v28 = vpop.f32.mrb[1].mxu1 (!%p2744_p8) }
 0xa9b   : > { %v2560_v29 = vadd.f32 (!%p2744_p8), %v2745_v43, %v2559_v48  ;;  %v2580_v33 = vadd.f32 (!%p2744_p8), %v2745_v43, %v2579_v28 }
 0xa9c   : > { %v3651_v19 = vpop.eup %3650  ;;  %2599 = vst [vmem:[%s5166_s6 + $0x8] sm:$0xff] (!%p2744_p8), %v2565_v25  ;;  %2603 = vst [vmem:[%s5166_s6 + $0x28] sm:$0xff] (!%p2744_p8), %v2585_v51 }
 0xa9d   : > { %v2454_v20 = vmul.f32 %v3651_v19, %v2448_v16  ;;  %2598 = vst [vmem:[%s5166_s6] sm:$0xff] (!%p2744_p8), %v2560_v29  ;;  %2602 = vst [vmem:[%s5166_s6 + $0x20] sm:$0xff] (!%p2744_p8), %v2580_v33 }
 0xa9f   : > { %2457 = vst [vmem:[#allocation2 + $0x38] sm:$0xff] %v2454_v20 }
 0xaa6   : > { %v2469_v36 = vld [vmem:[#allocation2 + $0x38] sm:$0xff] }
 0xaa7   : > { %2817 = vmatmul.mubr.f32.gmra.mrb[2].mxu1 %v2469_v36 }
 0xb63   : > { %v2812_v35 = vpop.f32.mrb[2].mxu0 }
 0xb64   : > { %v2575_v62 = vadd.f32 %v2812_v35, %v2745_v43  ;;  %v2569_v44 = vpop.f32.mrb[3].mxu0 }
 0xb65   : > { %v2570_v42 = vadd.f32 %v2745_v43, %v2569_v44 }
 0xb66   : > { %2601 = vst [vmem:[%s5166_s6 + $0x18] sm:$0xff] %v2575_v62 }
 0xb67   : > { %2600 = vst [vmem:[%s5166_s6 + $0x10] sm:$0xff] %v2570_v42 }
 0xb7a   : > { %v2818_v58 = vpop.f32.mrb[2].mxu1 }
 0xb7b   : > { %v2595_v59 = vadd.f32 %v2818_v58, %v2745_v43  ;;  %v2589_v40 = vpop.f32.mrb[3].mxu1 }
 0xb7c   : > { %v2590_v50 = vadd.f32 %v2745_v43, %v2589_v40 }
 0xb7d   : > { %2605 = vst [vmem:[%s5166_s6 + $0x38] sm:$0xff] %v2595_v59 }
 0xb7e   : > { %2604 = vst [vmem:[%s5166_s6 + $0x30] sm:$0xff] %v2590_v50 }
 0xb7f PF: > { %s22_s26 = sadd.s32 1, %s3766_s26   ;;  %s5364_s21 = smov %s3750_s22 }
 0xb80   : > { %p19_p1 = scmp.ge.s32.totalorder %s22_s26, 4   ;;  %s5365_s22 = smov %s3754_s23 }
 0xb81   : > { %s5366_s23 = smov %s3859_s9  ;;  %s5367_s24 = smov %s3762_s25 }
 0xb82   : > { %s5368_s25 = smov %s5370_s28  ;;  %21 = sbr.rel (!%p19_p1) target bundleno = 6 (0x6), region = 115 }
 0xb89   :  { %2627 = vsyncpa [#allocation7], 1 }
 0xb8a   :  { %2629 = vsyncpa [#allocation7 + $0x1], 1 }
 0xb8b   :  { %2630 = vsyncpa [#allocation9], 1 }
 0xb8c   :  { %2632 = vsyncpa [#allocation9 + $0x1], 1 }

</bundles_post_ra>
